<compile_context>
chip_gen: v7x
topology: tpu7x:2x2x1
jax: 0.10.0
libtpu: 0.0.40
codegen_flags: <defaults>
</compile_context>

<pallas_src>
import jax
import jax.numpy as jnp
from jax import lax
from jax.experimental import pallas as pl
from jax.experimental.pallas import tpu as pltpu

KNOW_INPUT_DIM = 8     # config.knowledge_input_dim
REP_DIM = 32           # config.knowledge_representation_dim
GROUP = 4              # examples packed per lane-dense row (GROUP * REP_DIM == 128)

_INV_SQRT2 = 0.7071067811865476


def _gelu(x):
    # Exact (erf-based) GELU, matching torch.nn.GELU() default.
    return 0.5 * x * (1.0 + lax.erf(x * _INV_SQRT2))


def _make_kernel(set_size):
    """Kernel with static folded widths for a given set size S."""
    d_in = GROUP * set_size * KNOW_INPUT_DIM   # folded input width   (256 for S=8)
    d_hid = GROUP * set_size * REP_DIM         # folded hidden width  (1024 for S=8)
    d_out = GROUP * REP_DIM                    # folded output width  (128)

    def kernel(x_ref, w01_ref, b01_ref, w2s_ref, wtail_ref, btail_ref, o_ref):
        x = x_ref[...]                                   # (T, d_in), no reshapes
        b01 = b01_ref[...]                               # (2, d_hid)
        bt = btail_ref[...]                              # (7, d_out)

        def dot(a, w):
            return jnp.dot(a, w, preferred_element_type=jnp.float32)

        # --- SetEmbedding.h1 layers 0,1 (block-diagonal over GROUP*S copies) ---
        h = _gelu(dot(x, w01_ref[0:d_in, :]) + b01[0:1, :])            # (T, d_hid)
        h = _gelu(dot(h, w01_ref[d_in:d_in + d_hid, :]) + b01[1:2, :]) # (T, d_hid)

        # --- h1 layer 2 + torch.sum(ks, dim=1): stacked W2 does both at once ---
        k = dot(h, w2s_ref[...]) + bt[0:1, :]                          # (T, d_out)

        # --- SetEmbedding.h2 (layers 3..5) and knowledge_encoder (layers 6..8),
        #     4-way block-diagonal so everything stays 128 lanes wide ---
        for j in range(6):
            w = wtail_ref[j * d_out:(j + 1) * d_out, :]                # static slice
            k = dot(k, w) + bt[j + 1:j + 2, :]
            if j in (0, 1, 3, 4):                        # GELU on hidden layers only
                k = _gelu(k)

        o_ref[...] = k                                   # lane-dense (T, 128) store

    return kernel


def init_params(key):
    """Deterministic synthetic weights. Each MLP = 3 Linear layers (num_hidden=2)."""
    in_dims = [KNOW_INPUT_DIM] + [REP_DIM] * 8
    keys = jax.random.split(key, 2 * len(in_dims))
    params = []
    for i, din in enumerate(in_dims):
        w = jax.random.normal(keys[2 * i], (din, REP_DIM), jnp.float32) / jnp.sqrt(din)
        b = jax.random.normal(keys[2 * i + 1], (REP_DIM,), jnp.float32) * 0.02
        params.append((w, b))
    return params


def _pack_params(params, set_size):
    """Build block-diagonal / stacked weight slabs (once, outside the kernel)."""
    assert len(params) == 9
    S, G = set_size, GROUP
    ws = [w.astype(jnp.float32) for w, _ in params]
    bs = [b.astype(jnp.float32) for _, b in params]

    eye_gs = jnp.eye(G * S, dtype=jnp.float32)
    eye_g = jnp.eye(G, dtype=jnp.float32)

    w0_bd = jnp.kron(eye_gs, ws[0])                         # (G*S*Din, G*S*REP)
    w1_bd = jnp.kron(eye_gs, ws[1])                         # (G*S*REP, G*S*REP)
    # sum_s(h_s @ W2 + b2) == concat_s(h_s) @ vstack([W2]*S) + S*b2
    w2_stacked = jnp.kron(eye_g, jnp.tile(ws[2], (S, 1)))   # (G*S*REP, G*REP)
    w_tail = jnp.concatenate([jnp.kron(eye_g, w) for w in ws[3:9]], axis=0)

    w01 = jnp.concatenate([w0_bd, w1_bd], axis=0)           # (G*S*(Din+REP), G*S*REP)
    b01 = jnp.stack([jnp.tile(bs[0], G * S), jnp.tile(bs[1], G * S)], axis=0)
    btail = jnp.stack([jnp.tile(float(S) * bs[2], G)] +
                      [jnp.tile(b, G) for b in bs[3:9]], axis=0)  # (7, G*REP)
    return w01, b01, w2_stacked, w_tail, btail


def _round_up(x, m):
    return -(-x // m) * m


def _plan_rows(rows_needed, cap=512, min_blocks=2):
    """Row tile (multiple of 8, capped) and padded row count (>= min_blocks tiles)."""
    tile = max(8, _round_up(-(-rows_needed // min_blocks), 8))
    tile = min(tile, cap)
    n_blocks = max(-(-rows_needed // tile), min_blocks)
    return tile, n_blocks * tile


def knowledge_encoder(knowledge, params, tile_rows=None):
    B, S, Din = knowledge.shape
    assert Din == KNOW_INPUT_DIM
    # Keep the folded block-diagonal slab a sane VMEM size (S is small in INP configs).
    assert GROUP * S * REP_DIM <= 2048, "set size too large for this lane-folded packing"

    w01, b01, w2s, wtail, btail = _pack_params(params, S)

    d_in = GROUP * S * Din
    d_out = GROUP * REP_DIM

    rows_needed = -(-B // GROUP)
    if tile_rows is None:
        tile_rows, rows_padded = _plan_rows(rows_needed)
    else:
        assert tile_rows % 8 == 0
        rows_padded = _round_up(max(rows_needed, 2 * tile_rows), tile_rows)
    n_blocks = rows_padded // tile_rows
    b_padded = rows_padded * GROUP

    # Wrapper-side flattening & zero padding (free relayout in HBM, contiguous DMA).
    x2d = knowledge.reshape(B, S * Din).astype(jnp.float32)
    if b_padded > B:
        x2d = jnp.concatenate(
            [x2d, jnp.zeros((b_padded - B, S * Din), jnp.float32)], axis=0)
    x_rows = x2d.reshape(rows_padded, d_in)     # GROUP consecutive examples per row

    out = pl.pallas_call(
        _make_kernel(S),
        out_shape=jax.ShapeDtypeStruct((rows_padded, d_out), jnp.float32),
        grid_spec=pltpu.PrefetchScalarGridSpec(
            num_scalar_prefetch=0,
            grid=(n_blocks,),
            in_specs=[
                pl.BlockSpec((tile_rows, d_in), lambda i: (i, 0)),
                pl.BlockSpec(w01.shape, lambda i: (0, 0)),     # resident weights
                pl.BlockSpec(b01.shape, lambda i: (0, 0)),
                pl.BlockSpec(w2s.shape, lambda i: (0, 0)),
                pl.BlockSpec(wtail.shape, lambda i: (0, 0)),
                pl.BlockSpec(btail.shape, lambda i: (0, 0)),
            ],
            out_specs=pl.BlockSpec((tile_rows, d_out), lambda i: (i, 0)),
        ),
        compiler_params=pltpu.CompilerParams(dimension_semantics=("parallel",)),
    )(x_rows, w01, b01, w2s, wtail, btail)

    # (rows, 128) is row-major identical to (b_padded, 32); drop padding, add set dim.
    return out.reshape(b_padded, REP_DIM)[:B].reshape(B, 1, REP_DIM)


def knowledge_encoder_ref(knowledge, params):
    """Pure-JAX reference mirroring the PyTorch forward."""
    def mlp(x, layers):
        for w, b in layers[:-1]:
            x = _gelu(x @ w + b)
        w, b = layers[-1]
        return x @ w + b

    h1, h2, ke = params[0:3], params[3:6], params[6:9]
    ks = mlp(knowledge, h1)                     # (B, S, REP)
    k = jnp.sum(ks, axis=1, keepdims=True)      # (B, 1, REP)
    k = mlp(k, h2)
    return mlp(k, ke)                           # (B, 1, REP)


if __name__ == "__main__":
    key = jax.random.PRNGKey(0)
    k_inp, k_par = jax.random.split(key)

    # Small demo shapes: B=16, S=8 -> 4 packed rows, padded to 16 rows, grid=(2,)
    # so both v7x TensorCores receive a block.
    B, S = 16, 8
    knowledge = jax.random.normal(k_inp, (B, S, KNOW_INPUT_DIM), jnp.float32)
    params = init_params(k_par)

    out = knowledge_encoder(knowledge, params)
    out = jax.block_until_ready(out)

    ref = knowledge_encoder_ref(knowledge, params)
    assert out.shape == (B, 1, REP_DIM), out.shape
    assert out.dtype == jnp.float32
    max_err = float(jnp.max(jnp.abs(out - ref)))
    # Tolerance covers f32 accumulation-order differences from the fused
    # (MXU K-dim) set-sum; real bugs would produce O(1) errors.
    assert jnp.allclose(out, ref, rtol=1e-4, atol=1e-3), max_err

    print("KERNEL_OK")
</pallas_src>

<mosaic_0001>
module attributes {stable_mosaic.version = 11 : i64} {
  func.func @kernel(%arg0: i32, %arg1: memref<8x256xf32, #tpu.memory_space<vmem>>, %arg2: memref<1280x1024xf32, #tpu.memory_space<vmem>>, %arg3: memref<2x1024xf32, #tpu.memory_space<vmem>>, %arg4: memref<1024x128xf32, #tpu.memory_space<vmem>>, %arg5: memref<768x128xf32, #tpu.memory_space<vmem>>, %arg6: memref<7x128xf32, #tpu.memory_space<vmem>>, %arg7: memref<8x128xf32, #tpu.memory_space<vmem>>) attributes {dimension_semantics = [#tpu.dimension_semantics<parallel>], iteration_bounds = array<i64: 2>, scalar_prefetch = 0 : i64, scratch_operands = 0 : i64, tpu.core_type = #tpu.core_type<tc>, window_params = [{transform_indices = @transform_0, window_bounds = array<i64: 8, 256>}, {pipeline_mode = #tpu.pipeline_mode<synchronous>, transform_indices = @transform_1, window_bounds = array<i64: 1280, 1024>}, {pipeline_mode = #tpu.pipeline_mode<synchronous>, transform_indices = @transform_2, window_bounds = array<i64: 2, 1024>}, {pipeline_mode = #tpu.pipeline_mode<synchronous>, transform_indices = @transform_3, window_bounds = array<i64: 1024, 128>}, {pipeline_mode = #tpu.pipeline_mode<synchronous>, transform_indices = @transform_4, window_bounds = array<i64: 768, 128>}, {pipeline_mode = #tpu.pipeline_mode<synchronous>, transform_indices = @transform_5, window_bounds = array<i64: 7, 128>}, {transform_indices = @transform_6, window_bounds = array<i64: 8, 128>}]} {
    %c0 = arith.constant 0 : index
    %c0_0 = arith.constant 0 : index
    %0 = vector.load %arg1[%c0, %c0_0] : memref<8x256xf32, #tpu.memory_space<vmem>>, vector<8x256xf32>
    %c0_1 = arith.constant 0 : index
    %c0_2 = arith.constant 0 : index
    %1 = vector.load %arg3[%c0_1, %c0_2] : memref<2x1024xf32, #tpu.memory_space<vmem>>, vector<2x1024xf32>
    %c0_3 = arith.constant 0 : index
    %c0_4 = arith.constant 0 : index
    %2 = vector.load %arg6[%c0_3, %c0_4] : memref<7x128xf32, #tpu.memory_space<vmem>>, vector<7x128xf32>
    %c0_5 = arith.constant 0 : index
    %c0_6 = arith.constant 0 : index
    %3 = vector.load %arg2[%c0_5, %c0_6] : memref<1280x1024xf32, #tpu.memory_space<vmem>>, vector<256x1024xf32>
    %cst = arith.constant dense<0.000000e+00> : vector<8x1024xf32>
    %4 = tpu.matmul %0, %3, %cst {dimension_numbers = #tpu.dot_dimension_numbers<[1], [0], [0], [1], [0, 0, 1, 1], [], []>} : vector<8x256xf32>, vector<256x1024xf32>, vector<8x1024xf32> -> vector<8x1024xf32>
    %5 = vector.extract_strided_slice %1 {offsets = [0, 0], sizes = [1, 1024], strides = [1, 1]} : vector<2x1024xf32> to vector<1x1024xf32>
    %6 = vector.broadcast %5 : vector<1x1024xf32> to vector<8x1024xf32>
    %7 = arith.addf %4, %6 : vector<8x1024xf32>
    %cst_7 = arith.constant 5.000000e-01 : f32
    %8 = vector.broadcast %cst_7 : f32 to vector<8x1024xf32>
    %9 = arith.mulf %8, %7 : vector<8x1024xf32>
    %cst_8 = arith.constant 0.707106769 : f32
    %10 = vector.broadcast %cst_8 : f32 to vector<8x1024xf32>
    %11 = arith.mulf %7, %10 : vector<8x1024xf32>
    %12 = math.erf %11 : vector<8x1024xf32>
    %cst_9 = arith.constant 1.000000e+00 : f32
    %13 = vector.broadcast %cst_9 : f32 to vector<8x1024xf32>
    %14 = arith.addf %13, %12 : vector<8x1024xf32>
    %15 = arith.mulf %9, %14 : vector<8x1024xf32>
    %c256 = arith.constant 256 : index
    %c0_10 = arith.constant 0 : index
    %16 = vector.load %arg2[%c256, %c0_10] : memref<1280x1024xf32, #tpu.memory_space<vmem>>, vector<1024x1024xf32>
    %cst_11 = arith.constant dense<0.000000e+00> : vector<8x1024xf32>
    %17 = tpu.matmul %15, %16, %cst_11 {dimension_numbers = #tpu.dot_dimension_numbers<[1], [0], [0], [1], [0, 0, 1, 1], [], []>} : vector<8x1024xf32>, vector<1024x1024xf32>, vector<8x1024xf32> -> vector<8x1024xf32>
    %18 = vector.extract_strided_slice %1 {offsets = [1, 0], sizes = [1, 1024], strides = [1, 1]} : vector<2x1024xf32> to vector<1x1024xf32>
    %19 = vector.broadcast %18 : vector<1x1024xf32> to vector<8x1024xf32>
    %20 = arith.addf %17, %19 : vector<8x1024xf32>
    %cst_12 = arith.constant 5.000000e-01 : f32
    %21 = vector.broadcast %cst_12 : f32 to vector<8x1024xf32>
    %22 = arith.mulf %21, %20 : vector<8x1024xf32>
    %cst_13 = arith.constant 0.707106769 : f32
    %23 = vector.broadcast %cst_13 : f32 to vector<8x1024xf32>
    %24 = arith.mulf %20, %23 : vector<8x1024xf32>
    %25 = math.erf %24 : vector<8x1024xf32>
    %cst_14 = arith.constant 1.000000e+00 : f32
    %26 = vector.broadcast %cst_14 : f32 to vector<8x1024xf32>
    %27 = arith.addf %26, %25 : vector<8x1024xf32>
    %28 = arith.mulf %22, %27 : vector<8x1024xf32>
    %c0_15 = arith.constant 0 : index
    %c0_16 = arith.constant 0 : index
    %29 = vector.load %arg4[%c0_15, %c0_16] : memref<1024x128xf32, #tpu.memory_space<vmem>>, vector<1024x128xf32>
    %cst_17 = arith.constant dense<0.000000e+00> : vector<8x128xf32>
    %30 = tpu.matmul %28, %29, %cst_17 {dimension_numbers = #tpu.dot_dimension_numbers<[1], [0], [0], [1], [0, 0, 1, 1], [], []>} : vector<8x1024xf32>, vector<1024x128xf32>, vector<8x128xf32> -> vector<8x128xf32>
    %31 = vector.extract_strided_slice %2 {offsets = [0, 0], sizes = [1, 128], strides = [1, 1]} : vector<7x128xf32> to vector<1x128xf32>
    %32 = vector.broadcast %31 : vector<1x128xf32> to vector<8x128xf32>
    %33 = arith.addf %30, %32 : vector<8x128xf32>
    %c0_18 = arith.constant 0 : index
    %c0_19 = arith.constant 0 : index
    %34 = vector.load %arg5[%c0_18, %c0_19] : memref<768x128xf32, #tpu.memory_space<vmem>>, vector<128x128xf32>
    %cst_20 = arith.constant dense<0.000000e+00> : vector<8x128xf32>
    %35 = tpu.matmul %33, %34, %cst_20 {dimension_numbers = #tpu.dot_dimension_numbers<[1], [0], [0], [1], [0, 0, 1, 1], [], []>} : vector<8x128xf32>, vector<128x128xf32>, vector<8x128xf32> -> vector<8x128xf32>
    %36 = vector.extract_strided_slice %2 {offsets = [1, 0], sizes = [1, 128], strides = [1, 1]} : vector<7x128xf32> to vector<1x128xf32>
    %37 = vector.broadcast %36 : vector<1x128xf32> to vector<8x128xf32>
    %38 = arith.addf %35, %37 : vector<8x128xf32>
    %cst_21 = arith.constant 5.000000e-01 : f32
    %39 = vector.broadcast %cst_21 : f32 to vector<8x128xf32>
    %40 = arith.mulf %39, %38 : vector<8x128xf32>
    %cst_22 = arith.constant 0.707106769 : f32
    %41 = vector.broadcast %cst_22 : f32 to vector<8x128xf32>
    %42 = arith.mulf %38, %41 : vector<8x128xf32>
    %43 = math.erf %42 : vector<8x128xf32>
    %cst_23 = arith.constant 1.000000e+00 : f32
    %44 = vector.broadcast %cst_23 : f32 to vector<8x128xf32>
    %45 = arith.addf %44, %43 : vector<8x128xf32>
    %46 = arith.mulf %40, %45 : vector<8x128xf32>
    %c128 = arith.constant 128 : index
    %c0_24 = arith.constant 0 : index
    %47 = vector.load %arg5[%c128, %c0_24] : memref<768x128xf32, #tpu.memory_space<vmem>>, vector<128x128xf32>
    %cst_25 = arith.constant dense<0.000000e+00> : vector<8x128xf32>
    %48 = tpu.matmul %46, %47, %cst_25 {dimension_numbers = #tpu.dot_dimension_numbers<[1], [0], [0], [1], [0, 0, 1, 1], [], []>} : vector<8x128xf32>, vector<128x128xf32>, vector<8x128xf32> -> vector<8x128xf32>
    %49 = vector.extract_strided_slice %2 {offsets = [2, 0], sizes = [1, 128], strides = [1, 1]} : vector<7x128xf32> to vector<1x128xf32>
    %50 = vector.broadcast %49 : vector<1x128xf32> to vector<8x128xf32>
    %51 = arith.addf %48, %50 : vector<8x128xf32>
    %cst_26 = arith.constant 5.000000e-01 : f32
    %52 = vector.broadcast %cst_26 : f32 to vector<8x128xf32>
    %53 = arith.mulf %52, %51 : vector<8x128xf32>
    %cst_27 = arith.constant 0.707106769 : f32
    %54 = vector.broadcast %cst_27 : f32 to vector<8x128xf32>
    %55 = arith.mulf %51, %54 : vector<8x128xf32>
    %56 = math.erf %55 : vector<8x128xf32>
    %cst_28 = arith.constant 1.000000e+00 : f32
    %57 = vector.broadcast %cst_28 : f32 to vector<8x128xf32>
    %58 = arith.addf %57, %56 : vector<8x128xf32>
    %59 = arith.mulf %53, %58 : vector<8x128xf32>
    %c256_29 = arith.constant 256 : index
    %c0_30 = arith.constant 0 : index
    %60 = vector.load %arg5[%c256_29, %c0_30] : memref<768x128xf32, #tpu.memory_space<vmem>>, vector<128x128xf32>
    %cst_31 = arith.constant dense<0.000000e+00> : vector<8x128xf32>
    %61 = tpu.matmul %59, %60, %cst_31 {dimension_numbers = #tpu.dot_dimension_numbers<[1], [0], [0], [1], [0, 0, 1, 1], [], []>} : vector<8x128xf32>, vector<128x128xf32>, vector<8x128xf32> -> vector<8x128xf32>
    %62 = vector.extract_strided_slice %2 {offsets = [3, 0], sizes = [1, 128], strides = [1, 1]} : vector<7x128xf32> to vector<1x128xf32>
    %63 = vector.broadcast %62 : vector<1x128xf32> to vector<8x128xf32>
    %64 = arith.addf %61, %63 : vector<8x128xf32>
    %c384 = arith.constant 384 : index
    %c0_32 = arith.constant 0 : index
    %65 = vector.load %arg5[%c384, %c0_32] : memref<768x128xf32, #tpu.memory_space<vmem>>, vector<128x128xf32>
    %cst_33 = arith.constant dense<0.000000e+00> : vector<8x128xf32>
    %66 = tpu.matmul %64, %65, %cst_33 {dimension_numbers = #tpu.dot_dimension_numbers<[1], [0], [0], [1], [0, 0, 1, 1], [], []>} : vector<8x128xf32>, vector<128x128xf32>, vector<8x128xf32> -> vector<8x128xf32>
    %67 = vector.extract_strided_slice %2 {offsets = [4, 0], sizes = [1, 128], strides = [1, 1]} : vector<7x128xf32> to vector<1x128xf32>
    %68 = vector.broadcast %67 : vector<1x128xf32> to vector<8x128xf32>
    %69 = arith.addf %66, %68 : vector<8x128xf32>
    %cst_34 = arith.constant 5.000000e-01 : f32
    %70 = vector.broadcast %cst_34 : f32 to vector<8x128xf32>
    %71 = arith.mulf %70, %69 : vector<8x128xf32>
    %cst_35 = arith.constant 0.707106769 : f32
    %72 = vector.broadcast %cst_35 : f32 to vector<8x128xf32>
    %73 = arith.mulf %69, %72 : vector<8x128xf32>
    %74 = math.erf %73 : vector<8x128xf32>
    %cst_36 = arith.constant 1.000000e+00 : f32
    %75 = vector.broadcast %cst_36 : f32 to vector<8x128xf32>
    %76 = arith.addf %75, %74 : vector<8x128xf32>
    %77 = arith.mulf %71, %76 : vector<8x128xf32>
    %c512 = arith.constant 512 : index
    %c0_37 = arith.constant 0 : index
    %78 = vector.load %arg5[%c512, %c0_37] : memref<768x128xf32, #tpu.memory_space<vmem>>, vector<128x128xf32>
    %cst_38 = arith.constant dense<0.000000e+00> : vector<8x128xf32>
    %79 = tpu.matmul %77, %78, %cst_38 {dimension_numbers = #tpu.dot_dimension_numbers<[1], [0], [0], [1], [0, 0, 1, 1], [], []>} : vector<8x128xf32>, vector<128x128xf32>, vector<8x128xf32> -> vector<8x128xf32>
    %80 = vector.extract_strided_slice %2 {offsets = [5, 0], sizes = [1, 128], strides = [1, 1]} : vector<7x128xf32> to vector<1x128xf32>
    %81 = vector.broadcast %80 : vector<1x128xf32> to vector<8x128xf32>
    %82 = arith.addf %79, %81 : vector<8x128xf32>
    %cst_39 = arith.constant 5.000000e-01 : f32
    %83 = vector.broadcast %cst_39 : f32 to vector<8x128xf32>
    %84 = arith.mulf %83, %82 : vector<8x128xf32>
    %cst_40 = arith.constant 0.707106769 : f32
    %85 = vector.broadcast %cst_40 : f32 to vector<8x128xf32>
    %86 = arith.mulf %82, %85 : vector<8x128xf32>
    %87 = math.erf %86 : vector<8x128xf32>
    %cst_41 = arith.constant 1.000000e+00 : f32
    %88 = vector.broadcast %cst_41 : f32 to vector<8x128xf32>
    %89 = arith.addf %88, %87 : vector<8x128xf32>
    %90 = arith.mulf %84, %89 : vector<8x128xf32>
    %c640 = arith.constant 640 : index
    %c0_42 = arith.constant 0 : index
    %91 = vector.load %arg5[%c640, %c0_42] : memref<768x128xf32, #tpu.memory_space<vmem>>, vector<128x128xf32>
    %cst_43 = arith.constant dense<0.000000e+00> : vector<8x128xf32>
    %92 = tpu.matmul %90, %91, %cst_43 {dimension_numbers = #tpu.dot_dimension_numbers<[1], [0], [0], [1], [0, 0, 1, 1], [], []>} : vector<8x128xf32>, vector<128x128xf32>, vector<8x128xf32> -> vector<8x128xf32>
    %93 = vector.extract_strided_slice %2 {offsets = [6, 0], sizes = [1, 128], strides = [1, 1]} : vector<7x128xf32> to vector<1x128xf32>
    %94 = vector.broadcast %93 : vector<1x128xf32> to vector<8x128xf32>
    %95 = arith.addf %92, %94 : vector<8x128xf32>
    %c0_44 = arith.constant 0 : index
    %c0_45 = arith.constant 0 : index
    %96 = vector.load %arg7[%c0_44, %c0_45] : memref<8x128xf32, #tpu.memory_space<vmem>>, vector<8x128xf32>
    tpu.vector_store %arg7[%c0_44, %c0_45], %95 {strides = array<i32>} : memref<8x128xf32, #tpu.memory_space<vmem>>, vector<8x128xf32>,
    return
  }
  func.func @transform_0(%arg0: i32) -> (i32, i32) {
    %c0_i32 = arith.constant 0 : i32
    %c0_i32_0 = arith.constant 0 : i32
    return %arg0, %c0_i32 : i32, i32
  }
  func.func @transform_1(%arg0: i32) -> (i32, i32) {
    %c0_i32 = arith.constant 0 : i32
    %c0_i32_0 = arith.constant 0 : i32
    %c0_i32_1 = arith.constant 0 : i32
    return %c0_i32, %c0_i32_0 : i32, i32
  }
  func.func @transform_2(%arg0: i32) -> (i32, i32) {
    %c0_i32 = arith.constant 0 : i32
    %c0_i32_0 = arith.constant 0 : i32
    %c0_i32_1 = arith.constant 0 : i32
    return %c0_i32, %c0_i32_0 : i32, i32
  }
  func.func @transform_3(%arg0: i32) -> (i32, i32) {
    %c0_i32 = arith.constant 0 : i32
    %c0_i32_0 = arith.constant 0 : i32
    %c0_i32_1 = arith.constant 0 : i32
    return %c0_i32, %c0_i32_0 : i32, i32
  }
  func.func @transform_4(%arg0: i32) -> (i32, i32) {
    %c0_i32 = arith.constant 0 : i32
    %c0_i32_0 = arith.constant 0 : i32
    %c0_i32_1 = arith.constant 0 : i32
    return %c0_i32, %c0_i32_0 : i32, i32
  }
  func.func @transform_5(%arg0: i32) -> (i32, i32) {
    %c0_i32 = arith.constant 0 : i32
    %c0_i32_0 = arith.constant 0 : i32
    %c0_i32_1 = arith.constant 0 : i32
    return %c0_i32, %c0_i32_0 : i32, i32
  }
  func.func @transform_6(%arg0: i32) -> (i32, i32) {
    %c0_i32 = arith.constant 0 : i32
    %c0_i32_0 = arith.constant 0 : i32
    return %arg0, %c0_i32 : i32, i32
  }
}

</mosaic_0001>

<bundles_post_ra>
// kernel: tpu_custom_call.1
= control target key start
LH: loop header
LB: loop body
LE: loop exit
PB: predicated region body
PF: predicated region fallthrough
CT: control target
= control target key end

     0   :  { %11 = vsyncpa [#allocation3], 0  ;;  %s7453_s0 = inlined_call_operand.hbm [shape: f32[16,256], index: 0, kind: input, shape index: {}]   ;;  %s7454_s1 = inlined_call_operand.hbm [shape: f32[1280,1024], index: 1, kind: input, shape index: {}]   ;;  %s7455_s2 = inlined_call_operand.hbm [shape: f32[2,1024], index: 2, kind: input, shape index: {}]   ;;  %s7456_s3 = inlined_call_operand.hbm [shape: f32[1024,128], index: 3, kind: input, shape index: {}]   ;;  %s7457_s4 = inlined_call_operand.hbm [shape: f32[768,128], index: 4, kind: input, shape index: {}]   ;;  %s7458_s5 = inlined_call_operand.hbm [shape: f32[7,128], index: 5, kind: input, shape index: {}]   ;;  %s7459_s6 = inlined_call_operand.hbm [shape: f32[16,128], index: 6, kind: output, shape index: {}]  }
   0x1   :  { %13 = vsyncpa [#allocation3 + $0x1], 0 }
   0x2   :  { %14 = vsyncpa [#allocation6], 0 }
   0x3   :  { %15 = vsyncpa [#allocation9], 0 }
   0x4   :  { %16 = vsyncpa [#allocation12], 0 }
   0x5   :  { %17 = vsyncpa [#allocation4], 0 }
   0x6   :  { %19 = vsyncpa [#allocation4 + $0x1], 0  ;;  %s6879_s21 = smov 0   ;;  %s6881_s22 = smov 0  }
   0x7   :  { %s6883_s23 = smov 0   ;;  %s6885_s24 = smov 0  }
   0x8 LB: > { %s6830_s25 = smov [#allocation5]   ;;  %s6900_s27 = sadd.s32 4294967295, %s6828_s24   ;;  %s6828_s24 = sphi %s6885_s24, %s7484_s24   ;;  %s6824_s23 = sphi %s6883_s23, %s7483_s23   ;;  %s6820_s22 = sphi %s6881_s22, %s7482_s22   ;;  %s6816_s21 = sphi %s6879_s21, %s7481_s21  }
   0x9   : > { %s199_s26 = sshll.u32 %s6830_s25, 4  ;;  %p4374_p0 = scmp.ge.s32.totalorder %s6828_s24, 1  ;;  %s6905_s26 = int_to_ptr.vmem [resolvable:$true] %s199_s26 }
   0xa   : > { %p7460_p1 = scmp.eq.s32.totalorder %s6900_s27, 0  ;;  %p187_p2 = scmp.lt.s32.totalorder %s6828_s24, 3 }
   0xb   : > { %s6831_s29 = smov [#allocation8]   ;;  %s6832_s8 = smov [#allocation7]  }
   0xc   : > { %p6907_p3 = pnand %p4374_p0, %p187_p2  ;;  %s223_s30 = sshll.u32 %s6831_s29, 4  ;;  %s6920_s30 = int_to_ptr.vmem [resolvable:$true] %s223_s30 }
   0xd   : > { %s6922_s9 = sshll.u32 %s6832_s8, 4  ;;  %s6580_s12 = scalar_lea.hbm %s7454_s1, 163840  ;;  %s214_s9 = int_to_ptr.vmem [resolvable:$true] %s6922_s9 }
   0xe   : > { %s7463_s28 = scalar_select %p6907_p3, 1, 0 }
   0xf   : > { %p6457_p5 = pneg %p6907_p3  ;;  %p6581_p7 = scmp.ne.s32.totalorder %s7454_s1, %s6580_s12 }
  0x10   : > { %p6587_p11 = scmp.lt.u32.totalorder %s6580_s12, %s7454_s1 }
  0x11   : > { %p6916_p6 = pnand %p6457_p5, %p7460_p1 }
  0x13   : > { %p6932_p8 = pneg %p6916_p6 }
  0x15   : > { %p6583_p9 = pnand %p6932_p8, %p6581_p7 }
  0x17   : > { %p6584_p10 = pneg %p6583_p9 }
  0x19   : > { %p6589_p12 = pnand %p6587_p11, %p6584_p10 }
  0x1b   : > { %6592 = shalt.err (!%p6589_p12)
}
  0x1c   : > { %s6593_s18 = scalar_lea.vmem %s6905_s26, 163840  ;;  %p6601_p5 = scmp.lt.s32.totalorder %s6905_s26, %s6905_s26 }
  0x1d   : > { %p6594_p13 = scmp.ne.s32.totalorder %s6905_s26, %s6593_s18  ;;  %p6602_p4 = scmp.lt.s32.totalorder %s6593_s18, %s6593_s18 }
  0x1f   : > { %p6596_p0 = pnand %p6594_p13, %p6932_p8  ;;  %p6603_p7 = por %p6602_p4, %p6601_p5 }
  0x21   : > { %p6597_p2 = pneg %p6596_p0 }
  0x23   : > { %p6604_p9 = pnand %p6603_p7, %p6597_p2 }
  0x25   : > { %6607 = shalt.err (!%p6604_p9)
}
  0x26   : > { %s6833_s19 = smov 1024   ;;  %s6834_s20 = smov 64  }
  0x27   : > { %6460 = dma.hbm_to_vmem [thread:$0]  (!%p6916_p6), %s7454_s1, 163840, %s6905_s26, [#allocation6], %s6833_s19, %s6833_s19, %s6834_s20  }
  0x28   : > { %s6608_s11 = scalar_lea.hbm %s7456_s3, 16384 }
  0x29   : > { %p6609_p4 = scmp.ne.s32.totalorder %s7456_s3, %s6608_s11  ;;  %p6615_p12 = scmp.lt.u32.totalorder %s6608_s11, %s7456_s3 }
  0x2b   : > { %p6611_p10 = pnand %p6609_p4, %p6932_p8 }
  0x2d   : > { %p6612_p11 = pneg %p6611_p10 }
  0x2f   : > { %p6617_p13 = pnand %p6615_p12, %p6612_p11 }
  0x31   : > { %6620 = shalt.err (!%p6617_p13)
}
  0x32   : > { %s6621_s26 = scalar_lea.vmem %s6920_s30, 16384  ;;  %p6629_p7 = scmp.lt.s32.totalorder %s6920_s30, %s6920_s30 }
  0x33   : > { %p6622_p0 = scmp.ne.s32.totalorder %s6920_s30, %s6621_s26  ;;  %p6630_p9 = scmp.lt.s32.totalorder %s6621_s26, %s6621_s26 }
  0x35   : > { %p6624_p2 = pnand %p6622_p0, %p6932_p8  ;;  %p6631_p4 = por %p6630_p9, %p6629_p7 }
  0x37   : > { %p6625_p5 = pneg %p6624_p2 }
  0x39   : > { %p6632_p10 = pnand %p6631_p4, %p6625_p5 }
  0x3b   : > { %6635 = shalt.err (!%p6632_p10)
}
  0x3c   : > { %s6835_s17 = smov 128   ;;  %s6836_s18 = smov 8  }
  0x3d   : > { %6466 = dma.hbm_to_vmem [thread:$0]  (!%p6916_p6), %s7456_s3, 16384, %s6920_s30, [#allocation9], %s6835_s17, %s6835_s17, %s6836_s18  }
  0x3e   : > { %s6636_s8 = scalar_lea.hbm %s7455_s2, 256 }
  0x3f   : > { %p6637_p11 = scmp.ne.s32.totalorder %s7455_s2, %s6636_s8  ;;  %p6643_p0 = scmp.lt.u32.totalorder %s6636_s8, %s7455_s2 }
  0x41   : > { %p6639_p12 = pnand %p6637_p11, %p6932_p8 }
  0x43   : > { %p6640_p13 = pneg %p6639_p12 }
  0x45   : > { %p6645_p2 = pnand %p6643_p0, %p6640_p13 }
  0x47   : > { %6648 = shalt.err (!%p6645_p2)
}
  0x48   : > { %s6649_s14 = scalar_lea.vmem %s214_s9, 256  ;;  %p6657_p4 = scmp.lt.s32.totalorder %s214_s9, %s214_s9 }
  0x49   : > { %p6650_p5 = scmp.ne.s32.totalorder %s214_s9, %s6649_s14  ;;  %p6658_p10 = scmp.lt.s32.totalorder %s6649_s14, %s6649_s14 }
  0x4b   : > { %p6652_p7 = pnand %p6650_p5, %p6932_p8  ;;  %p6659_p1 = por %p6658_p10, %p6657_p4 }
  0x4d   : > { %p6653_p9 = pneg %p6652_p7 }
  0x4f   : > { %p6660_p3 = pnand %p6659_p1, %p6653_p9 }
  0x51   : > { %6663 = shalt.err (!%p6660_p3)
}
  0x52   : > { %6463 = dma.hbm_to_vmem [thread:$0]  (!%p6916_p6), %s7455_s2, 256, %s214_s9, [#allocation6]  }
  0x53   : > { %s6837_s26 = smov [#allocation10]   ;;  %s6838_s20 = smov [#allocation11]  }
  0x54   : > { %s236_s19 = sshll.u32 %s6837_s26, 4  ;;  %s250_s25 = sshll.u32 %s6838_s20, 4  ;;  %s237_s19 = int_to_ptr.vmem [resolvable:$true] %s236_s19  ;;  %s251_s25 = int_to_ptr.vmem [resolvable:$true] %s250_s25 }
  0x55   : > { %s6664_s10 = scalar_lea.hbm %s7457_s4, 12288 }
  0x56   : > { %p6665_p1 = scmp.ne.s32.totalorder %s7457_s4, %s6664_s10  ;;  %p6671_p12 = scmp.lt.u32.totalorder %s6664_s10, %s7457_s4 }
  0x58   : > { %p6667_p3 = pnand %p6665_p1, %p6932_p8 }
  0x5a   : > { %p6668_p11 = pneg %p6667_p3 }
  0x5c   : > { %p6673_p13 = pnand %p6671_p12, %p6668_p11 }
  0x5e   : > { %6676 = shalt.err (!%p6673_p13)
}
  0x5f   : > { %s6677_s9 = scalar_lea.vmem %s237_s19, 12288  ;;  %p6685_p7 = scmp.lt.s32.totalorder %s237_s19, %s237_s19 }
  0x60   : > { %p6678_p0 = scmp.ne.s32.totalorder %s237_s19, %s6677_s9  ;;  %p6686_p9 = scmp.lt.s32.totalorder %s6677_s9, %s6677_s9 }
  0x62   : > { %p6680_p2 = pnand %p6678_p0, %p6932_p8  ;;  %p6687_p4 = por %p6686_p9, %p6685_p7 }
  0x64   : > { %p6681_p5 = pneg %p6680_p2 }
  0x66   : > { %p6688_p10 = pnand %p6687_p4, %p6681_p5 }
  0x68   : > { %6691 = shalt.err (!%p6688_p10)
}
  0x69   : > { %6469 = dma.hbm_to_vmem [thread:$0]  (!%p6916_p6), %s7457_s4, 12288, %s237_s19, [#allocation9], %s6835_s17, %s6835_s17, %s6836_s18  }
  0x6a   : > { %s6692_s29 = scalar_lea.hbm %s7458_s5, 128 }
  0x6b   : > { %p6693_p1 = scmp.ne.s32.totalorder %s7458_s5, %s6692_s29  ;;  %p6699_p12 = scmp.lt.u32.totalorder %s6692_s29, %s7458_s5 }
  0x6d   : > { %p6695_p3 = pnand %p6693_p1, %p6932_p8 }
  0x6f   : > { %p6696_p11 = pneg %p6695_p3 }
  0x71   : > { %p6701_p13 = pnand %p6699_p12, %p6696_p11 }
  0x73   : > { %6704 = shalt.err (!%p6701_p13)
}
  0x74   : > { %s6705_s13 = scalar_lea.vmem %s251_s25, 128  ;;  %p6713_p7 = scmp.lt.s32.totalorder %s251_s25, %s251_s25 }
  0x75   : > { %p6706_p0 = scmp.ne.s32.totalorder %s251_s25, %s6705_s13  ;;  %p6714_p9 = scmp.lt.s32.totalorder %s6705_s13, %s6705_s13 }
  0x77   : > { %p6708_p2 = pnand %p6706_p0, %p6932_p8  ;;  %p6715_p4 = por %p6714_p9, %p6713_p7 }
  0x79   : > { %p6709_p5 = pneg %p6708_p2 }
  0x7b   : > { %p6716_p10 = pnand %p6715_p4, %p6709_p5 }
  0x7d   : > { %6719 = shalt.err (!%p6716_p10)
}
  0x7e   : > { %6472 = dma.hbm_to_vmem [thread:$0]  (!%p6916_p6), %s7458_s5, 128, %s251_s25, [#allocation12]  }
  0x7f   : > { %s4373_s15 = sadd.s32 4294967294, %s6828_s24   ;;  %s7039_s7 = sadd.s32 1, %s6828_s24  }
  0x80   : > { %s32_s19 = sadd.s32 1, %s6824_s23  ;;  %s29_s14 = ssub.s32 %s6828_s24, %s7039_s7 }
  0x81   : > { %p39_p8 = scmp.ne.s32.totalorder %s6824_s23, %s6820_s22  ;;  %p30_p1 = scmp.eq.s32.totalorder %s29_s14, 0 }
  0x82   : > { %p40_p3 = scmp.eq.s32.totalorder %s6828_s24, 0  ;;  %p45_p11 = scmp.ne.s32.totalorder %s6820_s22, %s6816_s21 }
  0x83   : > { %p174_p12 = scmp.eq.s32.totalorder %s6900_s27, 1  ;;  %p7466_p0 = scmp.eq.s32.totalorder %s6900_s27, 0 }
  0x84   : > { %s7051_s9 = scalar_select %p30_p1, %s6824_s23, %s32_s19  }
  0x85   : > { %p41_p13 = por %p40_p3, %p39_p8  ;;  %p7055_p2 = por %p7466_p0, %p45_p11 }
  0x86   : > { %p7059_p6 = por %p174_p12, %p39_p8  ;;  %p180_p5 = scmp.eq.s32.totalorder %s4373_s15, 1 }
  0x87   : > { %p6486_p7 = scmp.lt.s32.totalorder %s6828_s24, 2  ;;  %s261_s16 = sand.u32 1, %s6824_s23  }
  0x88   : > { %s7468_s25 = scalar_select %p7059_p6, 1, 0 }
  0x89   : > { %p7065_p9 = por %p180_p5, %p45_p11  ;;  %s4381_s20 = sshll.u32 %s261_s16, 4 }
  0x8a   : > { %s4396_s29 = sshll.u32 %s6828_s24, 8  ;;  %s265_s12 = scalar_lea.vmem [#allocation2], %s4381_s20 }
  0x8b   : > { %s7469_s26 = scalar_select %p7065_p9, 1, 0 }
  0x8c   : > { %s7073_s11 = scalar_lea.hbm %s7453_s0, %s4396_s29  ;;  %s273_s13 = sshll.u32 %s265_s12, 4  ;;  %s7079_s13 = int_to_ptr.vmem [resolvable:$true] %s273_s13 }
  0x8d   : > { %p7075_p4 = pnand %p6486_p7, %p41_p13  ;;  %s262_s18 = scalar_lea.sflag [#allocation3], %s261_s16 }
  0x8e   : > { %s6720_s15 = scalar_lea.hbm %s7073_s11, 256  ;;  %s6725_s20 = scalar_lea.hbm %s7453_s0, 512 }
  0x8f   : > { %p6721_p10 = scmp.ne.s32.totalorder %s7073_s11, %s6720_s15  ;;  %p6722_p8 = pneg %p7075_p4 }
  0x90   : > { %p6726_p11 = scmp.lt.u32.totalorder %s7073_s11, %s7453_s0  ;;  %p6727_p12 = scmp.lt.u32.totalorder %s6725_s20, %s6720_s15 }
  0x91   : > { %p6723_p1 = pnand %p6722_p8, %p6721_p10  ;;  %p6729_p0 = scmp.lt.u32.totalorder %s6720_s15, %s7073_s11 }
  0x92   : > { %p6728_p13 = por %p6727_p12, %p6726_p11 }
  0x93   : > { %p6724_p3 = pneg %p6723_p1 }
  0x94   : > { %p6730_p5 = por %p6729_p0, %p6728_p13 }
  0x96   : > { %p6731_p7 = pnand %p6730_p5, %p6724_p3 }
  0x98   : > { %6734 = shalt.err (!%p6731_p7)
}
  0x99   : > { %s6735_s16 = scalar_lea.vmem %s7079_s13, 256  ;;  %s6839_s10 = smov [#allocation2]  }
  0x9a   : > { %p6736_p10 = scmp.ne.s32.totalorder %s7079_s13, %s6735_s16  ;;  %s6740_s12 = sshll.u32 %s6839_s10, 4  ;;  %s6741_s12 = int_to_ptr.vmem [resolvable:$false] %s6740_s12 }
  0x9b   : > { %s6742_s19 = scalar_lea.vmem %s6741_s12, 512  ;;  %p6743_p6 = scmp.lt.s32.totalorder %s7079_s13, %s6741_s12 }
  0x9c   : > { %p6738_p1 = pnand %p6736_p10, %p6722_p8  ;;  %p6744_p11 = scmp.lt.s32.totalorder %s6742_s19, %s6735_s16 }
  0x9e   : > { %p6739_p9 = pneg %p6738_p1  ;;  %p6745_p12 = por %p6744_p11, %p6743_p6 }
  0xa0   : > { %p6746_p13 = pnand %p6745_p12, %p6739_p9 }
  0xa2   : > { %6749 = shalt.err (!%p6746_p13)
}
  0xa3   : > { %6476 = dma.hbm_to_vmem [thread:$0]  (!%p7075_p4), %s7073_s11, 256, %s7079_s13, %s262_s18  }
  0xa4   : > { %p7471_p3 = scmp.ne.s32.totalorder %s7463_s28, 0 }
  0xa5   : > { %s7109_s15 = sand.u32 (!%p7471_p3), 1, %s6820_s22  }
  0xa6   : > { %282 = sbr.rel (%p7471_p3) target bundleno = 2751 (0xabf), region = 44  ;;  %s4385_s14 = sshll.u32 (!%p7471_p3), %s7109_s15, 4 }
  0xa7   : > { %s285_s20 = scalar_lea.sflag (!%p7471_p3), [#allocation3], %s7109_s15  ;;  %s7113_s29 = scalar_lea.vmem (!%p7471_p3), [#allocation2], %s4385_s14 }
  0xad   : > { %6795 = dma.done.wait (%p7055_p2), %s285_s20, 256  }
  0xae   : > { %6797 = vsyncadd (%p7055_p2), %s285_s20, 4294967040  ;;  %p7472_p6 = scmp.eq.s32.totalorder %s6900_s27, 0 }
  0xb0   : > { %6799 = dma.done.wait (%p7472_p6), [#allocation6], 164096   ;;  %p7473_p9 = pmov %p7472_p6 }
  0xb1   : > { %p7474_p4 = pmov %p7472_p6 }
  0xb2   : > { %6801 = vsyncadd (%p7473_p9), [#allocation6], 4294803200 }
  0xb3   : > { %6803 = dma.done.wait (%p7474_p4), [#allocation9], 28672   ;;  %p7475_p8 = pmov %p7474_p4 }
  0xb4   : > { %p7476_p0 = pmov %p7474_p4 }
  0xb5   : > { %6805 = vsyncadd (%p7475_p8), [#allocation9], 4294938624 }
  0xb6   : > { %6807 = dma.done.wait (%p7476_p0), [#allocation12], 128   ;;  %p7477_p5 = pmov %p7476_p0 }
  0xb7   : > { %v343_v0 = vld [vmem:[#allocation5 + $0x8] sm:$0xff]  ;;  %v342_v2 = vld [vmem:[#allocation5] sm:$0xff]  ;;  %v345_v36 = vld [vmem:[#allocation5 + $0x18] sm:$0xff]  ;;  %vm6841_vm0 = vmmov 0   ;;  %s4391_s28 = sshll.u32 %s7109_s15, 3  ;;  %s4393_s30 = sshll.u32 %s6900_s27, 7 }
  0xb8   : > { %6809 = vsyncadd (%p7477_p5), [#allocation12], 4294967168  ;;  %v351_v1 = vld [vmem:[#allocation5 + $0x48] sm:$0xff]  ;;  %v350_v4 = vld [vmem:[#allocation5 + $0x40] sm:$0xff]  ;;  %s336_s11 = scalar_lea.vmem [#allocation13], %s4391_s28  ;;  %s7409_s8 = scalar_lea.hbm %s7459_s6, %s4393_s30 }
  0xb9   : > { %v4849_v3 = vpack.c.bf16 %v351_v1, %v343_v0  ;;  %v359_v5 = vld [vmem:[#allocation5 + $0x88] sm:$0xff]  ;;  %v4851_v7 = vpack.c.bf16 %v350_v4, %v342_v2  ;;  %v358_v9 = vld [vmem:[#allocation5 + $0x80] sm:$0xff]  ;;  %v353_v37 = vld [vmem:[#allocation5 + $0x58] sm:$0xff]  ;;  %s4255_s13 = sshll.u32 %s336_s11, 4  ;;  %s4242_s16 = scalar_lea.sflag [#allocation4], %s7109_s15  ;;  %s7411_s13 = int_to_ptr.vmem [resolvable:$true] %s4255_s13 }
  0xba   : > { %v367_v6 = vld [vmem:[#allocation5 + $0xc8] sm:$0xff]  ;;  %v366_v10 = vld [vmem:[#allocation5 + $0xc0] sm:$0xff]  ;;  %v4913_v39 = vpack.c.bf16 %v353_v37, %v345_v36  ;;  %v344_v40 = vld [vmem:[#allocation5 + $0x10] sm:$0xff]  ;;  %s6750_s10 = scalar_lea.vmem %s7411_s13, 128  ;;  %p7478_p7 = scmp.ne.s32.totalorder %s7468_s25, 0 }
  0xbb   : > { %v4853_v8 = vpack.c.bf16 %v367_v6, %v359_v5  ;;  %v375_v11 = vld [vmem:[#allocation5 + $0x108] sm:$0xff]  ;;  %4850 = vmatprep.subr.bf16.mxu0 %v4849_v3  ;;  %v4855_v13 = vpack.c.bf16 %v366_v10, %v358_v9  ;;  %v374_v15 = vld [vmem:[#allocation5 + $0x100] sm:$0xff]  ;;  %v352_v41 = vld [vmem:[#allocation5 + $0x50] sm:$0xff]  ;;  %p6751_p2 = scmp.ne.s32.totalorder %s7411_s13, %s6750_s10  ;;  %s6843_s27 = smov [#allocation13]  }
  0xbc   : > { %v383_v12 = vld [vmem:[#allocation5 + $0x148] sm:$0xff]  ;;  %4852 = vmatpush1.bf16.msra.mxu0 %v4851_v7  ;;  %v382_v16 = vld [vmem:[#allocation5 + $0x140] sm:$0xff]  ;;  %v4915_v42 = vpack.c.bf16 %v352_v41, %v344_v40  ;;  %4914 = vmatprep.subr.bf16.mxu1 %v4913_v39  ;;  %v361_v44 = vld [vmem:[#allocation5 + $0x98] sm:$0xff]  ;;  %s6754_s12 = sshll.u32 %s6843_s27, 4  ;;  %s6755_s12 = int_to_ptr.vmem [resolvable:$false] %s6754_s12 }
  0xbd   : > { %4854 = vmatprep.subr.bf16.mxu0 %v4853_v8  ;;  %v4857_v14 = vpack.c.bf16 %v383_v12, %v375_v11  ;;  %v391_v17 = vld [vmem:[#allocation5 + $0x188] sm:$0xff]  ;;  %v4859_v19 = vpack.c.bf16 %v382_v16, %v374_v15  ;;  %v390_v21 = vld [vmem:[#allocation5 + $0x180] sm:$0xff]  ;;  %v369_v45 = vld [vmem:[#allocation5 + $0xd8] sm:$0xff]  ;;  %p6752_p10 = pnand %p6751_p2, %p7478_p7  ;;  %s6756_s19 = scalar_lea.vmem %s6755_s12, 256 }
  0xbe   : > { %v399_v18 = vld [vmem:[#allocation5 + $0x1c8] sm:$0xff]  ;;  %v398_v22 = vld [vmem:[#allocation5 + $0x1c0] sm:$0xff]  ;;  %v360_v46 = vld [vmem:[#allocation5 + $0x90] sm:$0xff]  ;;  %4916 = vmatpush1.bf16.msra.mxu1 %v4915_v42  ;;  %v4917_v50 = vpack.c.bf16 %v369_v45, %v361_v44  ;;  %p6757_p11 = scmp.lt.s32.totalorder %s7411_s13, %s6755_s12  ;;  %p6758_p12 = scmp.lt.s32.totalorder %s6756_s19, %s6750_s10 }
  0xbf   : > { %v4861_v20 = vpack.c.bf16 %v399_v18, %v391_v17  ;;  %v407_v23 = vld [vmem:[#allocation5 + $0x208] sm:$0xff]  ;;  %v4863_v25 = vpack.c.bf16 %v398_v22, %v390_v21  ;;  %v406_v27 = vld [vmem:[#allocation5 + $0x200] sm:$0xff]  ;;  %v368_v51 = vld [vmem:[#allocation5 + $0xd0] sm:$0xff]  ;;  %p6753_p1 = pneg %p6752_p10 }
  0xc0   : > { %4856 = vmatpush1.bf16.msra.mxu0 %v4855_v13  ;;  %v415_v24 = vld [vmem:[#allocation5 + $0x248] sm:$0xff]  ;;  %v414_v28 = vld [vmem:[#allocation5 + $0x240] sm:$0xff]  ;;  %v4919_v54 = vpack.c.bf16 %v368_v51, %v360_v46  ;;  %v377_v55 = vld [vmem:[#allocation5 + $0x118] sm:$0xff]  ;;  %4918 = vmatprep.subr.bf16.mxu1 %v4917_v50  ;;  %p6759_p13 = por %p6758_p12, %p6757_p11 }
  0xc1   : > { %4858 = vmatprep.subr.bf16.mxu0 %v4857_v14  ;;  %v4865_v26 = vpack.c.bf16 %v415_v24, %v407_v23  ;;  %v423_v29 = vld [vmem:[#allocation5 + $0x288] sm:$0xff]  ;;  %v4867_v31 = vpack.c.bf16 %v414_v28, %v406_v27  ;;  %v422_v32 = vld [vmem:[#allocation5 + $0x280] sm:$0xff]  ;;  %v385_v56 = vld [vmem:[#allocation5 + $0x158] sm:$0xff] }
  0xc2   : > { %v431_v30 = vld [vmem:[#allocation5 + $0x2c8] sm:$0xff]  ;;  %v430_v33 = vld [vmem:[#allocation5 + $0x2c0] sm:$0xff]  ;;  %v376_v57 = vld [vmem:[#allocation5 + $0x110] sm:$0xff]  ;;  %v4921_v63 = vpack.c.bf16 %v385_v56, %v377_v55  ;;  %4920 = vmatpush1.bf16.msra.mxu1 %v4919_v54  ;;  %p6760_p3 = pnand %p6759_p13, %p6753_p1 }
  0xc3   : > { %v4869_v34 = vpack.c.bf16 %v431_v30, %v423_v29  ;;  %v439_v35 = vld [vmem:[#allocation5 + $0x308] sm:$0xff]  ;;  %v4871_v43 = vpack.c.bf16 %v430_v33, %v422_v32  ;;  %v438_v48 = vld [vmem:[#allocation5 + $0x300] sm:$0xff]  ;;  %v384_v58 = vld [vmem:[#allocation5 + $0x150] sm:$0xff] }
  0xc4   : > { %4860 = vmatpush1.bf16.msra.mxu0 %v4859_v19  ;;  %v447_v38 = vld [vmem:[#allocation5 + $0x348] sm:$0xff]  ;;  %v446_v49 = vld [vmem:[#allocation5 + $0x340] sm:$0xff]  ;;  %v4923_v2 = vpack.c.bf16 %v384_v58, %v376_v57  ;;  %v393_v3 = vld [vmem:[#allocation5 + $0x198] sm:$0xff]  ;;  %4922 = vmatprep.subr.bf16.mxu1 %v4921_v63 }
  0xc5   : > { %4862 = vmatprep.subr.bf16.mxu0 %v4861_v20  ;;  %v4873_v47 = vpack.c.bf16 %v447_v38, %v439_v35  ;;  %v455_v52 = vld [vmem:[#allocation5 + $0x388] sm:$0xff]  ;;  %v4875_v59 = vpack.c.bf16 %v446_v49, %v438_v48  ;;  %v454_v60 = vld [vmem:[#allocation5 + $0x380] sm:$0xff]  ;;  %v401_v4 = vld [vmem:[#allocation5 + $0x1d8] sm:$0xff] }
  0xc6   : > { %v463_v53 = vld [vmem:[#allocation5 + $0x3c8] sm:$0xff]  ;;  %v462_v61 = vld [vmem:[#allocation5 + $0x3c0] sm:$0xff]  ;;  %v4925_v5 = vpack.c.bf16 %v401_v4, %v393_v3  ;;  %v392_v7 = vld [vmem:[#allocation5 + $0x190] sm:$0xff]  ;;  %4924 = vmatpush1.bf16.msra.mxu1 %v4923_v2 }
  0xc7   : > { %v471_v62 = vld [vmem:[#allocation5 + $0x408] sm:$0xff]  ;;  %v4877_v0 = vpack.c.bf16 %v463_v53, %v455_v52  ;;  %v400_v8 = vld [vmem:[#allocation5 + $0x1d0] sm:$0xff]  ;;  %v409_v9 = vld [vmem:[#allocation5 + $0x218] sm:$0xff]  ;;  %v4879_v11 = vpack.c.bf16 %v462_v61, %v454_v60 }
  0xc8   : > { %4864 = vmatpush1.bf16.msra.mxu0 %v4863_v25  ;;  %v479_v1 = vld [vmem:[#allocation5 + $0x448] sm:$0xff]  ;;  %v417_v10 = vld [vmem:[#allocation5 + $0x258] sm:$0xff]  ;;  %v470_v13 = vld [vmem:[#allocation5 + $0x400] sm:$0xff]  ;;  %v4927_v16 = vpack.c.bf16 %v400_v8, %v392_v7  ;;  %4926 = vmatprep.subr.bf16.mxu1 %v4925_v5 }
  0xc9   : > { %4866 = vmatprep.subr.bf16.mxu0 %v4865_v26  ;;  %v7132_v6 = vld [vmem:[%s7113_s29 + $0x8] sm:$0xff]  ;;  %v4881_v12 = vpack.c.bf16 %v479_v1, %v471_v62  ;;  %v478_v14 = vld [vmem:[#allocation5 + $0x440] sm:$0xff]  ;;  %v4929_v18 = vpack.c.bf16 %v417_v10, %v409_v9  ;;  %v408_v19 = vld [vmem:[#allocation5 + $0x210] sm:$0xff] }
  0xca   : > { %736 = vmatprep.mubr.f32.mxu0 %v7132_v6  ;;  %807 = vmatprep.mubr.f32.mxu1 %v7132_v6  ;;  %v487_v15 = vld [vmem:[#allocation5 + $0x488] sm:$0xff]  ;;  %v416_v20 = vld [vmem:[#allocation5 + $0x250] sm:$0xff]  ;;  %v425_v21 = vld [vmem:[#allocation5 + $0x298] sm:$0xff]  ;;  %v4883_v23 = vpack.c.bf16 %v478_v14, %v470_v13 }
  0xcb   : > { %v495_v17 = vld [vmem:[#allocation5 + $0x4c8] sm:$0xff]  ;;  %v433_v22 = vld [vmem:[#allocation5 + $0x2d8] sm:$0xff]  ;;  %v486_v25 = vld [vmem:[#allocation5 + $0x480] sm:$0xff]  ;;  %4928 = vmatpush1.bf16.msra.mxu1 %v4927_v16  ;;  %v4931_v28 = vpack.c.bf16 %v416_v20, %v408_v19 }
  0xcc   : > { %4868 = vmatpush1.bf16.msra.mxu0 %v4867_v31  ;;  %v4885_v24 = vpack.c.bf16 %v495_v17, %v487_v15  ;;  %v494_v26 = vld [vmem:[#allocation5 + $0x4c0] sm:$0xff]  ;;  %v503_v27 = vld [vmem:[#allocation5 + $0x508] sm:$0xff]  ;;  %4930 = vmatprep.subr.bf16.mxu1 %v4929_v18  ;;  %v4933_v30 = vpack.c.bf16 %v433_v22, %v425_v21  ;;  %v424_v31 = vld [vmem:[#allocation5 + $0x290] sm:$0xff] }
  0xcd   : > { %4870 = vmatprep.subr.bf16.mxu0 %v4869_v34  ;;  %v511_v29 = vld [vmem:[#allocation5 + $0x548] sm:$0xff]  ;;  %v432_v32 = vld [vmem:[#allocation5 + $0x2d0] sm:$0xff]  ;;  %v441_v33 = vld [vmem:[#allocation5 + $0x318] sm:$0xff]  ;;  %v4887_v35 = vpack.c.bf16 %v494_v26, %v486_v25 }
  0xce   : > { %v449_v34 = vld [vmem:[#allocation5 + $0x358] sm:$0xff]  ;;  %v4889_v36 = vpack.c.bf16 %v511_v29, %v503_v27  ;;  %v502_v37 = vld [vmem:[#allocation5 + $0x500] sm:$0xff]  ;;  %v519_v39 = vld [vmem:[#allocation5 + $0x588] sm:$0xff]  ;;  %v4935_v40 = vpack.c.bf16 %v432_v32, %v424_v31 }
  0xcf   : > { %v510_v38 = vld [vmem:[#allocation5 + $0x540] sm:$0xff]  ;;  %4932 = vmatpush1.bf16.msra.mxu1 %v4931_v28  ;;  %v527_v41 = vld [vmem:[#allocation5 + $0x5c8] sm:$0xff]  ;;  %v4937_v42 = vpack.c.bf16 %v449_v34, %v441_v33  ;;  %v448_v44 = vld [vmem:[#allocation5 + $0x350] sm:$0xff] }
  0xd0   : > { %4872 = vmatpush1.bf16.msra.mxu0 %v4871_v43  ;;  %4934 = vmatprep.subr.bf16.mxu1 %v4933_v30  ;;  %v440_v43 = vld [vmem:[#allocation5 + $0x310] sm:$0xff]  ;;  %v457_v45 = vld [vmem:[#allocation5 + $0x398] sm:$0xff]  ;;  %v4893_v48 = vpack.c.bf16 %v527_v41, %v519_v39  ;;  %v518_v49 = vld [vmem:[#allocation5 + $0x580] sm:$0xff] }
  0xd1   : > { %4874 = vmatprep.subr.bf16.mxu0 %v4873_v47  ;;  %v465_v46 = vld [vmem:[#allocation5 + $0x3d8] sm:$0xff]  ;;  %v4891_v47 = vpack.c.bf16 %v510_v38, %v502_v37  ;;  %v526_v50 = vld [vmem:[#allocation5 + $0x5c0] sm:$0xff]  ;;  %v535_v51 = vld [vmem:[#allocation5 + $0x608] sm:$0xff]  ;;  %v4939_v52 = vpack.c.bf16 %v448_v44, %v440_v43 }
  0xd2   : > { %v543_v53 = vld [vmem:[#allocation5 + $0x648] sm:$0xff]  ;;  %v4941_v54 = vpack.c.bf16 %v465_v46, %v457_v45  ;;  %v456_v55 = vld [vmem:[#allocation5 + $0x390] sm:$0xff]  ;;  %v473_v57 = vld [vmem:[#allocation5 + $0x418] sm:$0xff] }
  0xd3   : > { %4936 = vmatpush1.bf16.msra.mxu1 %v4935_v40  ;;  %v464_v56 = vld [vmem:[#allocation5 + $0x3d0] sm:$0xff]  ;;  %v481_v58 = vld [vmem:[#allocation5 + $0x458] sm:$0xff]  ;;  %v4897_v60 = vpack.c.bf16 %v543_v53, %v535_v51  ;;  %v534_v61 = vld [vmem:[#allocation5 + $0x600] sm:$0xff] }
  0xd4   : > { %4876 = vmatpush1.bf16.msra.mxu0 %v4875_v59  ;;  %4938 = vmatprep.subr.bf16.mxu1 %v4937_v42  ;;  %v4895_v59 = vpack.c.bf16 %v526_v50, %v518_v49  ;;  %v542_v62 = vld [vmem:[#allocation5 + $0x640] sm:$0xff]  ;;  %v551_v63 = vld [vmem:[#allocation5 + $0x688] sm:$0xff]  ;;  %v4945_v2 = vpack.c.bf16 %v481_v58, %v473_v57  ;;  %v472_v3 = vld [vmem:[#allocation5 + $0x410] sm:$0xff] }
  0xd5   : > { %4878 = vmatprep.subr.bf16.mxu0 %v4877_v0  ;;  %v4943_v0 = vpack.c.bf16 %v464_v56, %v456_v55  ;;  %v559_v1 = vld [vmem:[#allocation5 + $0x6c8] sm:$0xff]  ;;  %v480_v4 = vld [vmem:[#allocation5 + $0x450] sm:$0xff]  ;;  %v489_v5 = vld [vmem:[#allocation5 + $0x498] sm:$0xff]  ;;  %v4899_v8 = vpack.c.bf16 %v542_v62, %v534_v61 }
  0xd6   : > { %v497_v7 = vld [vmem:[#allocation5 + $0x4d8] sm:$0xff]  ;;  %v4901_v9 = vpack.c.bf16 %v559_v1, %v551_v63  ;;  %v550_v10 = vld [vmem:[#allocation5 + $0x680] sm:$0xff]  ;;  %v4947_v13 = vpack.c.bf16 %v480_v4, %v472_v3  ;;  %v575_v14 = vld [vmem:[#allocation5 + $0x748] sm:$0xff] }
  0xd7   : > { %4940 = vmatpush1.bf16.msra.mxu1 %v4939_v52  ;;  %v4949_v15 = vpack.c.bf16 %v497_v7, %v489_v5  ;;  %v488_v16 = vld [vmem:[#allocation5 + $0x490] sm:$0xff]  ;;  %v505_v18 = vld [vmem:[#allocation5 + $0x518] sm:$0xff]  ;;  %v566_v22 = vld [vmem:[#allocation5 + $0x700] sm:$0xff] }
  0xd8   : > { %4880 = vmatpush1.bf16.msra.mxu0 %v4879_v11  ;;  %4942 = vmatprep.subr.bf16.mxu1 %v4941_v54  ;;  %v558_v11 = vld [vmem:[#allocation5 + $0x6c0] sm:$0xff]  ;;  %v496_v17 = vld [vmem:[#allocation5 + $0x4d0] sm:$0xff]  ;;  %v513_v19 = vld [vmem:[#allocation5 + $0x558] sm:$0xff] }
  0xd9   : > { %4882 = vmatprep.subr.bf16.mxu0 %v4881_v12  ;;  %v567_v12 = vld [vmem:[#allocation5 + $0x708] sm:$0xff]  ;;  %v4903_v20 = vpack.c.bf16 %v558_v11, %v550_v10  ;;  %v4951_v25 = vpack.c.bf16 %v496_v17, %v488_v16  ;;  %v4953_v27 = vpack.c.bf16 %v513_v19, %v505_v18  ;;  %v504_v28 = vld [vmem:[#allocation5 + $0x510] sm:$0xff]  ;;  %v521_v30 = vld [vmem:[#allocation5 + $0x598] sm:$0xff] }
  0xda   : > { %v4905_v21 = vpack.c.bf16 %v575_v14, %v567_v12  ;;  %v591_v26 = vld [vmem:[#allocation5 + $0x7c8] sm:$0xff]  ;;  %v512_v29 = vld [vmem:[#allocation5 + $0x550] sm:$0xff]  ;;  %v529_v31 = vld [vmem:[#allocation5 + $0x5d8] sm:$0xff] }
  0xdb   : > { %4944 = vmatpush1.bf16.msra.mxu1 %v4943_v0  ;;  %v582_v34 = vld [vmem:[#allocation5 + $0x780] sm:$0xff]  ;;  %v520_v37 = vld [vmem:[#allocation5 + $0x590] sm:$0xff]  ;;  %v4957_v38 = vpack.c.bf16 %v529_v31, %v521_v30  ;;  %v347_v40 = vld [vmem:[#allocation5 + $0x28] sm:$0xff] }
  0xdc   : > { %4884 = vmatpush1.bf16.msra.mxu0 %v4883_v23  ;;  %4946 = vmatprep.subr.bf16.mxu1 %v4945_v2  ;;  %v574_v23 = vld [vmem:[#allocation5 + $0x740] sm:$0xff]  ;;  %v528_v39 = vld [vmem:[#allocation5 + $0x5d0] sm:$0xff]  ;;  %v355_v41 = vld [vmem:[#allocation5 + $0x68] sm:$0xff] }
  0xdd   : > { %4886 = vmatprep.subr.bf16.mxu0 %v4885_v24  ;;  %v583_v24 = vld [vmem:[#allocation5 + $0x788] sm:$0xff]  ;;  %v4907_v32 = vpack.c.bf16 %v574_v23, %v566_v22  ;;  %v537_v42 = vld [vmem:[#allocation5 + $0x618] sm:$0xff]  ;;  %v4959_v45 = vpack.c.bf16 %v528_v39, %v520_v37  ;;  %v536_v46 = vld [vmem:[#allocation5 + $0x610] sm:$0xff] }
  0xde   : > { %v4909_v33 = vpack.c.bf16 %v591_v26, %v583_v24  ;;  %v545_v43 = vld [vmem:[#allocation5 + $0x658] sm:$0xff]  ;;  %v354_v49 = vld [vmem:[#allocation5 + $0x60] sm:$0xff]  ;;  %v544_v51 = vld [vmem:[#allocation5 + $0x650] sm:$0xff] }
  0xdf   : > { %4948 = vmatpush1.bf16.msra.mxu1 %v4947_v13  ;;  %v4961_v50 = vpack.c.bf16 %v545_v43, %v537_v42  ;;  %v363_v52 = vld [vmem:[#allocation5 + $0xa8] sm:$0xff]  ;;  %v553_v54 = vld [vmem:[#allocation5 + $0x698] sm:$0xff]  ;;  %v7137_v56 = vld [vmem:[%s7113_s29] sm:$0xff]  ;;  %v4963_v58 = vpack.c.bf16 %v544_v51, %v536_v46 }
  0xe0   : > { %4888 = vmatpush1.bf16.msra.mxu0 %v4887_v35  ;;  %4950 = vmatprep.subr.bf16.mxu1 %v4949_v15  ;;  %v590_v35 = vld [vmem:[#allocation5 + $0x7c0] sm:$0xff]  ;;  %v371_v53 = vld [vmem:[#allocation5 + $0xe8] sm:$0xff]  ;;  %v561_v55 = vld [vmem:[#allocation5 + $0x6d8] sm:$0xff] }
  0xe1   : > { %4890 = vmatprep.subr.bf16.mxu0 %v4889_v36  ;;  %v4955_v36 = vpack.c.bf16 %v512_v29, %v504_v28  ;;  %v4911_v44 = vpack.c.bf16 %v590_v35, %v582_v34  ;;  %v362_v61 = vld [vmem:[#allocation5 + $0xa0] sm:$0xff]  ;;  %v4965_v63 = vpack.c.bf16 %v561_v55, %v553_v54  ;;  %v560_v0 = vld [vmem:[#allocation5 + $0x6d0] sm:$0xff]  ;;  %v379_v1 = vld [vmem:[#allocation5 + $0x128] sm:$0xff] }
  0xe2   : > { %v370_v62 = vld [vmem:[#allocation5 + $0xe0] sm:$0xff]  ;;  %v387_v2 = vld [vmem:[#allocation5 + $0x168] sm:$0xff]  ;;  %v569_v3 = vld [vmem:[#allocation5 + $0x718] sm:$0xff] }
  0xe3   : > { %4952 = vmatpush1.bf16.msra.mxu1 %v4951_v25  ;;  %v577_v4 = vld [vmem:[#allocation5 + $0x758] sm:$0xff]  ;;  %v4983_v5 = vpack.c.bf16 %v370_v62, %v362_v61  ;;  %v378_v10 = vld [vmem:[#allocation5 + $0x120] sm:$0xff]  ;;  %v576_v13 = vld [vmem:[#allocation5 + $0x750] sm:$0xff] }
  0xe4   : > { %4892 = vmatpush1.bf16.msra.mxu0 %v4891_v47  ;;  %4954 = vmatprep.subr.bf16.mxu1 %v4953_v27  ;;  %v4977_v47 = vpack.c.bf16 %v355_v41, %v347_v40  ;;  %v386_v11 = vld [vmem:[#allocation5 + $0x160] sm:$0xff]  ;;  %v4969_v12 = vpack.c.bf16 %v577_v4, %v569_v3  ;;  %v395_v14 = vld [vmem:[#allocation5 + $0x1a8] sm:$0xff]  ;;  %v585_v16 = vld [vmem:[#allocation5 + $0x798] sm:$0xff] }
  0xe5   : > { %4894 = vmatprep.subr.bf16.mxu0 %v4893_v48  ;;  %v346_v48 = vld [vmem:[#allocation5 + $0x20] sm:$0xff]  ;;  %v403_v15 = vld [vmem:[#allocation5 + $0x1e8] sm:$0xff]  ;;  %v593_v17 = vld [vmem:[#allocation5 + $0x7d8] sm:$0xff]  ;;  %v4987_v18 = vpack.c.bf16 %v386_v11, %v378_v10 }
  0xe6   : > { %v4979_v57 = vpack.c.bf16 %v354_v49, %v346_v48  ;;  %v394_v22 = vld [vmem:[#allocation5 + $0x1a0] sm:$0xff]  ;;  %v4973_v24 = vpack.c.bf16 %v593_v17, %v585_v16  ;;  %v592_v25 = vld [vmem:[#allocation5 + $0x7d0] sm:$0xff]  ;;  %v411_v26 = vld [vmem:[#allocation5 + $0x228] sm:$0xff] }
  0xe7   : > { %4956 = vmatpush1.bf16.msra.mxu1 %v4955_v36  ;;  %v402_v23 = vld [vmem:[#allocation5 + $0x1e0] sm:$0xff]  ;;  %v419_v27 = vld [vmem:[#allocation5 + $0x268] sm:$0xff]  ;;  %v349_v28 = vld [vmem:[#allocation5 + $0x38] sm:$0xff] }
  0xe8   : > { %4896 = vmatpush1.bf16.msra.mxu0 %v4895_v59  ;;  %4958 = vmatprep.subr.bf16.mxu1 %v4957_v38  ;;  %v552_v59 = vld [vmem:[#allocation5 + $0x690] sm:$0xff]  ;;  %v357_v29 = vld [vmem:[#allocation5 + $0x78] sm:$0xff]  ;;  %v4991_v30 = vpack.c.bf16 %v402_v23, %v394_v22  ;;  %v418_v34 = vld [vmem:[#allocation5 + $0x260] sm:$0xff] }
  0xe9   : > { %4898 = vmatprep.subr.bf16.mxu0 %v4897_v60  ;;  %v4981_v60 = vpack.c.bf16 %v371_v53, %v363_v52  ;;  %v4967_v7 = vpack.c.bf16 %v560_v0, %v552_v59  ;;  %v427_v35 = vld [vmem:[#allocation5 + $0x2a8] sm:$0xff]  ;;  %v5041_v37 = vpack.c.bf16 %v357_v29, %v349_v28  ;;  %v348_v38 = vld [vmem:[#allocation5 + $0x30] sm:$0xff]  ;;  %v365_v40 = vld [vmem:[#allocation5 + $0xb8] sm:$0xff] }
  0xea   : > { %v435_v36 = vld [vmem:[#allocation5 + $0x2e8] sm:$0xff]  ;;  %v356_v39 = vld [vmem:[#allocation5 + $0x70] sm:$0xff]  ;;  %v373_v41 = vld [vmem:[#allocation5 + $0xf8] sm:$0xff] }
  0xeb   : > { %4960 = vmatpush1.bf16.msra.mxu1 %v4959_v45  ;;  %v4997_v43 = vpack.c.bf16 %v435_v36, %v427_v35  ;;  %v434_v45 = vld [vmem:[#allocation5 + $0x2e0] sm:$0xff]  ;;  %v443_v46 = vld [vmem:[#allocation5 + $0x328] sm:$0xff]  ;;  %v5045_v49 = vpack.c.bf16 %v373_v41, %v365_v40  ;;  %v372_v51 = vld [vmem:[#allocation5 + $0xf0] sm:$0xff] }
  0xec   : > { %4900 = vmatpush1.bf16.msra.mxu0 %v4899_v8  ;;  %4962 = vmatprep.subr.bf16.mxu1 %v4961_v50  ;;  %v568_v8 = vld [vmem:[#allocation5 + $0x710] sm:$0xff]  ;;  %v451_v48 = vld [vmem:[#allocation5 + $0x368] sm:$0xff]  ;;  %v381_v52 = vld [vmem:[#allocation5 + $0x138] sm:$0xff] }
  0xed   : > { %4902 = vmatprep.subr.bf16.mxu0 %v4901_v9  ;;  %v4985_v9 = vpack.c.bf16 %v387_v2, %v379_v1  ;;  %v4971_v19 = vpack.c.bf16 %v576_v13, %v568_v8  ;;  %v364_v50 = vld [vmem:[#allocation5 + $0xb0] sm:$0xff]  ;;  %v389_v53 = vld [vmem:[#allocation5 + $0x178] sm:$0xff]  ;;  %v5001_v55 = vpack.c.bf16 %v451_v48, %v443_v46  ;;  %v459_v59 = vld [vmem:[#allocation5 + $0x3a8] sm:$0xff] }
  0xee   : > { %v467_v61 = vld [vmem:[#allocation5 + $0x3e8] sm:$0xff]  ;;  %v5049_v62 = vpack.c.bf16 %v389_v53, %v381_v52  ;;  %v388_v0 = vld [vmem:[#allocation5 + $0x170] sm:$0xff]  ;;  %v397_v1 = vld [vmem:[#allocation5 + $0x1b8] sm:$0xff] }
  0xef   : > { %4964 = vmatpush1.bf16.msra.mxu1 %v4963_v58  ;;  %v450_v58 = vld [vmem:[#allocation5 + $0x360] sm:$0xff]  ;;  %v405_v2 = vld [vmem:[#allocation5 + $0x1f8] sm:$0xff]  ;;  %v5005_v4 = vpack.c.bf16 %v467_v61, %v459_v59  ;;  %v475_v8 = vld [vmem:[#allocation5 + $0x428] sm:$0xff] }
  0xf0   : > { %4904 = vmatpush1.bf16.msra.mxu0 %v4903_v20  ;;  %4966 = vmatprep.subr.bf16.mxu1 %v4965_v63  ;;  %v584_v20 = vld [vmem:[#allocation5 + $0x790] sm:$0xff]  ;;  %v483_v10 = vld [vmem:[#allocation5 + $0x468] sm:$0xff]  ;;  %v5053_v11 = vpack.c.bf16 %v405_v2, %v397_v1  ;;  %v474_v17 = vld [vmem:[#allocation5 + $0x420] sm:$0xff] }
  0xf1   : > { %4906 = vmatprep.subr.bf16.mxu0 %v4905_v21  ;;  %v4989_v21 = vpack.c.bf16 %v403_v15, %v395_v14  ;;  %v4975_v31 = vpack.c.bf16 %v592_v25, %v584_v20  ;;  %v380_v63 = vld [vmem:[#allocation5 + $0x130] sm:$0xff]  ;;  %v413_v14 = vld [vmem:[#allocation5 + $0x238] sm:$0xff]  ;;  %v5009_v16 = vpack.c.bf16 %v483_v10, %v475_v8  ;;  %v490_v29 = vld [vmem:[#allocation5 + $0x4a0] sm:$0xff] }
  0xf2   : > { %v404_v13 = vld [vmem:[#allocation5 + $0x1f0] sm:$0xff]  ;;  %v421_v15 = vld [vmem:[#allocation5 + $0x278] sm:$0xff]  ;;  %v506_v41 = vld [vmem:[#allocation5 + $0x520] sm:$0xff] }
  0xf3   : > { %4968 = vmatpush1.bf16.msra.mxu1 %v4967_v7  ;;  %v466_v7 = vld [vmem:[#allocation5 + $0x3e0] sm:$0xff]  ;;  %v5057_v22 = vpack.c.bf16 %v421_v15, %v413_v14  ;;  %v412_v23 = vld [vmem:[#allocation5 + $0x230] sm:$0xff]  ;;  %v429_v25 = vld [vmem:[#allocation5 + $0x2b8] sm:$0xff] }
  0xf4   : > { %4908 = vmatpush1.bf16.msra.mxu0 %v4907_v32  ;;  %4970 = vmatprep.subr.bf16.mxu1 %v4969_v12  ;;  %v4993_v32 = vpack.c.bf16 %v419_v27, %v411_v26  ;;  %v396_v12 = vld [vmem:[#allocation5 + $0x1b0] sm:$0xff]  ;;  %v437_v26 = vld [vmem:[#allocation5 + $0x2f8] sm:$0xff]  ;;  %v522_v53 = vld [vmem:[#allocation5 + $0x5a0] sm:$0xff] }
  0xf5   : > { %4910 = vmatprep.subr.bf16.mxu0 %v4909_v33  ;;  %v410_v33 = vld [vmem:[#allocation5 + $0x220] sm:$0xff]  ;;  %v5055_v20 = vpack.c.bf16 %v404_v13, %v396_v12  ;;  %v428_v35 = vld [vmem:[#allocation5 + $0x2b0] sm:$0xff]  ;;  %v501_v12 = vld [vmem:[#allocation5 + $0x4f8] sm:$0xff] }
  0xf6   : > { %v4995_v42 = vpack.c.bf16 %v418_v34, %v410_v33  ;;  %v515_v33 = vld [vmem:[#allocation5 + $0x568] sm:$0xff]  ;;  %v5061_v34 = vpack.c.bf16 %v437_v26, %v429_v25  ;;  %v436_v36 = vld [vmem:[#allocation5 + $0x2f0] sm:$0xff]  ;;  %v538_v2 = vld [vmem:[#allocation5 + $0x620] sm:$0xff] }
  0xf7   : > { %4972 = vmatpush1.bf16.msra.mxu1 %v4971_v19  ;;  %v491_v19 = vld [vmem:[#allocation5 + $0x4a8] sm:$0xff]  ;;  %v452_v48 = vld [vmem:[#allocation5 + $0x370] sm:$0xff]  ;;  %v554_v15 = vld [vmem:[#allocation5 + $0x6a0] sm:$0xff] }
  0xf8   : > { %4912 = vmatpush1.bf16.msra.mxu0 %v4911_v44  ;;  %4974 = vmatprep.subr.bf16.mxu1 %v4973_v24  ;;  %v426_v44 = vld [vmem:[#allocation5 + $0x2a0] sm:$0xff]  ;;  %v420_v24 = vld [vmem:[#allocation5 + $0x270] sm:$0xff] }
  0xf9   : > { %4978 = vmatprep.subr.bf16.mxu0 %v4977_v47  ;;  %v5043_v47 = vpack.c.bf16 %v356_v39, %v348_v38  ;;  %v4999_v54 = vpack.c.bf16 %v434_v45, %v426_v44  ;;  %v453_v38 = vld [vmem:[#allocation5 + $0x378] sm:$0xff]  ;;  %v5063_v44 = vpack.c.bf16 %v436_v36, %v428_v35  ;;  %v531_v45 = vld [vmem:[#allocation5 + $0x5e8] sm:$0xff]  ;;  %v468_v61 = vld [vmem:[#allocation5 + $0x3f0] sm:$0xff] }
  0xfa   : > { %v484_v10 = vld [vmem:[#allocation5 + $0x470] sm:$0xff]  ;;  %v570_v26 = vld [vmem:[#allocation5 + $0x720] sm:$0xff]  ;;  %v533_v35 = vld [vmem:[#allocation5 + $0x5f8] sm:$0xff] }
  0xfb   : > { %737 = vmatmul.mubr.f32.vlgmr.msra.gmra.mrb[0].mxu0 %v7137_v56  ;;  %4976 = vmatpush1.bf16.msra.mxu1 %v4975_v31  ;;  %v507_v31 = vld [vmem:[#allocation5 + $0x528] sm:$0xff] }
  0xfc   : > { %4980 = vmatpush1.bf16.msra.mxu0 %v4979_v57  ;;  %878 = vmatprep.mubr.f32.mxu0 %v7132_v6  ;;  %v442_v57 = vld [vmem:[#allocation5 + $0x320] sm:$0xff]  ;;  %v5017_v40 = vpack.c.bf16 %v515_v33, %v507_v31  ;;  %v516_v33 = vld [vmem:[#allocation5 + $0x570] sm:$0xff] }
  0xfd   : > { %4982 = vmatprep.subr.bf16.mxu0 %v4981_v60  ;;  %5042 = vmatprep.subr.bf16.mxu1 %v5041_v37  ;;  %v5047_v60 = vpack.c.bf16 %v372_v51, %v364_v50  ;;  %v5003_v3 = vpack.c.bf16 %v450_v58, %v442_v57  ;;  %v445_v37 = vld [vmem:[#allocation5 + $0x338] sm:$0xff]  ;;  %v547_v58 = vld [vmem:[#allocation5 + $0x668] sm:$0xff] }
  0xfe   : > { %808 = vmatmul.mubr.f32.vlgmr.msra.gmra.mrb[0].mxu1 %v7137_v56  ;;  %v5065_v46 = vpack.c.bf16 %v453_v38, %v445_v37  ;;  %v469_v50 = vld [vmem:[#allocation5 + $0x3f8] sm:$0xff]  ;;  %v586_v38 = vld [vmem:[#allocation5 + $0x7a0] sm:$0xff] }
  0xff   : > { %5044 = vmatpush1.bf16.msra.mxu1 %v5043_v47  ;;  %949 = vmatprep.mubr.f32.mxu1 %v7132_v6  ;;  %v444_v47 = vld [vmem:[#allocation5 + $0x330] sm:$0xff] }
 0x100   : > { %4984 = vmatpush1.bf16.msra.mxu0 %v4983_v5  ;;  %5046 = vmatprep.subr.bf16.mxu1 %v5045_v49  ;;  %v458_v5 = vld [vmem:[#allocation5 + $0x3a0] sm:$0xff]  ;;  %v461_v49 = vld [vmem:[#allocation5 + $0x3b8] sm:$0xff]  ;;  %v5067_v57 = vpack.c.bf16 %v452_v48, %v444_v47 }
 0x101   : > { %4986 = vmatprep.subr.bf16.mxu0 %v4985_v9  ;;  %v5051_v9 = vpack.c.bf16 %v388_v0, %v380_v63  ;;  %v5007_v6 = vpack.c.bf16 %v466_v7, %v458_v5  ;;  %v5069_v59 = vpack.c.bf16 %v469_v50, %v461_v49  ;;  %v485_v63 = vld [vmem:[#allocation5 + $0x478] sm:$0xff]  ;;  %v563_v7 = vld [vmem:[#allocation5 + $0x6e8] sm:$0xff]  ;;  %v540_v50 = vld [vmem:[#allocation5 + $0x630] sm:$0xff] }
 0x102   : > { %v549_v47 = vld [vmem:[#allocation5 + $0x678] sm:$0xff] }
 0x103   : > { %5048 = vmatpush1.bf16.msra.mxu1 %v5047_v60  ;;  %v460_v60 = vld [vmem:[#allocation5 + $0x3b0] sm:$0xff] }
 0x104   : > { %4988 = vmatpush1.bf16.msra.mxu0 %v4987_v18  ;;  %5050 = vmatprep.subr.bf16.mxu1 %v5049_v62  ;;  %v482_v18 = vld [vmem:[#allocation5 + $0x460] sm:$0xff]  ;;  %v477_v62 = vld [vmem:[#allocation5 + $0x438] sm:$0xff]  ;;  %v5071_v5 = vpack.c.bf16 %v468_v61, %v460_v60 }
 0x105   : > { %4990 = vmatprep.subr.bf16.mxu0 %v4989_v21  ;;  %v499_v21 = vld [vmem:[#allocation5 + $0x4e8] sm:$0xff]  ;;  %v5011_v27 = vpack.c.bf16 %v482_v18, %v474_v17  ;;  %v5073_v8 = vpack.c.bf16 %v485_v63, %v477_v62  ;;  %v565_v60 = vld [vmem:[#allocation5 + $0x6f8] sm:$0xff]  ;;  %v556_v63 = vld [vmem:[#allocation5 + $0x6b0] sm:$0xff] }
 0x106   : > { %v5013_v28 = vpack.c.bf16 %v499_v21, %v491_v19  ;;  %v579_v18 = vld [vmem:[#allocation5 + $0x768] sm:$0xff]  ;;  %v500_v21 = vld [vmem:[#allocation5 + $0x4f0] sm:$0xff] }
 0x107   : > { %5052 = vmatpush1.bf16.msra.mxu1 %v5051_v9  ;;  %v476_v9 = vld [vmem:[#allocation5 + $0x430] sm:$0xff] }
 0x108   : > { %4992 = vmatpush1.bf16.msra.mxu0 %v4991_v30  ;;  %5054 = vmatprep.subr.bf16.mxu1 %v5053_v11  ;;  %v498_v30 = vld [vmem:[#allocation5 + $0x4e0] sm:$0xff]  ;;  %v493_v11 = vld [vmem:[#allocation5 + $0x4b8] sm:$0xff]  ;;  %v5075_v17 = vpack.c.bf16 %v484_v10, %v476_v9 }
 0x109   : > { %4994 = vmatprep.subr.bf16.mxu0 %v4993_v32  ;;  %v5059_v32 = vpack.c.bf16 %v420_v24, %v412_v23  ;;  %v5015_v39 = vpack.c.bf16 %v498_v30, %v490_v29  ;;  %v5077_v19 = vpack.c.bf16 %v501_v12, %v493_v11  ;;  %v517_v23 = vld [vmem:[#allocation5 + $0x578] sm:$0xff]  ;;  %v595_v30 = vld [vmem:[#allocation5 + $0x7e8] sm:$0xff]  ;;  %v572_v12 = vld [vmem:[#allocation5 + $0x730] sm:$0xff] }
 0x10a   : > { %v581_v9 = vld [vmem:[#allocation5 + $0x778] sm:$0xff] }
 0x10b   : > { %5056 = vmatpush1.bf16.msra.mxu1 %v5055_v20  ;;  %v492_v20 = vld [vmem:[#allocation5 + $0x4b0] sm:$0xff] }
 0x10c   : > { %4996 = vmatpush1.bf16.msra.mxu0 %v4995_v42  ;;  %5058 = vmatprep.subr.bf16.mxu1 %v5057_v22  ;;  %v514_v42 = vld [vmem:[#allocation5 + $0x560] sm:$0xff]  ;;  %v509_v22 = vld [vmem:[#allocation5 + $0x538] sm:$0xff]  ;;  %v5079_v29 = vpack.c.bf16 %v500_v21, %v492_v20 }
 0x10d   : > { %4998 = vmatprep.subr.bf16.mxu0 %v4997_v43  ;;  %v523_v43 = vld [vmem:[#allocation5 + $0x5a8] sm:$0xff]  ;;  %v5019_v51 = vpack.c.bf16 %v514_v42, %v506_v41  ;;  %v5081_v31 = vpack.c.bf16 %v517_v23, %v509_v22  ;;  %v524_v41 = vld [vmem:[#allocation5 + $0x5b0] sm:$0xff]  ;;  %v597_v20 = vld [vmem:[#allocation5 + $0x7f8] sm:$0xff] }
 0x10e   : > { %v5021_v52 = vpack.c.bf16 %v531_v45, %v523_v43  ;;  %v532_v43 = vld [vmem:[#allocation5 + $0x5f0] sm:$0xff]  ;;  %v1005_v45 = vld [vmem:[#allocation5 + $0x848] sm:$0xff] }
 0x10f   : > { %5060 = vmatpush1.bf16.msra.mxu1 %v5059_v32  ;;  %v508_v32 = vld [vmem:[#allocation5 + $0x530] sm:$0xff]  ;;  %v5087_v49 = vpack.c.bf16 %v532_v43, %v524_v41  ;;  %v1077_v41 = vld [vmem:[#allocation5 + $0xa88] sm:$0xff]  ;;  %v1015_v43 = vld [vmem:[#allocation5 + $0x898] sm:$0xff] }
 0x110   : > { %5000 = vmatpush1.bf16.msra.mxu0 %v4999_v54  ;;  %5062 = vmatprep.subr.bf16.mxu1 %v5061_v34  ;;  %v530_v54 = vld [vmem:[#allocation5 + $0x5e0] sm:$0xff]  ;;  %v525_v34 = vld [vmem:[#allocation5 + $0x5b8] sm:$0xff]  ;;  %v588_v23 = vld [vmem:[#allocation5 + $0x7b0] sm:$0xff] }
 0x111   : > { %5002 = vmatprep.subr.bf16.mxu0 %v5001_v55  ;;  %v539_v55 = vld [vmem:[#allocation5 + $0x628] sm:$0xff]  ;;  %v5023_v0 = vpack.c.bf16 %v530_v54, %v522_v53  ;;  %v5085_v42 = vpack.c.bf16 %v533_v35, %v525_v34  ;;  %v1004_v53 = vld [vmem:[#allocation5 + $0x840] sm:$0xff]  ;;  %v998_v35 = vld [vmem:[#allocation5 + $0x810] sm:$0xff] }
 0x112   : > { %v5025_v1 = vpack.c.bf16 %v547_v58, %v539_v55  ;;  %v548_v55 = vld [vmem:[#allocation5 + $0x670] sm:$0xff]  ;;  %v1021_v58 = vld [vmem:[#allocation5 + $0x8c8] sm:$0xff] }
 0x113   : > { %5064 = vmatpush1.bf16.msra.mxu1 %v5063_v44  ;;  %v997_v44 = vld [vmem:[#allocation5 + $0x808] sm:$0xff]  ;;  %v5091_v62 = vpack.c.bf16 %v548_v55, %v540_v50  ;;  %v1084_v50 = vld [vmem:[#allocation5 + $0xac0] sm:$0xff]  ;;  %v1031_v55 = vld [vmem:[#allocation5 + $0x918] sm:$0xff] }
 0x114   : > { %5004 = vmatpush1.bf16.msra.mxu0 %v5003_v3  ;;  %5066 = vmatprep.subr.bf16.mxu1 %v5065_v46  ;;  %v546_v3 = vld [vmem:[#allocation5 + $0x660] sm:$0xff]  ;;  %v541_v46 = vld [vmem:[#allocation5 + $0x638] sm:$0xff] }
 0x115   : > { %5006 = vmatprep.subr.bf16.mxu0 %v5005_v4  ;;  %v555_v4 = vld [vmem:[#allocation5 + $0x6a8] sm:$0xff]  ;;  %v5027_v13 = vpack.c.bf16 %v546_v3, %v538_v2  ;;  %v5089_v54 = vpack.c.bf16 %v549_v47, %v541_v46  ;;  %v1020_v2 = vld [vmem:[#allocation5 + $0x8c0] sm:$0xff]  ;;  %v1014_v47 = vld [vmem:[#allocation5 + $0x890] sm:$0xff] }
 0x116   : > { %v5029_v14 = vpack.c.bf16 %v563_v7, %v555_v4  ;;  %v564_v4 = vld [vmem:[#allocation5 + $0x6f0] sm:$0xff]  ;;  %v1037_v7 = vld [vmem:[#allocation5 + $0x948] sm:$0xff] }
 0x117   : > { %5068 = vmatpush1.bf16.msra.mxu1 %v5067_v57  ;;  %v1013_v57 = vld [vmem:[#allocation5 + $0x888] sm:$0xff]  ;;  %v5095_v11 = vpack.c.bf16 %v564_v4, %v556_v63  ;;  %v1100_v63 = vld [vmem:[#allocation5 + $0xb40] sm:$0xff]  ;;  %v1047_v4 = vld [vmem:[#allocation5 + $0x998] sm:$0xff] }
 0x118   : > { %5008 = vmatpush1.bf16.msra.mxu0 %v5007_v6  ;;  %5070 = vmatprep.subr.bf16.mxu1 %v5069_v59  ;;  %v562_v6 = vld [vmem:[#allocation5 + $0x6e0] sm:$0xff]  ;;  %v557_v59 = vld [vmem:[#allocation5 + $0x6b8] sm:$0xff] }
 0x119   : > { %5010 = vmatprep.subr.bf16.mxu0 %v5009_v16  ;;  %v571_v16 = vld [vmem:[#allocation5 + $0x728] sm:$0xff]  ;;  %v5031_v24 = vpack.c.bf16 %v562_v6, %v554_v15  ;;  %v5093_v3 = vpack.c.bf16 %v565_v60, %v557_v59  ;;  %v1036_v15 = vld [vmem:[#allocation5 + $0x940] sm:$0xff]  ;;  %v1030_v60 = vld [vmem:[#allocation5 + $0x910] sm:$0xff] }
 0x11a   : > { %v5033_v25 = vpack.c.bf16 %v579_v18, %v571_v16  ;;  %v580_v16 = vld [vmem:[#allocation5 + $0x770] sm:$0xff]  ;;  %v1053_v18 = vld [vmem:[#allocation5 + $0x9c8] sm:$0xff] }
 0x11b   : > { %5072 = vmatpush1.bf16.msra.mxu1 %v5071_v5  ;;  %v1029_v5 = vld [vmem:[#allocation5 + $0x908] sm:$0xff]  ;;  %v5099_v22 = vpack.c.bf16 %v580_v16, %v572_v12  ;;  %v1071_v16 = vld [vmem:[#allocation5 + $0xa58] sm:$0xff] }
 0x11c   : > { %5012 = vmatpush1.bf16.msra.mxu0 %v5011_v27  ;;  %5074 = vmatprep.subr.bf16.mxu1 %v5073_v8  ;;  %v578_v27 = vld [vmem:[#allocation5 + $0x760] sm:$0xff]  ;;  %v573_v8 = vld [vmem:[#allocation5 + $0x738] sm:$0xff] }
 0x11d   : > { %5014 = vmatprep.subr.bf16.mxu0 %v5013_v28  ;;  %v587_v28 = vld [vmem:[#allocation5 + $0x7a8] sm:$0xff]  ;;  %v5035_v36 = vpack.c.bf16 %v578_v27, %v570_v26  ;;  %v5097_v6 = vpack.c.bf16 %v581_v9, %v573_v8  ;;  %v1052_v26 = vld [vmem:[#allocation5 + $0x9c0] sm:$0xff]  ;;  %v1046_v8 = vld [vmem:[#allocation5 + $0x990] sm:$0xff] }
 0x11e   : > { %v5037_v37 = vpack.c.bf16 %v595_v30, %v587_v28  ;;  %v596_v28 = vld [vmem:[#allocation5 + $0x7f0] sm:$0xff]  ;;  %v1069_v30 = vld [vmem:[#allocation5 + $0xa48] sm:$0xff] }
 0x11f   : > { %5076 = vmatpush1.bf16.msra.mxu1 %v5075_v17  ;;  %v1045_v17 = vld [vmem:[#allocation5 + $0x988] sm:$0xff]  ;;  %v5103_v34 = vpack.c.bf16 %v596_v28, %v588_v23  ;;  %v1087_v28 = vld [vmem:[#allocation5 + $0xad8] sm:$0xff] }
 0x120   : > { %5016 = vmatpush1.bf16.msra.mxu0 %v5015_v39  ;;  %5078 = vmatprep.subr.bf16.mxu1 %v5077_v19  ;;  %v594_v39 = vld [vmem:[#allocation5 + $0x7e0] sm:$0xff]  ;;  %v589_v19 = vld [vmem:[#allocation5 + $0x7b8] sm:$0xff] }
 0x121   : > { %5018 = vmatprep.subr.bf16.mxu0 %v5017_v40  ;;  %v5083_v40 = vpack.c.bf16 %v516_v33, %v508_v32  ;;  %v5039_v48 = vpack.c.bf16 %v594_v39, %v586_v38  ;;  %v5101_v27 = vpack.c.bf16 %v597_v20, %v589_v19  ;;  %v1007_v32 = vld [vmem:[#allocation5 + $0x858] sm:$0xff]  ;;  %v1068_v38 = vld [vmem:[#allocation5 + $0xa40] sm:$0xff]  ;;  %v1062_v19 = vld [vmem:[#allocation5 + $0xa10] sm:$0xff] }
 0x123   : > { %5080 = vmatpush1.bf16.msra.mxu1 %v5079_v29  ;;  %v1061_v29 = vld [vmem:[#allocation5 + $0xa08] sm:$0xff] }
 0x124   : > { %5020 = vmatpush1.bf16.msra.mxu0 %v5019_v51  ;;  %5082 = vmatprep.subr.bf16.mxu1 %v5081_v31  ;;  %v5105_v51 = vpack.c.bf16 %v1005_v45, %v997_v44  ;;  %v999_v31 = vld [vmem:[#allocation5 + $0x818] sm:$0xff] }
 0x125   : > { %5022 = vmatprep.subr.bf16.mxu0 %v5021_v52  ;;  %v996_v52 = vld [vmem:[#allocation5 + $0x800] sm:$0xff]  ;;  %v5361_v39 = vpack.c.bf16 %v1007_v32, %v999_v31  ;;  %v1023_v44 = vld [vmem:[#allocation5 + $0x8d8] sm:$0xff]  ;;  %v1078_v31 = vld [vmem:[#allocation5 + $0xa90] sm:$0xff] }
 0x126   : > { %v5107_v61 = vpack.c.bf16 %v1004_v53, %v996_v52  ;;  %v1022_v52 = vld [vmem:[#allocation5 + $0x8d0] sm:$0xff]  ;;  %v1093_v53 = vld [vmem:[#allocation5 + $0xb08] sm:$0xff] }
 0x127   : > { %5084 = vmatpush1.bf16.msra.mxu1 %v5083_v40  ;;  %v1006_v40 = vld [vmem:[#allocation5 + $0x850] sm:$0xff]  ;;  %v5367_v59 = vpack.c.bf16 %v1022_v52, %v1014_v47  ;;  %v1119_v52 = vld [vmem:[#allocation5 + $0xbd8] sm:$0xff] }
 0x128   : > { %5024 = vmatpush1.bf16.msra.mxu0 %v5023_v0  ;;  %5086 = vmatprep.subr.bf16.mxu1 %v5085_v42  ;;  %v5109_v0 = vpack.c.bf16 %v1021_v58, %v1013_v57  ;;  %v1085_v42 = vld [vmem:[#allocation5 + $0xac8] sm:$0xff]  ;;  %v5363_v46 = vpack.c.bf16 %v1006_v40, %v998_v35  ;;  %v1039_v57 = vld [vmem:[#allocation5 + $0x958] sm:$0xff] }
 0x129   : > { %5026 = vmatprep.subr.bf16.mxu0 %v5025_v1  ;;  %v1012_v1 = vld [vmem:[#allocation5 + $0x880] sm:$0xff]  ;;  %v1103_v40 = vld [vmem:[#allocation5 + $0xb58] sm:$0xff] }
 0x12a   : > { %v5111_v10 = vpack.c.bf16 %v1020_v2, %v1012_v1  ;;  %v1038_v1 = vld [vmem:[#allocation5 + $0x950] sm:$0xff]  ;;  %v1109_v2 = vld [vmem:[#allocation5 + $0xb88] sm:$0xff] }
 0x12b   : > { %5088 = vmatpush1.bf16.msra.mxu1 %v5087_v49  ;;  %v1076_v49 = vld [vmem:[#allocation5 + $0xa80] sm:$0xff] }
 0x12c   : > { %5028 = vmatpush1.bf16.msra.mxu0 %v5027_v13  ;;  %5090 = vmatprep.subr.bf16.mxu1 %v5089_v54  ;;  %v5113_v13 = vpack.c.bf16 %v1037_v7, %v1029_v5  ;;  %v1101_v54 = vld [vmem:[#allocation5 + $0xb48] sm:$0xff]  ;;  %v5127_v58 = vpack.c.bf16 %v1084_v50, %v1076_v49  ;;  %v1055_v5 = vld [vmem:[#allocation5 + $0x9d8] sm:$0xff] }
 0x12d   : > { %5030 = vmatprep.subr.bf16.mxu0 %v5029_v14  ;;  %v1028_v14 = vld [vmem:[#allocation5 + $0x900] sm:$0xff]  ;;  %v5373_v12 = vpack.c.bf16 %v1055_v5, %v1047_v4  ;;  %v1173_v49 = vld [vmem:[#allocation5 + $0xd88] sm:$0xff]  ;;  %v1126_v4 = vld [vmem:[#allocation5 + $0xc10] sm:$0xff] }
 0x12e   : > { %v5115_v21 = vpack.c.bf16 %v1036_v15, %v1028_v14  ;;  %v1125_v14 = vld [vmem:[#allocation5 + $0xc08] sm:$0xff] }
 0x12f   : > { %5092 = vmatpush1.bf16.msra.mxu1 %v5091_v62  ;;  %v1092_v62 = vld [vmem:[#allocation5 + $0xb00] sm:$0xff]  ;;  %v1133_v15 = vld [vmem:[#allocation5 + $0xc48] sm:$0xff] }
 0x130   : > { %5032 = vmatpush1.bf16.msra.mxu0 %v5031_v24  ;;  %5094 = vmatprep.subr.bf16.mxu1 %v5093_v3  ;;  %v5117_v24 = vpack.c.bf16 %v1053_v18, %v1045_v17  ;;  %v1117_v3 = vld [vmem:[#allocation5 + $0xbc8] sm:$0xff]  ;;  %v5131_v7 = vpack.c.bf16 %v1100_v63, %v1092_v62  ;;  %v5137_v20 = vpack.c.bf16 %v1133_v15, %v1125_v14 }
 0x131   : > { %5034 = vmatprep.subr.bf16.mxu0 %v5033_v25  ;;  %v1044_v25 = vld [vmem:[#allocation5 + $0x980] sm:$0xff]  ;;  %v5133_v9 = vpack.c.bf16 %v1117_v3, %v1109_v2  ;;  %v1181_v50 = vld [vmem:[#allocation5 + $0xdc8] sm:$0xff] }
 0x132   : > { %v5119_v33 = vpack.c.bf16 %v1052_v26, %v1044_v25  ;;  %v1141_v25 = vld [vmem:[#allocation5 + $0xc88] sm:$0xff] }
 0x133   : > { %5096 = vmatpush1.bf16.msra.mxu1 %v5095_v11  ;;  %v1116_v11 = vld [vmem:[#allocation5 + $0xbc0] sm:$0xff]  ;;  %v1149_v26 = vld [vmem:[#allocation5 + $0xcc8] sm:$0xff] }
 0x134   : > { %5036 = vmatpush1.bf16.msra.mxu0 %v5035_v36  ;;  %5098 = vmatprep.subr.bf16.mxu1 %v5097_v6  ;;  %v5121_v36 = vpack.c.bf16 %v1069_v30, %v1061_v29  ;;  %v1063_v6 = vld [vmem:[#allocation5 + $0xa18] sm:$0xff]  ;;  %v5141_v32 = vpack.c.bf16 %v1149_v26, %v1141_v25  ;;  %v1189_v62 = vld [vmem:[#allocation5 + $0xe08] sm:$0xff] }
 0x135   : > { %5038 = vmatprep.subr.bf16.mxu0 %v5037_v37  ;;  %v1060_v37 = vld [vmem:[#allocation5 + $0xa00] sm:$0xff]  ;;  %v5377_v23 = vpack.c.bf16 %v1071_v16, %v1063_v6  ;;  %v1197_v63 = vld [vmem:[#allocation5 + $0xe48] sm:$0xff]  ;;  %v1142_v6 = vld [vmem:[#allocation5 + $0xc90] sm:$0xff] }
 0x136   : > { %v5123_v45 = vpack.c.bf16 %v1068_v38, %v1060_v37  ;;  %v1157_v37 = vld [vmem:[#allocation5 + $0xd08] sm:$0xff]  ;;  %v5153_v5 = vpack.c.bf16 %v1197_v63, %v1189_v62  ;;  %v1223_v62 = vld [vmem:[#allocation5 + $0xf18] sm:$0xff] }
 0x137   : > { %5100 = vmatpush1.bf16.msra.mxu1 %v5099_v22  ;;  %v1132_v22 = vld [vmem:[#allocation5 + $0xc40] sm:$0xff]  ;;  %v1165_v38 = vld [vmem:[#allocation5 + $0xd48] sm:$0xff]  ;;  %v1231_v63 = vld [vmem:[#allocation5 + $0xf58] sm:$0xff] }
 0x138   : > { %5040 = vmatpush1.bf16.msra.mxu0 %v5039_v48  ;;  %5102 = vmatprep.subr.bf16.mxu1 %v5101_v27  ;;  %v5125_v48 = vpack.c.bf16 %v1085_v42, %v1077_v41  ;;  %v1079_v27 = vld [vmem:[#allocation5 + $0xa98] sm:$0xff] }
 0x139   : > { %5106 = vmatprep.subr.bf16.mxu0 %v5105_v51  ;;  %v5365_v51 = vpack.c.bf16 %v1023_v44, %v1015_v43  ;;  %v5381_v35 = vpack.c.bf16 %v1087_v28, %v1079_v27  ;;  %v1094_v43 = vld [vmem:[#allocation5 + $0xb10] sm:$0xff]  ;;  %v5145_v44 = vpack.c.bf16 %v1165_v38, %v1157_v37 }
 0x13a   : > { %v1158_v27 = vld [vmem:[#allocation5 + $0xd10] sm:$0xff] }
 0x13b   : > { %879 = vmatmul.mubr.f32.vlgmr.msra.gmra.mrb[2].mxu0 %v7137_v56  ;;  %5104 = vmatpush1.bf16.msra.mxu1 %v5103_v34  ;;  %v1148_v34 = vld [vmem:[#allocation5 + $0xcc0] sm:$0xff] }
 0x13c   : > { %5108 = vmatpush1.bf16.msra.mxu0 %v5107_v61  ;;  %5362 = vmatprep.subr.bf16.mxu1 %v5361_v39  ;;  %v5129_v61 = vpack.c.bf16 %v1101_v54, %v1093_v53  ;;  %v1095_v39 = vld [vmem:[#allocation5 + $0xb18] sm:$0xff] }
 0x13d   : > { %5110 = vmatprep.subr.bf16.mxu0 %v5109_v0  ;;  %v5369_v0 = vpack.c.bf16 %v1039_v57, %v1031_v55  ;;  %v5385_v47 = vpack.c.bf16 %v1103_v40, %v1095_v39  ;;  %v1110_v55 = vld [vmem:[#allocation5 + $0xb90] sm:$0xff]  ;;  %v5149_v57 = vpack.c.bf16 %v1181_v50, %v1173_v49 }
 0x13e   : > { %950 = vmatmul.mubr.f32.vlgmr.msra.gmra.mrb[2].mxu1 %v7137_v56  ;;  %v5371_v56 = vpack.c.bf16 %v1038_v1, %v1030_v60  ;;  %v1135_v1 = vld [vmem:[#allocation5 + $0xc58] sm:$0xff]  ;;  %v1174_v39 = vld [vmem:[#allocation5 + $0xd90] sm:$0xff] }
 0x13f   : > { %5364 = vmatpush1.bf16.msra.mxu1 %v5363_v46  ;;  %v1164_v46 = vld [vmem:[#allocation5 + $0xd40] sm:$0xff] }
 0x140   : > { %5112 = vmatpush1.bf16.msra.mxu0 %v5111_v10  ;;  %5366 = vmatprep.subr.bf16.mxu1 %v5365_v51  ;;  %v1108_v10 = vld [vmem:[#allocation5 + $0xb80] sm:$0xff]  ;;  %v1111_v51 = vld [vmem:[#allocation5 + $0xb98] sm:$0xff] }
 0x141   : > { %5114 = vmatprep.subr.bf16.mxu0 %v5113_v13  ;;  %v1054_v13 = vld [vmem:[#allocation5 + $0x9d0] sm:$0xff]  ;;  %v5135_v17 = vpack.c.bf16 %v1116_v11, %v1108_v10  ;;  %v5389_v60 = vpack.c.bf16 %v1119_v52, %v1111_v51  ;;  %v1205_v10 = vld [vmem:[#allocation5 + $0xe88] sm:$0xff] }
 0x142   : > { %v5375_v18 = vpack.c.bf16 %v1054_v13, %v1046_v8  ;;  %v1213_v11 = vld [vmem:[#allocation5 + $0xec8] sm:$0xff]  ;;  %v1151_v13 = vld [vmem:[#allocation5 + $0xcd8] sm:$0xff] }
 0x143   : > { %5368 = vmatpush1.bf16.msra.mxu1 %v5367_v59  ;;  %v1180_v59 = vld [vmem:[#allocation5 + $0xdc0] sm:$0xff]  ;;  %v5157_v16 = vpack.c.bf16 %v1213_v11, %v1205_v10  ;;  %v1255_v10 = vld [vmem:[#allocation5 + $0x1018] sm:$0xff] }
 0x144   : > { %5116 = vmatpush1.bf16.msra.mxu0 %v5115_v21  ;;  %5370 = vmatprep.subr.bf16.mxu1 %v5369_v0  ;;  %v1124_v21 = vld [vmem:[#allocation5 + $0xc00] sm:$0xff]  ;;  %v1127_v0 = vld [vmem:[#allocation5 + $0xc18] sm:$0xff] }
 0x145   : > { %5118 = vmatprep.subr.bf16.mxu0 %v5117_v24  ;;  %v1070_v24 = vld [vmem:[#allocation5 + $0xa50] sm:$0xff]  ;;  %v5139_v29 = vpack.c.bf16 %v1132_v22, %v1124_v21  ;;  %v5393_v8 = vpack.c.bf16 %v1135_v1, %v1127_v0  ;;  %v1221_v21 = vld [vmem:[#allocation5 + $0xf08] sm:$0xff]  ;;  %v5417_v1 = vpack.c.bf16 %v1231_v63, %v1223_v62  ;;  %v1263_v11 = vld [vmem:[#allocation5 + $0x1058] sm:$0xff] }
 0x146   : > { %v5379_v30 = vpack.c.bf16 %v1070_v24, %v1062_v19  ;;  %v1229_v22 = vld [vmem:[#allocation5 + $0xf48] sm:$0xff]  ;;  %v1167_v24 = vld [vmem:[#allocation5 + $0xd58] sm:$0xff] }
 0x147   : > { %5372 = vmatpush1.bf16.msra.mxu1 %v5371_v56  ;;  %v1196_v56 = vld [vmem:[#allocation5 + $0xe40] sm:$0xff]  ;;  %v5161_v28 = vpack.c.bf16 %v1229_v22, %v1221_v21  ;;  %v1295_v62 = vld [vmem:[#allocation5 + $0x1158] sm:$0xff] }
 0x148   : > { %5120 = vmatpush1.bf16.msra.mxu0 %v5119_v33  ;;  %5374 = vmatprep.subr.bf16.mxu1 %v5373_v12  ;;  %v1140_v33 = vld [vmem:[#allocation5 + $0xc80] sm:$0xff]  ;;  %v1143_v12 = vld [vmem:[#allocation5 + $0xc98] sm:$0xff] }
 0x149   : > { %5122 = vmatprep.subr.bf16.mxu0 %v5121_v36  ;;  %v1086_v36 = vld [vmem:[#allocation5 + $0xad0] sm:$0xff]  ;;  %v5143_v41 = vpack.c.bf16 %v1148_v34, %v1140_v33  ;;  %v5397_v19 = vpack.c.bf16 %v1151_v13, %v1143_v12  ;;  %v1237_v33 = vld [vmem:[#allocation5 + $0xf88] sm:$0xff]  ;;  %v5425_v13 = vpack.c.bf16 %v1263_v11, %v1255_v10  ;;  %v1303_v10 = vld [vmem:[#allocation5 + $0x1198] sm:$0xff] }
 0x14a   : > { %v5383_v42 = vpack.c.bf16 %v1086_v36, %v1078_v31  ;;  %v1245_v34 = vld [vmem:[#allocation5 + $0xfc8] sm:$0xff]  ;;  %v1183_v36 = vld [vmem:[#allocation5 + $0xdd8] sm:$0xff] }
 0x14b   : > { %5376 = vmatpush1.bf16.msra.mxu1 %v5375_v18  ;;  %v1212_v18 = vld [vmem:[#allocation5 + $0xec0] sm:$0xff]  ;;  %v5165_v40 = vpack.c.bf16 %v1245_v34, %v1237_v33  ;;  %v1311_v11 = vld [vmem:[#allocation5 + $0x11d8] sm:$0xff] }
 0x14c   : > { %5124 = vmatpush1.bf16.msra.mxu0 %v5123_v45  ;;  %5378 = vmatprep.subr.bf16.mxu1 %v5377_v23  ;;  %v1156_v45 = vld [vmem:[#allocation5 + $0xd00] sm:$0xff]  ;;  %v1159_v23 = vld [vmem:[#allocation5 + $0xd18] sm:$0xff] }
 0x14d   : > { %5126 = vmatprep.subr.bf16.mxu0 %v5125_v48  ;;  %v1102_v48 = vld [vmem:[#allocation5 + $0xb50] sm:$0xff]  ;;  %v5147_v53 = vpack.c.bf16 %v1164_v46, %v1156_v45  ;;  %v5401_v31 = vpack.c.bf16 %v1167_v24, %v1159_v23  ;;  %v1253_v45 = vld [vmem:[#allocation5 + $0x1008] sm:$0xff] }
 0x14e   : > { %v5387_v54 = vpack.c.bf16 %v1102_v48, %v1094_v43  ;;  %v1261_v46 = vld [vmem:[#allocation5 + $0x1048] sm:$0xff]  ;;  %v1199_v48 = vld [vmem:[#allocation5 + $0xe58] sm:$0xff] }
 0x14f   : > { %5380 = vmatpush1.bf16.msra.mxu1 %v5379_v30  ;;  %v1228_v30 = vld [vmem:[#allocation5 + $0xf40] sm:$0xff]  ;;  %v5169_v51 = vpack.c.bf16 %v1261_v46, %v1253_v45 }
 0x150   : > { %5128 = vmatpush1.bf16.msra.mxu0 %v5127_v58  ;;  %5382 = vmatprep.subr.bf16.mxu1 %v5381_v35  ;;  %v1172_v58 = vld [vmem:[#allocation5 + $0xd80] sm:$0xff]  ;;  %v1175_v35 = vld [vmem:[#allocation5 + $0xd98] sm:$0xff] }
 0x151   : > { %5130 = vmatprep.subr.bf16.mxu0 %v5129_v61  ;;  %v1118_v61 = vld [vmem:[#allocation5 + $0xbd0] sm:$0xff]  ;;  %v5151_v2 = vpack.c.bf16 %v1180_v59, %v1172_v58  ;;  %v5405_v43 = vpack.c.bf16 %v1183_v36, %v1175_v35 }
 0x152   : > { %v5391_v3 = vpack.c.bf16 %v1118_v61, %v1110_v55  ;;  %v1207_v55 = vld [vmem:[#allocation5 + $0xe98] sm:$0xff]  ;;  %v1214_v61 = vld [vmem:[#allocation5 + $0xed0] sm:$0xff] }
 0x153   : > { %5384 = vmatpush1.bf16.msra.mxu1 %v5383_v42  ;;  %v1244_v42 = vld [vmem:[#allocation5 + $0xfc0] sm:$0xff]  ;;  %v1254_v36 = vld [vmem:[#allocation5 + $0x1010] sm:$0xff] }
 0x154   : > { %5132 = vmatpush1.bf16.msra.mxu0 %v5131_v7  ;;  %5386 = vmatprep.subr.bf16.mxu1 %v5385_v47  ;;  %v1188_v7 = vld [vmem:[#allocation5 + $0xe00] sm:$0xff]  ;;  %v1191_v47 = vld [vmem:[#allocation5 + $0xe18] sm:$0xff] }
 0x155   : > { %5134 = vmatprep.subr.bf16.mxu0 %v5133_v9  ;;  %v1134_v9 = vld [vmem:[#allocation5 + $0xc50] sm:$0xff]  ;;  %v5155_v14 = vpack.c.bf16 %v1196_v56, %v1188_v7  ;;  %v5409_v52 = vpack.c.bf16 %v1199_v48, %v1191_v47 }
 0x156   : > { %v5395_v15 = vpack.c.bf16 %v1134_v9, %v1126_v4  ;;  %v1239_v4 = vld [vmem:[#allocation5 + $0xf98] sm:$0xff]  ;;  %v1246_v9 = vld [vmem:[#allocation5 + $0xfd0] sm:$0xff] }
 0x157   : > { %5388 = vmatpush1.bf16.msra.mxu1 %v5387_v54  ;;  %v1198_v54 = vld [vmem:[#allocation5 + $0xe50] sm:$0xff] }
 0x158   : > { %5136 = vmatpush1.bf16.msra.mxu0 %v5135_v17  ;;  %5390 = vmatprep.subr.bf16.mxu1 %v5389_v60  ;;  %v1204_v17 = vld [vmem:[#allocation5 + $0xe80] sm:$0xff]  ;;  %v1206_v60 = vld [vmem:[#allocation5 + $0xe90] sm:$0xff] }
 0x159   : > { %5138 = vmatprep.subr.bf16.mxu0 %v5137_v20  ;;  %v1150_v20 = vld [vmem:[#allocation5 + $0xcd0] sm:$0xff]  ;;  %v5159_v25 = vpack.c.bf16 %v1212_v18, %v1204_v17  ;;  %v5415_v0 = vpack.c.bf16 %v1214_v61, %v1206_v60  ;;  %v1293_v60 = vld [vmem:[#allocation5 + $0x1148] sm:$0xff]  ;;  %v1287_v61 = vld [vmem:[#allocation5 + $0x1118] sm:$0xff] }
 0x15a   : > { %v5399_v26 = vpack.c.bf16 %v1150_v20, %v1142_v6 }
 0x15b   : > { %5392 = vmatpush1.bf16.msra.mxu1 %v5391_v3  ;;  %v1230_v3 = vld [vmem:[#allocation5 + $0xf50] sm:$0xff] }
 0x15c   : > { %5140 = vmatpush1.bf16.msra.mxu0 %v5139_v29  ;;  %5394 = vmatprep.subr.bf16.mxu1 %v5393_v8  ;;  %v1220_v29 = vld [vmem:[#allocation5 + $0xf00] sm:$0xff]  ;;  %v1238_v8 = vld [vmem:[#allocation5 + $0xf90] sm:$0xff] }
 0x15d   : > { %5142 = vmatprep.subr.bf16.mxu0 %v5141_v32  ;;  %v1166_v32 = vld [vmem:[#allocation5 + $0xd50] sm:$0xff]  ;;  %v5163_v37 = vpack.c.bf16 %v1228_v30, %v1220_v29  ;;  %v5423_v12 = vpack.c.bf16 %v1246_v9, %v1238_v8  ;;  %v1301_v8 = vld [vmem:[#allocation5 + $0x1188] sm:$0xff] }
 0x15e   : > { %v5403_v38 = vpack.c.bf16 %v1166_v32, %v1158_v27  ;;  %v1260_v32 = vld [vmem:[#allocation5 + $0x1040] sm:$0xff]  ;;  %v1309_v9 = vld [vmem:[#allocation5 + $0x11c8] sm:$0xff] }
 0x15f   : > { %5396 = vmatpush1.bf16.msra.mxu1 %v5395_v15 }
 0x160   : > { %5144 = vmatpush1.bf16.msra.mxu0 %v5143_v41  ;;  %5398 = vmatprep.subr.bf16.mxu1 %v5397_v19  ;;  %v1236_v41 = vld [vmem:[#allocation5 + $0xf80] sm:$0xff] }
 0x161   : > { %5146 = vmatprep.subr.bf16.mxu0 %v5145_v44  ;;  %v1182_v44 = vld [vmem:[#allocation5 + $0xdd0] sm:$0xff]  ;;  %v5167_v49 = vpack.c.bf16 %v1244_v42, %v1236_v41  ;;  %v1277_v41 = vld [vmem:[#allocation5 + $0x10c8] sm:$0xff]  ;;  %v1271_v42 = vld [vmem:[#allocation5 + $0x1098] sm:$0xff] }
 0x162   : > { %v5407_v50 = vpack.c.bf16 %v1182_v44, %v1174_v39 }
 0x163   : > { %5400 = vmatpush1.bf16.msra.mxu1 %v5399_v26 }
 0x164   : > { %5148 = vmatpush1.bf16.msra.mxu0 %v5147_v53  ;;  %5402 = vmatprep.subr.bf16.mxu1 %v5401_v31  ;;  %v1190_v53 = vld [vmem:[#allocation5 + $0xe10] sm:$0xff]  ;;  %v1252_v31 = vld [vmem:[#allocation5 + $0x1000] sm:$0xff] }
 0x165   : > { %5150 = vmatprep.subr.bf16.mxu0 %v5149_v57  ;;  %v1215_v57 = vld [vmem:[#allocation5 + $0xed8] sm:$0xff]  ;;  %v5411_v58 = vpack.c.bf16 %v1198_v54, %v1190_v53  ;;  %v5171_v48 = vpack.c.bf16 %v1260_v32, %v1252_v31  ;;  %v1324_v31 = vld [vmem:[#allocation5 + $0x1240] sm:$0xff] }
 0x166   : > { %v5413_v59 = vpack.c.bf16 %v1215_v57, %v1207_v55  ;;  %v1270_v57 = vld [vmem:[#allocation5 + $0x1090] sm:$0xff] }
 0x167   : > { %5404 = vmatpush1.bf16.msra.mxu1 %v5403_v38  ;;  %v1269_v38 = vld [vmem:[#allocation5 + $0x1088] sm:$0xff] }
 0x168   : > { %5152 = vmatpush1.bf16.msra.mxu0 %v5151_v2  ;;  %5406 = vmatprep.subr.bf16.mxu1 %v5405_v43  ;;  %v1222_v2 = vld [vmem:[#allocation5 + $0xf10] sm:$0xff]  ;;  %v1279_v43 = vld [vmem:[#allocation5 + $0x10d8] sm:$0xff]  ;;  %v5173_v54 = vpack.c.bf16 %v1277_v41, %v1269_v38 }
 0x169   : > { %5154 = vmatprep.subr.bf16.mxu0 %v5153_v5  ;;  %v1247_v5 = vld [vmem:[#allocation5 + $0xfd8] sm:$0xff]  ;;  %v5419_v7 = vpack.c.bf16 %v1230_v3, %v1222_v2  ;;  %v5429_v55 = vpack.c.bf16 %v1279_v43, %v1271_v42  ;;  %v1284_v2 = vld [vmem:[#allocation5 + $0x1100] sm:$0xff] }
 0x16a   : > { %v5421_v56 = vpack.c.bf16 %v1247_v5, %v1239_v4  ;;  %v1292_v3 = vld [vmem:[#allocation5 + $0x1140] sm:$0xff]  ;;  %v5433_v5 = vpack.c.bf16 %v1295_v62, %v1287_v61  ;;  %v1343_v41 = vld [vmem:[#allocation5 + $0x12d8] sm:$0xff] }
 0x16b   : > { %5408 = vmatpush1.bf16.msra.mxu1 %v5407_v50  ;;  %v1268_v50 = vld [vmem:[#allocation5 + $0x1080] sm:$0xff] }
 0x16c   : > { %5156 = vmatpush1.bf16.msra.mxu0 %v5155_v14  ;;  %5410 = vmatprep.subr.bf16.mxu1 %v5409_v52  ;;  %v600_v14 = vlaneseq  ;;  %v1348_v62 = vld [vmem:[#allocation5 + $0x1300] sm:$0xff] }
 0x16d   : > { %5158 = vmatprep.subr.bf16.mxu0 %v5157_v16  ;;  %v7150_v16 = vld [vmem:[#allocation7] sm:$0xff] }
 0x16e   : > { %v7145_v15 = vshrl.u32 %v600_v14, 7  ;;  %v1300_v14 = vld [vmem:[#allocation5 + $0x1180] sm:$0xff] }
 0x16f   : > { %5412 = vmatpush1.bf16.msra.mxu1 %v5411_v58  ;;  %v1278_v58 = vld [vmem:[#allocation5 + $0x10d0] sm:$0xff] }
 0x170   : > { %5160 = vmatpush1.bf16.msra.mxu0 %v5159_v25  ;;  %5414 = vmatprep.subr.bf16.mxu1 %v5413_v59  ;;  %v7148_v6 = vsub.s32 0, %v7145_v15  ;;  %v7153_v17 = vsub.s32 2, %v7145_v15  ;;  %v1285_v59 = vld [vmem:[#allocation5 + $0x1108] sm:$0xff] }
 0x171   : > { %5162 = vmatprep.subr.bf16.mxu0 %v5161_v28  ;;  %v7162_v28 = vsub.s32 6, %v7145_v15  ;;  %v5177_v4 = vpack.c.bf16 %v1293_v60, %v1285_v59  ;;  %v1359_v59 = vld [vmem:[#allocation5 + $0x1358] sm:$0xff] }
 0x172   : > { %v603_v18 = vrot.slane %v7150_v16, %v7148_v6  ;;  %v607_v19 = vrot.slane %v7150_v16, %v7153_v17 }
 0x173   : > { %5416 = vmatpush1.bf16.msra.mxu1 %v5415_v0  ;;  %v615_v29 = vrot.slane %v7150_v16, %v7162_v28 }
 0x174   : > { %5164 = vmatpush1.bf16.msra.mxu0 %v5163_v37  ;;  %5418 = vmatprep.subr.bf16.mxu1 %v5417_v1  ;;  %v643_v20 = vrot.slane %v603_v18, %v7148_v6  ;;  %v647_v21 = vrot.slane %v607_v19, %v7148_v6  ;;  %v1262_v37 = vld [vmem:[#allocation5 + $0x1050] sm:$0xff]  ;;  %v5431_v1 = vpack.c.bf16 %v1278_v58, %v1270_v57  ;;  %v1308_v18 = vld [vmem:[#allocation5 + $0x11c0] sm:$0xff]  ;;  %v1351_v58 = vld [vmem:[#allocation5 + $0x1318] sm:$0xff] }
 0x175   : > { %5166 = vmatprep.subr.bf16.mxu0 %v5165_v40  ;;  %v655_v33 = vrot.slane %v615_v29, %v7148_v6  ;;  %v5181_v19 = vpack.c.bf16 %v1309_v9, %v1301_v8 }
 0x177   : > { %5420 = vmatpush1.bf16.msra.mxu1 %v5419_v7  ;;  %v1286_v7 = vld [vmem:[#allocation5 + $0x1110] sm:$0xff] }
 0x178   : > { %5168 = vmatpush1.bf16.msra.mxu0 %v5167_v49  ;;  %5422 = vmatprep.subr.bf16.mxu1 %v5421_v56  ;;  %v5427_v49 = vpack.c.bf16 %v1262_v37, %v1254_v36  ;;  %v1294_v56 = vld [vmem:[#allocation5 + $0x1150] sm:$0xff]  ;;  %v1333_v36 = vld [vmem:[#allocation5 + $0x1288] sm:$0xff] }
 0x179   : > { %5170 = vmatprep.subr.bf16.mxu0 %v5169_v51  ;;  %v1276_v51 = vld [vmem:[#allocation5 + $0x10c0] sm:$0xff] }
 0x17a   : > { %v5175_v0 = vpack.c.bf16 %v1276_v51, %v1268_v50  ;;  %v1334_v51 = vld [vmem:[#allocation5 + $0x1290] sm:$0xff] }
 0x17b   : > { %5424 = vmatpush1.bf16.msra.mxu1 %v5423_v12  ;;  %v5179_v12 = vpack.c.bf16 %v1292_v3, %v1284_v2  ;;  %v1350_v2 = vld [vmem:[#allocation5 + $0x1310] sm:$0xff] }
 0x17c   : > { %5426 = vmatprep.subr.bf16.mxu1 %v5425_v13  ;;  %v5435_v13 = vpack.c.bf16 %v1294_v56, %v1286_v7  ;;  %v1358_v3 = vld [vmem:[#allocation5 + $0x1350] sm:$0xff]  ;;  %v1367_v7 = vld [vmem:[#allocation5 + $0x1398] sm:$0xff] }
 0x17d   : > { %v1375_v56 = vld [vmem:[#allocation5 + $0x13d8] sm:$0xff]  ;;  %v5451_v9 = vpack.c.bf16 %v1358_v3, %v1350_v2 }
 0x17e   : > { %v1431_v2 = vld [vmem:[#allocation5 + $0x1598] sm:$0xff] }
 0x17f   : > { %v1439_v3 = vld [vmem:[#allocation5 + $0x15d8] sm:$0xff] }
 0x1ce   : > { %v738_v22 = vpop.f32.mrb[0].mxu0 }
 0x1cf   : > { %v739_v23 = vadd.f32 %v738_v22, %v643_v20  ;;  %v740_v24 = vpop.f32.mrb[1].mxu0  ;;  %v5437_v20 = vpack.c.bf16 %v1311_v11, %v1303_v10  ;;  %v1310_v22 = vld [vmem:[#allocation5 + $0x11d0] sm:$0xff]  ;;  %v1364_v10 = vld [vmem:[#allocation5 + $0x1380] sm:$0xff] }
 0x1d0   : > { %v741_v25 = vadd.f32 %v740_v24, %v647_v21  ;;  %v1302_v21 = vld [vmem:[#allocation5 + $0x1190] sm:$0xff]  ;;  %v1325_v24 = vld [vmem:[#allocation5 + $0x1248] sm:$0xff]  ;;  %v1372_v11 = vld [vmem:[#allocation5 + $0x13c0] sm:$0xff] }
 0x1d1   : > { %v964_v26 = vmul.f32 0.70710677, %v739_v23  ;;  %v7167_v44 = vpop.f32.mrb[0].mxu1  ;;  %v956_v45 = vmul.f32 0.5, %v739_v23  ;;  %v1317_v23 = vld [vmem:[#allocation5 + $0x1208] sm:$0xff]  ;;  %v5439_v29 = vpack.c.bf16 %v1310_v22, %v1302_v21  ;;  %v1383_v21 = vld [vmem:[#allocation5 + $0x1418] sm:$0xff] }
 0x1d2   : > { %v965_v27 = vmul.f32 0.70710677, %v741_v25  ;;  %v957_v39 = vmul.f32 0.5, %v741_v25  ;;  %v811_v46 = vpop.f32.mrb[1].mxu1  ;;  %v1319_v25 = vld [vmem:[#allocation5 + $0x1218] sm:$0xff]  ;;  %v5185_v32 = vpack.c.bf16 %v1325_v24, %v1317_v23  ;;  %v7182_v23 = vsub.s32 4, %v7145_v15 }
 0x1d3   : > { %6537 = verf.f32 %v964_v26  ;;  %v812_v52 = vadd.f32 %v811_v46, %v655_v33  ;;  %v1327_v26 = vld [vmem:[#allocation5 + $0x1258] sm:$0xff]  ;;  %v1332_v46 = vld [vmem:[#allocation5 + $0x1280] sm:$0xff]  ;;  %v5199_v24 = vpack.c.bf16 %v1372_v11, %v1364_v10  ;;  %v5469_v11 = vpack.c.bf16 %v1439_v3, %v1431_v2  ;;  %v1501_v2 = vld [vmem:[#allocation5 + $0x17c8] sm:$0xff] }
 0x1d4   : > { %6539 = verf.f32 %v965_v27  ;;  %v5183_v27 = vpack.c.bf16 %v1308_v18, %v1300_v14  ;;  %v5441_v33 = vpack.c.bf16 %v1327_v26, %v1319_v25  ;;  %v1366_v14 = vld [vmem:[#allocation5 + $0x1390] sm:$0xff]  ;;  %v1391_v22 = vld [vmem:[#allocation5 + $0x1458] sm:$0xff]  ;;  %v1380_v26 = vld [vmem:[#allocation5 + $0x1400] sm:$0xff] }
 0x1d5   : > { %v967_v63 = vmul.f32 0.70710677, %v812_v52  ;;  %v959_v37 = vmul.f32 0.5, %v812_v52  ;;  %v1357_v52 = vld [vmem:[#allocation5 + $0x1348] sm:$0xff]  ;;  %v1374_v18 = vld [vmem:[#allocation5 + $0x13d0] sm:$0xff]  ;;  %v1495_v3 = vld [vmem:[#allocation5 + $0x1798] sm:$0xff] }
 0x1d6   : > { %v5455_v25 = vpack.c.bf16 %v1374_v18, %v1366_v14  ;;  %v1445_v14 = vld [vmem:[#allocation5 + $0x1608] sm:$0xff] }
 0x1d7   : > { %6541 = verf.f32 %v967_v63  ;;  %v1356_v63 = vld [vmem:[#allocation5 + $0x1340] sm:$0xff]  ;;  %v1453_v18 = vld [vmem:[#allocation5 + $0x1648] sm:$0xff] }
 0x1d8   : > { %v5195_v8 = vpack.c.bf16 %v1356_v63, %v1348_v62  ;;  %v1414_v62 = vld [vmem:[#allocation5 + $0x1510] sm:$0xff] }
 0x1d9   : > { %v1422_v63 = vld [vmem:[#allocation5 + $0x1550] sm:$0xff] }
 0x1dd   : > { %v6538_v30 = vpop.eup %6537 }
 0x1de   : > { %v6540_v34 = vpop.eup %6539  ;;  %v980_v35 = vadd.f32 1.0, %v6538_v30  ;;  %v1316_v30 = vld [vmem:[#allocation5 + $0x1200] sm:$0xff] }
 0x1df   : > { %v981_v40 = vadd.f32 1.0, %v6540_v34  ;;  %v1318_v34 = vld [vmem:[#allocation5 + $0x1210] sm:$0xff]  ;;  %v5187_v43 = vpack.c.bf16 %v1324_v31, %v1316_v30  ;;  %v5457_v30 = vpack.c.bf16 %v1391_v22, %v1383_v21 }
 0x1e0   : > { %v7171_v53 = vmul.f32 %v980_v35, %v956_v45  ;;  %v1326_v35 = vld [vmem:[#allocation5 + $0x1250] sm:$0xff] }
 0x1e1   : > { %v7169_v47 = vmul.f32 %v981_v40, %v957_v39  ;;  %v6542_v38 = vpop.eup %6541  ;;  %v1341_v39 = vld [vmem:[#allocation5 + $0x12c8] sm:$0xff]  ;;  %v1335_v40 = vld [vmem:[#allocation5 + $0x1298] sm:$0xff]  ;;  %v5443_v45 = vpack.c.bf16 %v1326_v35, %v1318_v34  ;;  %v1382_v31 = vld [vmem:[#allocation5 + $0x1410] sm:$0xff] }
 0x1e2   : > { %v983_v42 = vadd.f32 1.0, %v6542_v38  ;;  %v5445_v50 = vpack.c.bf16 %v1343_v41, %v1335_v40  ;;  %v1405_v34 = vld [vmem:[#allocation5 + $0x14c8] sm:$0xff]  ;;  %v1399_v35 = vld [vmem:[#allocation5 + $0x1498] sm:$0xff]  ;;  %v1396_v40 = vld [vmem:[#allocation5 + $0x1480] sm:$0xff] }
 0x1e3   : > { %2156 = vmatprep.mubr.f32.mxu0 %v7169_v47  ;;  %2440 = vmatprep.mubr.f32.mxu1 %v7169_v47  ;;  %v1404_v41 = vld [vmem:[#allocation5 + $0x14c0] sm:$0xff] }
 0x1e4   : > { %2157 = vmatmul.mubr.f32.vlgmr.msra.gmra.mrb[4].mxu0 %v7171_v53  ;;  %2441 = vmatmul.mubr.f32.vlgmr.msra.gmra.mrb[4].mxu1 %v7171_v53  ;;  %v7177_v57 = vmul.f32 %v983_v42, %v959_v37  ;;  %v611_v37 = vrot.slane %v7150_v16, %v7182_v23  ;;  %v5207_v16 = vpack.c.bf16 %v1404_v41, %v1396_v40  ;;  %v1460_v41 = vld [vmem:[#allocation5 + $0x1680] sm:$0xff] }
 0x1e5   : > { %5172 = vmatpush1.bf16.msra.mxu0 %v5171_v48  ;;  %5428 = vmatpush1.bf16.msra.mxu1 %v5427_v49  ;;  %v1340_v48 = vld [vmem:[#allocation5 + $0x12c0] sm:$0xff]  ;;  %v5189_v49 = vpack.c.bf16 %v1341_v39, %v1333_v36  ;;  %v1407_v36 = vld [vmem:[#allocation5 + $0x14d8] sm:$0xff] }
 0x1e6   : > { %5174 = vmatprep.subr.bf16.mxu0 %v5173_v54  ;;  %5430 = vmatprep.subr.bf16.mxu1 %v5429_v55  ;;  %v1342_v54 = vld [vmem:[#allocation5 + $0x12d0] sm:$0xff]  ;;  %v1349_v55 = vld [vmem:[#allocation5 + $0x1308] sm:$0xff]  ;;  %v5191_v60 = vpack.c.bf16 %v1340_v48, %v1332_v46 }
 0x1e7   : > { %2227 = vmatprep.mubr.f32.mxu0 %v7177_v57  ;;  %2511 = vmatprep.mubr.f32.mxu1 %v7177_v57  ;;  %v5447_v61 = vpack.c.bf16 %v1342_v54, %v1334_v51  ;;  %v1406_v46 = vld [vmem:[#allocation5 + $0x14d0] sm:$0xff]  ;;  %v1413_v48 = vld [vmem:[#allocation5 + $0x1508] sm:$0xff]  ;;  %v1423_v51 = vld [vmem:[#allocation5 + $0x1558] sm:$0xff]  ;;  %v651_v54 = vrot.slane %v611_v37, %v7148_v6 }
 0x1e9   : > { %5176 = vmatpush1.bf16.msra.mxu0 %v5175_v0  ;;  %5432 = vmatpush1.bf16.msra.mxu1 %v5431_v1  ;;  %v5193_v0 = vpack.c.bf16 %v1357_v52, %v1349_v55  ;;  %v5449_v1 = vpack.c.bf16 %v1359_v59, %v1351_v58  ;;  %v1412_v52 = vld [vmem:[#allocation5 + $0x1500] sm:$0xff]  ;;  %v7187_v59 = vld [vmem:[#allocation7 + $0x8] sm:$0xff] }
 0x1ea   : > { %5178 = vmatprep.subr.bf16.mxu0 %v5177_v4  ;;  %5434 = vmatprep.subr.bf16.mxu1 %v5433_v5  ;;  %v1365_v4 = vld [vmem:[#allocation5 + $0x1388] sm:$0xff]  ;;  %v1420_v58 = vld [vmem:[#allocation5 + $0x1540] sm:$0xff] }
 0x1eb   : > { %v1373_v5 = vld [vmem:[#allocation5 + $0x13c8] sm:$0xff] }
 0x1ed   : > { %5180 = vmatpush1.bf16.msra.mxu0 %v5179_v12  ;;  %5436 = vmatpush1.bf16.msra.mxu1 %v5435_v13  ;;  %v5197_v12 = vpack.c.bf16 %v1373_v5, %v1365_v4  ;;  %v5453_v13 = vpack.c.bf16 %v1375_v56, %v1367_v7  ;;  %v623_v4 = vrot.slane %v7187_v59, %v7153_v17 }
 0x1ee   : > { %5182 = vmatprep.subr.bf16.mxu0 %v5181_v19  ;;  %5438 = vmatprep.subr.bf16.mxu1 %v5437_v20  ;;  %v1381_v19 = vld [vmem:[#allocation5 + $0x1408] sm:$0xff]  ;;  %v7192_v5 = vadd.f32 %v7167_v44, %v651_v54  ;;  %v5211_v7 = vpack.c.bf16 %v1420_v58, %v1412_v52  ;;  %v5467_v56 = vpack.c.bf16 %v1422_v63, %v1414_v62  ;;  %v1479_v54 = vld [vmem:[#allocation5 + $0x1718] sm:$0xff]  ;;  %v1476_v58 = vld [vmem:[#allocation5 + $0x1700] sm:$0xff] }
 0x1ef   : > { %v1389_v20 = vld [vmem:[#allocation5 + $0x1448] sm:$0xff]  ;;  %v663_v21 = vrot.slane %v623_v4, %v7148_v6  ;;  %v1478_v63 = vld [vmem:[#allocation5 + $0x1710] sm:$0xff]  ;;  %v1503_v4 = vld [vmem:[#allocation5 + $0x17d8] sm:$0xff] }
 0x1f0   : > { %v966_v44 = vmul.f32 0.70710677, %v7192_v5 }
 0x1f1   : > { %5184 = vmatpush1.bf16.msra.mxu0 %v5183_v27  ;;  %5440 = vmatpush1.bf16.msra.mxu1 %v5439_v29  ;;  %v1388_v27 = vld [vmem:[#allocation5 + $0x1440] sm:$0xff]  ;;  %v5201_v29 = vpack.c.bf16 %v1389_v20, %v1381_v19  ;;  %v1447_v19 = vld [vmem:[#allocation5 + $0x1618] sm:$0xff] }
 0x1f2   : > { %5186 = vmatprep.subr.bf16.mxu0 %v5185_v32  ;;  %5442 = vmatprep.subr.bf16.mxu1 %v5441_v33  ;;  %v1390_v32 = vld [vmem:[#allocation5 + $0x1450] sm:$0xff]  ;;  %v1397_v33 = vld [vmem:[#allocation5 + $0x1488] sm:$0xff]  ;;  %v5203_v38 = vpack.c.bf16 %v1388_v27, %v1380_v26  ;;  %v1455_v20 = vld [vmem:[#allocation5 + $0x1658] sm:$0xff]  ;;  %v5217_v27 = vpack.c.bf16 %v1453_v18, %v1445_v14  ;;  %6543 = verf.f32 %v966_v44 }
 0x1f3   : > { %v5459_v39 = vpack.c.bf16 %v1390_v32, %v1382_v31  ;;  %v5205_v42 = vpack.c.bf16 %v1405_v34, %v1397_v33  ;;  %v1452_v26 = vld [vmem:[#allocation5 + $0x1640] sm:$0xff]  ;;  %v1454_v31 = vld [vmem:[#allocation5 + $0x1650] sm:$0xff]  ;;  %v1461_v32 = vld [vmem:[#allocation5 + $0x1688] sm:$0xff] }
 0x1f4   : > { %v1469_v34 = vld [vmem:[#allocation5 + $0x16c8] sm:$0xff] }
 0x1f5   : > { %5188 = vmatpush1.bf16.msra.mxu0 %v5187_v43  ;;  %5444 = vmatpush1.bf16.msra.mxu1 %v5443_v45  ;;  %v5461_v43 = vpack.c.bf16 %v1407_v36, %v1399_v35  ;;  %v1398_v45 = vld [vmem:[#allocation5 + $0x1490] sm:$0xff]  ;;  %v1463_v35 = vld [vmem:[#allocation5 + $0x1698] sm:$0xff]  ;;  %v1509_v14 = vld [vmem:[#allocation5 + $0x1808] sm:$0xff] }
 0x1f6   : > { %5190 = vmatprep.subr.bf16.mxu0 %v5189_v49  ;;  %5446 = vmatprep.subr.bf16.mxu1 %v5445_v50  ;;  %v1421_v49 = vld [vmem:[#allocation5 + $0x1548] sm:$0xff]  ;;  %v1415_v50 = vld [vmem:[#allocation5 + $0x1518] sm:$0xff]  ;;  %v5463_v55 = vpack.c.bf16 %v1406_v46, %v1398_v45  ;;  %v1462_v46 = vld [vmem:[#allocation5 + $0x1690] sm:$0xff] }
 0x1f7   : > { %v1471_v36 = vld [vmem:[#allocation5 + $0x16d8] sm:$0xff] }
 0x1f8   : > { %v5477_v45 = vpack.c.bf16 %v1471_v36, %v1463_v35  ;;  %v1525_v35 = vld [vmem:[#allocation5 + $0x1888] sm:$0xff] }
 0x1f9   : > { %5192 = vmatpush1.bf16.msra.mxu0 %v5191_v60  ;;  %5448 = vmatpush1.bf16.msra.mxu1 %v5447_v61  ;;  %v5209_v60 = vpack.c.bf16 %v1421_v49, %v1413_v48  ;;  %v5465_v61 = vpack.c.bf16 %v1423_v51, %v1415_v50  ;;  %v1470_v48 = vld [vmem:[#allocation5 + $0x16d0] sm:$0xff]  ;;  %v1477_v49 = vld [vmem:[#allocation5 + $0x1708] sm:$0xff] }
 0x1fa   : > { %5194 = vmatprep.subr.bf16.mxu0 %v5193_v0  ;;  %5450 = vmatprep.subr.bf16.mxu1 %v5449_v1  ;;  %v1429_v0 = vld [vmem:[#allocation5 + $0x1588] sm:$0xff]  ;;  %v5479_v52 = vpack.c.bf16 %v1470_v48, %v1462_v46  ;;  %v1524_v46 = vld [vmem:[#allocation5 + $0x1880] sm:$0xff] }
 0x1fb   : > { %v1437_v1 = vld [vmem:[#allocation5 + $0x15c8] sm:$0xff]  ;;  %v1532_v48 = vld [vmem:[#allocation5 + $0x18c0] sm:$0xff] }
 0x1fc   : > { %v5213_v10 = vpack.c.bf16 %v1437_v1, %v1429_v0  ;;  %v1485_v51 = vld [vmem:[#allocation5 + $0x1748] sm:$0xff]  ;;  %v1486_v0 = vld [vmem:[#allocation5 + $0x1750] sm:$0xff]  ;;  %v6544_v18 = vpop.eup %6543 }
 0x1fd   : > { %5196 = vmatpush1.bf16.msra.mxu0 %v5195_v8  ;;  %5452 = vmatpush1.bf16.msra.mxu1 %v5451_v9  ;;  %v1428_v8 = vld [vmem:[#allocation5 + $0x1580] sm:$0xff]  ;;  %v1493_v1 = vld [vmem:[#allocation5 + $0x1788] sm:$0xff] }
 0x1fe   : > { %5198 = vmatprep.subr.bf16.mxu0 %v5197_v12  ;;  %5454 = vmatprep.subr.bf16.mxu1 %v5453_v13  ;;  %v1436_v9 = vld [vmem:[#allocation5 + $0x15c0] sm:$0xff]  ;;  %v1430_v12 = vld [vmem:[#allocation5 + $0x1590] sm:$0xff]  ;;  %v1533_v36 = vld [vmem:[#allocation5 + $0x18c8] sm:$0xff] }
 0x1ff   : > { %v1438_v13 = vld [vmem:[#allocation5 + $0x15d0] sm:$0xff]  ;;  %v5215_v22 = vpack.c.bf16 %v1436_v9, %v1428_v8  ;;  %v1492_v8 = vld [vmem:[#allocation5 + $0x1780] sm:$0xff] }
 0x200   : > { %v1500_v9 = vld [vmem:[#allocation5 + $0x17c0] sm:$0xff] }
 0x201   : > { %5200 = vmatpush1.bf16.msra.mxu0 %v5199_v24  ;;  %5456 = vmatpush1.bf16.msra.mxu1 %v5455_v25  ;;  %v5471_v24 = vpack.c.bf16 %v1438_v13, %v1430_v12  ;;  %v1444_v25 = vld [vmem:[#allocation5 + $0x1600] sm:$0xff]  ;;  %v1494_v12 = vld [vmem:[#allocation5 + $0x1790] sm:$0xff]  ;;  %v5231_v44 = vpack.c.bf16 %v1500_v9, %v1492_v8  ;;  %v1559_v8 = vld [vmem:[#allocation5 + $0x1998] sm:$0xff] }
 0x202   : > { %5202 = vmatprep.subr.bf16.mxu0 %v5201_v29  ;;  %5458 = vmatprep.subr.bf16.mxu1 %v5457_v30  ;;  %v5473_v29 = vpack.c.bf16 %v1455_v20, %v1447_v19  ;;  %v1446_v30 = vld [vmem:[#allocation5 + $0x1610] sm:$0xff]  ;;  %v1517_v19 = vld [vmem:[#allocation5 + $0x1848] sm:$0xff]  ;;  %v1511_v20 = vld [vmem:[#allocation5 + $0x1818] sm:$0xff] }
 0x203   : > { %v5475_v40 = vpack.c.bf16 %v1454_v31, %v1446_v30  ;;  %v1502_v13 = vld [vmem:[#allocation5 + $0x17d0] sm:$0xff]  ;;  %v5233_v30 = vpack.c.bf16 %v1517_v19, %v1509_v14  ;;  %v1567_v9 = vld [vmem:[#allocation5 + $0x19d8] sm:$0xff] }
 0x204   : > { %v1558_v19 = vld [vmem:[#allocation5 + $0x1990] sm:$0xff] }
 0x205   : > { %5204 = vmatpush1.bf16.msra.mxu0 %v5203_v38  ;;  %5460 = vmatpush1.bf16.msra.mxu1 %v5459_v39  ;;  %v5219_v39 = vpack.c.bf16 %v1452_v26, %v1444_v25  ;;  %v1516_v25 = vld [vmem:[#allocation5 + $0x1840] sm:$0xff] }
 0x206   : > { %5206 = vmatprep.subr.bf16.mxu0 %v5205_v42  ;;  %5462 = vmatprep.subr.bf16.mxu1 %v5461_v43  ;;  %v1468_v42 = vld [vmem:[#allocation5 + $0x16c0] sm:$0xff]  ;;  %v5221_v43 = vpack.c.bf16 %v1469_v34, %v1461_v32  ;;  %v1510_v32 = vld [vmem:[#allocation5 + $0x1810] sm:$0xff] }
 0x207   : > { %v1518_v34 = vld [vmem:[#allocation5 + $0x1850] sm:$0xff] }
 0x209   : > { %5208 = vmatpush1.bf16.msra.mxu0 %v5207_v16  ;;  %5464 = vmatpush1.bf16.msra.mxu1 %v5463_v55  ;;  %v1487_v16 = vld [vmem:[#allocation5 + $0x1758] sm:$0xff]  ;;  %v5223_v55 = vpack.c.bf16 %v1468_v42, %v1460_v41 }
 0x20a   : > { %5210 = vmatprep.subr.bf16.mxu0 %v5209_v60  ;;  %5466 = vmatprep.subr.bf16.mxu1 %v5465_v61  ;;  %v1484_v60 = vld [vmem:[#allocation5 + $0x1740] sm:$0xff]  ;;  %v5225_v61 = vpack.c.bf16 %v1485_v51, %v1477_v49  ;;  %v5481_v62 = vpack.c.bf16 %v1487_v16, %v1479_v54  ;;  %v1526_v54 = vld [vmem:[#allocation5 + $0x1890] sm:$0xff] }
 0x20b   : > { %v1534_v16 = vld [vmem:[#allocation5 + $0x18d0] sm:$0xff] }
 0x20d   : > { %5212 = vmatpush1.bf16.msra.mxu0 %v5211_v7  ;;  %5468 = vmatpush1.bf16.msra.mxu1 %v5467_v56  ;;  %v5227_v7 = vpack.c.bf16 %v1484_v60, %v1476_v58  ;;  %v5483_v56 = vpack.c.bf16 %v1486_v0, %v1478_v63  ;;  %v1551_v58 = vld [vmem:[#allocation5 + $0x1958] sm:$0xff]  ;;  %v1540_v63 = vld [vmem:[#allocation5 + $0x1900] sm:$0xff] }
 0x20e   : > { %5214 = vmatprep.subr.bf16.mxu0 %v5213_v10  ;;  %5470 = vmatprep.subr.bf16.mxu1 %v5469_v11  ;;  %v7196_v33 = vpop.f32.mrb[2].mxu0  ;;  %v5229_v10 = vpack.c.bf16 %v1501_v2, %v1493_v1  ;;  %v5485_v11 = vpack.c.bf16 %v1503_v4, %v1495_v3  ;;  %v1548_v0 = vld [vmem:[#allocation5 + $0x1940] sm:$0xff]  ;;  %v1542_v3 = vld [vmem:[#allocation5 + $0x1910] sm:$0xff] }
 0x20f   : > { %v882_v37 = vpop.f32.mrb[3].mxu0  ;;  %v1550_v4 = vld [vmem:[#allocation5 + $0x1950] sm:$0xff] }
 0x210   : > { %v7198_v38 = vadd.f32 %v882_v37, %v663_v21  ;;  %v1519_v21 = vld [vmem:[#allocation5 + $0x1858] sm:$0xff] }
 0x211   : > { %5216 = vmatpush1.bf16.msra.mxu0 %v5215_v22  ;;  %5472 = vmatpush1.bf16.msra.mxu1 %v5471_v24  ;;  %v5487_v22 = vpack.c.bf16 %v1502_v13, %v1494_v12  ;;  %v1508_v24 = vld [vmem:[#allocation5 + $0x1800] sm:$0xff]  ;;  %v5489_v31 = vpack.c.bf16 %v1519_v21, %v1511_v20  ;;  %v1527_v37 = vld [vmem:[#allocation5 + $0x1898] sm:$0xff]  ;;  %v7203_v42 = vpop.f32.mrb[2].mxu1  ;;  %v1566_v20 = vld [vmem:[#allocation5 + $0x19d0] sm:$0xff] }
 0x212   : > { %5218 = vmatprep.subr.bf16.mxu0 %v5217_v27  ;;  %5474 = vmatprep.subr.bf16.mxu1 %v5473_v29  ;;  %v969_v50 = vmul.f32 0.70710677, %v7198_v38  ;;  %v958_v27 = vmul.f32 0.5, %v7192_v5  ;;  %v982_v29 = vadd.f32 1.0, %v6544_v18  ;;  %v5235_v5 = vpack.c.bf16 %v1516_v25, %v1508_v24  ;;  %v1556_v12 = vld [vmem:[#allocation5 + $0x1980] sm:$0xff]  ;;  %v1573_v21 = vld [vmem:[#allocation5 + $0x1a08] sm:$0xff] }
 0x213   : > { %v1564_v13 = vld [vmem:[#allocation5 + $0x19c0] sm:$0xff]  ;;  %v5501_v18 = vpack.c.bf16 %v1567_v9, %v1559_v8  ;;  %v1583_v24 = vld [vmem:[#allocation5 + $0x1a58] sm:$0xff] }
 0x214   : > { %6545 = verf.f32 %v969_v50  ;;  %v7207_v49 = vmul.f32 %v982_v29, %v958_v27  ;;  %v5237_v50 = vpack.c.bf16 %v1533_v36, %v1525_v35  ;;  %v5247_v25 = vpack.c.bf16 %v1564_v13, %v1556_v12  ;;  %v1572_v27 = vld [vmem:[#allocation5 + $0x1a00] sm:$0xff]  ;;  %v1589_v35 = vld [vmem:[#allocation5 + $0x1a88] sm:$0xff] }
 0x215   : > { %5220 = vmatpush1.bf16.msra.mxu0 %v5219_v39  ;;  %5476 = vmatpush1.bf16.msra.mxu1 %v5475_v40  ;;  %v1535_v39 = vld [vmem:[#allocation5 + $0x18d8] sm:$0xff]  ;;  %v961_v40 = vmul.f32 0.5, %v7198_v38  ;;  %v1541_v38 = vld [vmem:[#allocation5 + $0x1908] sm:$0xff]  ;;  %v1580_v29 = vld [vmem:[#allocation5 + $0x1a40] sm:$0xff] }
 0x216   : > { %5222 = vmatprep.subr.bf16.mxu0 %v5221_v43  ;;  %5478 = vmatprep.subr.bf16.mxu1 %v5477_v45  ;;  %v7205_v43 = vpop.f32.mrb[3].mxu1  ;;  %v5491_v45 = vpack.c.bf16 %v1518_v34, %v1510_v32  ;;  %v5493_v51 = vpack.c.bf16 %v1535_v39, %v1527_v37  ;;  %v1574_v32 = vld [vmem:[#allocation5 + $0x1a10] sm:$0xff]  ;;  %v1597_v36 = vld [vmem:[#allocation5 + $0x1ac8] sm:$0xff]  ;;  %v1591_v37 = vld [vmem:[#allocation5 + $0x1a98] sm:$0xff] }
 0x217   : > { %v1582_v34 = vld [vmem:[#allocation5 + $0x1a50] sm:$0xff]  ;;  %v1599_v39 = vld [vmem:[#allocation5 + $0x1ad8] sm:$0xff] }
 0x219   : > { %5224 = vmatpush1.bf16.msra.mxu0 %v5223_v55  ;;  %5480 = vmatpush1.bf16.msra.mxu1 %v5479_v52  ;;  %v1549_v55 = vld [vmem:[#allocation5 + $0x1948] sm:$0xff]  ;;  %v1543_v52 = vld [vmem:[#allocation5 + $0x1918] sm:$0xff] }
 0x21a   : > { %5226 = vmatprep.subr.bf16.mxu0 %v5225_v61  ;;  %5482 = vmatprep.subr.bf16.mxu1 %v5481_v62  ;;  %v5239_v61 = vpack.c.bf16 %v1532_v48, %v1524_v46  ;;  %v5495_v62 = vpack.c.bf16 %v1534_v16, %v1526_v54  ;;  %v5241_v1 = vpack.c.bf16 %v1549_v55, %v1541_v38  ;;  %v1605_v54 = vld [vmem:[#allocation5 + $0x1b08] sm:$0xff]  ;;  %v1607_v38 = vld [vmem:[#allocation5 + $0x1b18] sm:$0xff] }
 0x21b   : > { %v5497_v2 = vpack.c.bf16 %v1551_v58, %v1543_v52  ;;  %v5253_v46 = vpack.c.bf16 %v1597_v36, %v1589_v35  ;;  %v5509_v48 = vpack.c.bf16 %v1599_v39, %v1591_v37  ;;  %v1613_v16 = vld [vmem:[#allocation5 + $0x1b48] sm:$0xff]  ;;  %v1615_v55 = vld [vmem:[#allocation5 + $0x1b58] sm:$0xff]  ;;  %v619_v37 = vrot.slane %v7187_v59, %v7148_v6 }
 0x21c   : > { %v1655_v35 = vld [vmem:[#allocation5 + $0x1c98] sm:$0xff] }
 0x21d   : > { %5228 = vmatpush1.bf16.msra.mxu0 %v5227_v7  ;;  %5484 = vmatpush1.bf16.msra.mxu1 %v5483_v56  ;;  %v1557_v7 = vld [vmem:[#allocation5 + $0x1988] sm:$0xff]  ;;  %v1663_v36 = vld [vmem:[#allocation5 + $0x1cd8] sm:$0xff] }
 0x21e   : > { %v6546_v26 = vpop.eup %6545  ;;  %5230 = vmatprep.subr.bf16.mxu0 %v5229_v10  ;;  %5486 = vmatprep.subr.bf16.mxu1 %v5485_v11  ;;  %v1565_v56 = vld [vmem:[#allocation5 + $0x19c8] sm:$0xff]  ;;  %v5243_v10 = vpack.c.bf16 %v1548_v0, %v1540_v63  ;;  %v5499_v11 = vpack.c.bf16 %v1550_v4, %v1542_v3  ;;  %v5257_v63 = vpack.c.bf16 %v1613_v16, %v1605_v54 }
 0x21f   : > { %v985_v41 = vadd.f32 1.0, %v6546_v26  ;;  %v5245_v14 = vpack.c.bf16 %v1565_v56, %v1557_v7  ;;  %v5503_v26 = vpack.c.bf16 %v1566_v20, %v1558_v19  ;;  %v5513_v0 = vpack.c.bf16 %v1615_v55, %v1607_v38  ;;  %v1621_v3 = vld [vmem:[#allocation5 + $0x1b88] sm:$0xff]  ;;  %v1623_v7 = vld [vmem:[#allocation5 + $0x1b98] sm:$0xff] }
 0x220   : > { %v1629_v4 = vld [vmem:[#allocation5 + $0x1bc8] sm:$0xff]  ;;  %v1631_v56 = vld [vmem:[#allocation5 + $0x1bd8] sm:$0xff]  ;;  %v631_v54 = vrot.slane %v7187_v59, %v7162_v28 }
 0x221   : > { %5232 = vmatpush1.bf16.msra.mxu0 %v5231_v44  ;;  %5488 = vmatpush1.bf16.msra.mxu1 %v5487_v22  ;;  %v7209_v60 = vmul.f32 %v985_v41, %v961_v40  ;;  %v1581_v44 = vld [vmem:[#allocation5 + $0x1a48] sm:$0xff]  ;;  %v1575_v22 = vld [vmem:[#allocation5 + $0x1a18] sm:$0xff]  ;;  %v5251_v40 = vpack.c.bf16 %v1580_v29, %v1572_v27  ;;  %v5507_v41 = vpack.c.bf16 %v1582_v34, %v1574_v32 }
 0x222   : > { %5234 = vmatprep.subr.bf16.mxu0 %v5233_v30  ;;  %5490 = vmatprep.subr.bf16.mxu1 %v5489_v31  ;;  %v5249_v30 = vpack.c.bf16 %v1581_v44, %v1573_v21  ;;  %v5505_v31 = vpack.c.bf16 %v1583_v24, %v1575_v22  ;;  %v5261_v12 = vpack.c.bf16 %v1629_v4, %v1621_v3  ;;  %v1637_v19 = vld [vmem:[#allocation5 + $0x1c08] sm:$0xff]  ;;  %v1639_v21 = vld [vmem:[#allocation5 + $0x1c18] sm:$0xff]  ;;  %v1678_v3 = vld [vmem:[#allocation5 + $0x1d50] sm:$0xff] }
 0x223   : > { %v5517_v13 = vpack.c.bf16 %v1631_v56, %v1623_v7  ;;  %v1645_v20 = vld [vmem:[#allocation5 + $0x1c48] sm:$0xff]  ;;  %v1647_v44 = vld [vmem:[#allocation5 + $0x1c58] sm:$0xff]  ;;  %v671_v59 = vrot.slane %v631_v54, %v7148_v6  ;;  %v1726_v54 = vld [vmem:[#allocation5 + $0x1ed0] sm:$0xff] }
 0x224   : > { %2228 = vmatmul.mubr.f32.vlgmr.msra.gmra.mrb[4].mxu0 %v7207_v49  ;;  %2512 = vmatmul.mubr.f32.vlgmr.msra.gmra.mrb[4].mxu1 %v7207_v49  ;;  %v5265_v27 = vpack.c.bf16 %v1645_v20, %v1637_v19  ;;  %v5521_v29 = vpack.c.bf16 %v1647_v44, %v1639_v21  ;;  %v1653_v32 = vld [vmem:[#allocation5 + $0x1c88] sm:$0xff]  ;;  %v1671_v38 = vld [vmem:[#allocation5 + $0x1d18] sm:$0xff]  ;;  %v1686_v19 = vld [vmem:[#allocation5 + $0x1d90] sm:$0xff] }
 0x225   : > { %5236 = vmatpush1.bf16.msra.mxu0 %v5235_v5  ;;  %5492 = vmatpush1.bf16.msra.mxu1 %v5491_v45  ;;  %v1588_v5 = vld [vmem:[#allocation5 + $0x1a80] sm:$0xff]  ;;  %v1661_v34 = vld [vmem:[#allocation5 + $0x1cc8] sm:$0xff]  ;;  %v1679_v55 = vld [vmem:[#allocation5 + $0x1d58] sm:$0xff]  ;;  %v7225_v44 = vadd.f32 %v7205_v43, %v671_v59 }
 0x226   : > { %5238 = vmatprep.subr.bf16.mxu0 %v5237_v50  ;;  %5494 = vmatprep.subr.bf16.mxu1 %v5493_v51  ;;  %v1596_v45 = vld [vmem:[#allocation5 + $0x1ac0] sm:$0xff]  ;;  %v1590_v50 = vld [vmem:[#allocation5 + $0x1a90] sm:$0xff]  ;;  %v1677_v16 = vld [vmem:[#allocation5 + $0x1d48] sm:$0xff] }
 0x227   : > { %2298 = vmatprep.mubr.f32.mxu0 %v7209_v60  ;;  %2582 = vmatprep.mubr.f32.mxu1 %v7209_v60  ;;  %v1598_v51 = vld [vmem:[#allocation5 + $0x1ad0] sm:$0xff]  ;;  %v5255_v52 = vpack.c.bf16 %v1596_v45, %v1588_v5  ;;  %v1660_v5 = vld [vmem:[#allocation5 + $0x1cc0] sm:$0xff]  ;;  %v5269_v45 = vpack.c.bf16 %v1661_v34, %v1653_v32  ;;  %v1685_v4 = vld [vmem:[#allocation5 + $0x1d88] sm:$0xff]  ;;  %v971_v43 = vmul.f32 0.70710677, %v7225_v44 }
 0x228   : > { %v5511_v58 = vpack.c.bf16 %v1598_v51, %v1590_v50  ;;  %v1662_v50 = vld [vmem:[#allocation5 + $0x1cd0] sm:$0xff]  ;;  %v1669_v51 = vld [vmem:[#allocation5 + $0x1d08] sm:$0xff]  ;;  %v1687_v56 = vld [vmem:[#allocation5 + $0x1d98] sm:$0xff] }
 0x229   : > { %5240 = vmatpush1.bf16.msra.mxu0 %v5239_v61  ;;  %5496 = vmatpush1.bf16.msra.mxu1 %v5495_v62  ;;  %v1604_v61 = vld [vmem:[#allocation5 + $0x1b00] sm:$0xff]  ;;  %v1693_v7 = vld [vmem:[#allocation5 + $0x1dc8] sm:$0xff]  ;;  %v1694_v20 = vld [vmem:[#allocation5 + $0x1dd0] sm:$0xff] }
 0x22a   : > { %5242 = vmatprep.subr.bf16.mxu0 %v5241_v1  ;;  %5498 = vmatprep.subr.bf16.mxu1 %v5497_v2  ;;  %v1612_v62 = vld [vmem:[#allocation5 + $0x1b40] sm:$0xff]  ;;  %v1606_v1 = vld [vmem:[#allocation5 + $0x1b10] sm:$0xff]  ;;  %v1701_v21 = vld [vmem:[#allocation5 + $0x1e08] sm:$0xff] }
 0x22b   : > { %v1614_v2 = vld [vmem:[#allocation5 + $0x1b50] sm:$0xff]  ;;  %v5259_v8 = vpack.c.bf16 %v1612_v62, %v1604_v61  ;;  %v1668_v62 = vld [vmem:[#allocation5 + $0x1d00] sm:$0xff]  ;;  %v1757_v59 = vld [vmem:[#allocation5 + $0x1fc8] sm:$0xff] }
 0x22c   : > { %v5515_v9 = vpack.c.bf16 %v1614_v2, %v1606_v1  ;;  %v5529_v1 = vpack.c.bf16 %v1679_v55, %v1671_v38  ;;  %v1670_v2 = vld [vmem:[#allocation5 + $0x1d10] sm:$0xff]  ;;  %v1741_v38 = vld [vmem:[#allocation5 + $0x1f48] sm:$0xff]  ;;  %v1735_v55 = vld [vmem:[#allocation5 + $0x1f18] sm:$0xff] }
 0x22d   : > { %5244 = vmatpush1.bf16.msra.mxu0 %v5243_v10  ;;  %5500 = vmatpush1.bf16.msra.mxu1 %v5499_v11  ;;  %v1620_v10 = vld [vmem:[#allocation5 + $0x1b80] sm:$0xff]  ;;  %v1702_v34 = vld [vmem:[#allocation5 + $0x1e10] sm:$0xff] }
 0x22e   : > { %5246 = vmatprep.subr.bf16.mxu0 %v5245_v14  ;;  %5502 = vmatprep.subr.bf16.mxu1 %v5501_v18  ;;  %v1628_v11 = vld [vmem:[#allocation5 + $0x1bc0] sm:$0xff]  ;;  %v1622_v14 = vld [vmem:[#allocation5 + $0x1b90] sm:$0xff] }
 0x22f   : > { %v1630_v18 = vld [vmem:[#allocation5 + $0x1bd0] sm:$0xff]  ;;  %v5263_v22 = vpack.c.bf16 %v1628_v11, %v1620_v10  ;;  %v5531_v11 = vpack.c.bf16 %v1678_v3, %v1670_v2 }
 0x230   : > { %v5519_v24 = vpack.c.bf16 %v1630_v18, %v1622_v14  ;;  %v5277_v14 = vpack.c.bf16 %v1693_v7, %v1685_v4  ;;  %v1734_v2 = vld [vmem:[#allocation5 + $0x1f10] sm:$0xff]  ;;  %v1749_v4 = vld [vmem:[#allocation5 + $0x1f88] sm:$0xff]  ;;  %v1751_v7 = vld [vmem:[#allocation5 + $0x1f98] sm:$0xff] }
 0x231   : > { %5248 = vmatpush1.bf16.msra.mxu0 %v5247_v25  ;;  %5504 = vmatpush1.bf16.msra.mxu1 %v5503_v26  ;;  %v1636_v25 = vld [vmem:[#allocation5 + $0x1c00] sm:$0xff]  ;;  %v1742_v3 = vld [vmem:[#allocation5 + $0x1f50] sm:$0xff] }
 0x232   : > { %5250 = vmatprep.subr.bf16.mxu0 %v5249_v30  ;;  %5506 = vmatprep.subr.bf16.mxu1 %v5505_v31  ;;  %v1644_v26 = vld [vmem:[#allocation5 + $0x1c40] sm:$0xff]  ;;  %v1638_v30 = vld [vmem:[#allocation5 + $0x1c10] sm:$0xff] }
 0x233   : > { %v1646_v31 = vld [vmem:[#allocation5 + $0x1c50] sm:$0xff]  ;;  %v5267_v39 = vpack.c.bf16 %v1644_v26, %v1636_v25 }
 0x235   : > { %5252 = vmatpush1.bf16.msra.mxu0 %v5251_v40  ;;  %5508 = vmatpush1.bf16.msra.mxu1 %v5507_v41  ;;  %v5523_v40 = vpack.c.bf16 %v1646_v31, %v1638_v30  ;;  %v1652_v41 = vld [vmem:[#allocation5 + $0x1c80] sm:$0xff] }
 0x236   : > { %5254 = vmatprep.subr.bf16.mxu0 %v5253_v46  ;;  %5510 = vmatprep.subr.bf16.mxu1 %v5509_v48  ;;  %v5525_v46 = vpack.c.bf16 %v1663_v36, %v1655_v35  ;;  %v1654_v48 = vld [vmem:[#allocation5 + $0x1c90] sm:$0xff]  ;;  %v1708_v30 = vld [vmem:[#allocation5 + $0x1e40] sm:$0xff]  ;;  %v1717_v36 = vld [vmem:[#allocation5 + $0x1e88] sm:$0xff] }
 0x237   : > { %v5527_v61 = vpack.c.bf16 %v1662_v50, %v1654_v48  ;;  %v1710_v35 = vld [vmem:[#allocation5 + $0x1e50] sm:$0xff] }
 0x239   : > { %5256 = vmatpush1.bf16.msra.mxu0 %v5255_v52  ;;  %5512 = vmatpush1.bf16.msra.mxu1 %v5511_v58  ;;  %v659_v52 = vrot.slane %v619_v37, %v7148_v6  ;;  %v5271_v58 = vpack.c.bf16 %v1660_v5, %v1652_v41  ;;  %v1725_v37 = vld [vmem:[#allocation5 + $0x1ec8] sm:$0xff]  ;;  %v5539_v5 = vpack.c.bf16 %v1710_v35, %v1702_v34 }
 0x23a   : > { %5258 = vmatprep.subr.bf16.mxu0 %v5257_v63  ;;  %5514 = vmatprep.subr.bf16.mxu1 %v5513_v0  ;;  %v1676_v63 = vld [vmem:[#allocation5 + $0x1d40] sm:$0xff]  ;;  %v5273_v0 = vpack.c.bf16 %v1677_v16, %v1669_v51  ;;  %v5285_v48 = vpack.c.bf16 %v1725_v37, %v1717_v36  ;;  %v1718_v51 = vld [vmem:[#allocation5 + $0x1e90] sm:$0xff]  ;;  %v1733_v16 = vld [vmem:[#allocation5 + $0x1f08] sm:$0xff] }
 0x23b   : > { %v5275_v10 = vpack.c.bf16 %v1676_v63, %v1668_v62  ;;  %v1732_v62 = vld [vmem:[#allocation5 + $0x1f00] sm:$0xff]  ;;  %v1766_v36 = vld [vmem:[#allocation5 + $0x2010] sm:$0xff]  ;;  %v1781_v37 = vld [vmem:[#allocation5 + $0x2088] sm:$0xff] }
 0x23c   : > { %v1740_v63 = vld [vmem:[#allocation5 + $0x1f40] sm:$0xff] }
 0x23d   : > { %5260 = vmatpush1.bf16.msra.mxu0 %v5259_v8  ;;  %5516 = vmatpush1.bf16.msra.mxu1 %v5515_v9  ;;  %v1695_v8 = vld [vmem:[#allocation5 + $0x1dd8] sm:$0xff]  ;;  %v7222_v9 = vadd.f32 %v7196_v33, %v659_v52 }
 0x23e   : > { %5262 = vmatprep.subr.bf16.mxu0 %v5261_v12  ;;  %5518 = vmatprep.subr.bf16.mxu1 %v5517_v13  ;;  %v1684_v12 = vld [vmem:[#allocation5 + $0x1d80] sm:$0xff]  ;;  %v5533_v18 = vpack.c.bf16 %v1695_v8, %v1687_v56  ;;  %v1711_v33 = vld [vmem:[#allocation5 + $0x1e58] sm:$0xff]  ;;  %v5291_v8 = vpack.c.bf16 %v1740_v63, %v1732_v62 }
 0x23f   : > { %v1692_v13 = vld [vmem:[#allocation5 + $0x1dc0] sm:$0xff]  ;;  %v968_v25 = vmul.f32 0.70710677, %v7222_v9  ;;  %v1743_v52 = vld [vmem:[#allocation5 + $0x1f58] sm:$0xff] }
 0x240   : > { %v5279_v26 = vpack.c.bf16 %v1692_v13, %v1684_v12  ;;  %v1759_v56 = vld [vmem:[#allocation5 + $0x1fd8] sm:$0xff]  ;;  %v1756_v12 = vld [vmem:[#allocation5 + $0x1fc0] sm:$0xff]  ;;  %v5293_v13 = vpack.c.bf16 %v1757_v59, %v1749_v4  ;;  %v1798_v59 = vld [vmem:[#allocation5 + $0x2110] sm:$0xff] }
 0x241   : > { %5264 = vmatpush1.bf16.msra.mxu0 %v5263_v22  ;;  %5520 = vmatpush1.bf16.msra.mxu1 %v5519_v24  ;;  %v1709_v22 = vld [vmem:[#allocation5 + $0x1e48] sm:$0xff]  ;;  %v1703_v24 = vld [vmem:[#allocation5 + $0x1e18] sm:$0xff]  ;;  %6547 = verf.f32 %v968_v25 }
 0x242   : > { %5266 = vmatprep.subr.bf16.mxu0 %v5265_v27  ;;  %5522 = vmatprep.subr.bf16.mxu1 %v5521_v29  ;;  %v5535_v27 = vpack.c.bf16 %v1694_v20, %v1686_v19  ;;  %v1700_v29 = vld [vmem:[#allocation5 + $0x1e00] sm:$0xff]  ;;  %v5281_v31 = vpack.c.bf16 %v1709_v22, %v1701_v21  ;;  %v5537_v32 = vpack.c.bf16 %v1711_v33, %v1703_v24  ;;  %6549 = verf.f32 %v971_v43  ;;  %v1758_v19 = vld [vmem:[#allocation5 + $0x1fd0] sm:$0xff]  ;;  %v1765_v20 = vld [vmem:[#allocation5 + $0x2008] sm:$0xff] }
 0x243   : > { %v5283_v41 = vpack.c.bf16 %v1708_v30, %v1700_v29  ;;  %v1773_v22 = vld [vmem:[#allocation5 + $0x2048] sm:$0xff]  ;;  %v1767_v24 = vld [vmem:[#allocation5 + $0x2018] sm:$0xff]  ;;  %v1764_v29 = vld [vmem:[#allocation5 + $0x2000] sm:$0xff] }
 0x244   : > { %v1775_v33 = vld [vmem:[#allocation5 + $0x2058] sm:$0xff]  ;;  %v1772_v30 = vld [vmem:[#allocation5 + $0x2040] sm:$0xff]  ;;  %v5297_v34 = vpack.c.bf16 %v1773_v22, %v1765_v20  ;;  %v1774_v43 = vld [vmem:[#allocation5 + $0x2050] sm:$0xff] }
 0x245   : > { %5268 = vmatpush1.bf16.msra.mxu0 %v5267_v39  ;;  %5524 = vmatpush1.bf16.msra.mxu1 %v5523_v40  ;;  %v1719_v39 = vld [vmem:[#allocation5 + $0x1e98] sm:$0xff]  ;;  %v5553_v35 = vpack.c.bf16 %v1775_v33, %v1767_v24  ;;  %v1822_v22 = vld [vmem:[#allocation5 + $0x21d0] sm:$0xff]  ;;  %v1829_v24 = vld [vmem:[#allocation5 + $0x2208] sm:$0xff] }
 0x246   : > { %5270 = vmatprep.subr.bf16.mxu0 %v5269_v45  ;;  %5526 = vmatprep.subr.bf16.mxu1 %v5525_v46  ;;  %v1727_v40 = vld [vmem:[#allocation5 + $0x1ed8] sm:$0xff]  ;;  %v1716_v45 = vld [vmem:[#allocation5 + $0x1e80] sm:$0xff]  ;;  %v1837_v33 = vld [vmem:[#allocation5 + $0x2248] sm:$0xff] }
 0x247   : > { %v1724_v46 = vld [vmem:[#allocation5 + $0x1ec0] sm:$0xff]  ;;  %v5541_v50 = vpack.c.bf16 %v1727_v40, %v1719_v39  ;;  %v1789_v39 = vld [vmem:[#allocation5 + $0x20c8] sm:$0xff]  ;;  %v1783_v40 = vld [vmem:[#allocation5 + $0x2098] sm:$0xff] }
 0x248   : > { %v1807_v62 = vld [vmem:[#allocation5 + $0x2158] sm:$0xff] }
 0x249   : > { %5272 = vmatpush1.bf16.msra.mxu0 %v5271_v58  ;;  %5528 = vmatpush1.bf16.msra.mxu1 %v5527_v61  ;;  %v5287_v58 = vpack.c.bf16 %v1724_v46, %v1716_v45  ;;  %v5543_v61 = vpack.c.bf16 %v1726_v54, %v1718_v51  ;;  %v5299_v46 = vpack.c.bf16 %v1772_v30, %v1764_v29  ;;  %v1828_v30 = vld [vmem:[#allocation5 + $0x2200] sm:$0xff] }
 0x24a   : > { %5274 = vmatprep.subr.bf16.mxu0 %v5273_v0  ;;  %5530 = vmatprep.subr.bf16.mxu1 %v5529_v1  ;;  %v5289_v0 = vpack.c.bf16 %v1741_v38, %v1733_v16  ;;  %v5545_v1 = vpack.c.bf16 %v1743_v52, %v1735_v55  ;;  %v5301_v54 = vpack.c.bf16 %v1789_v39, %v1781_v37  ;;  %v1782_v38 = vld [vmem:[#allocation5 + $0x2090] sm:$0xff]  ;;  %v1797_v52 = vld [vmem:[#allocation5 + $0x2108] sm:$0xff]  ;;  %v1847_v39 = vld [vmem:[#allocation5 + $0x2298] sm:$0xff] }
 0x24b   : > { %v6548_v21 = vpop.eup %6547  ;;  %v1790_v55 = vld [vmem:[#allocation5 + $0x20d0] sm:$0xff]  ;;  %v1853_v37 = vld [vmem:[#allocation5 + $0x22c8] sm:$0xff] }
 0x24c   : > { %v6550_v25 = vpop.eup %6549 }
 0x24d   : > { %5276 = vmatpush1.bf16.msra.mxu0 %v5275_v10  ;;  %5532 = vmatpush1.bf16.msra.mxu1 %v5531_v11  ;;  %v5547_v10 = vpack.c.bf16 %v1742_v3, %v1734_v2  ;;  %v1748_v11 = vld [vmem:[#allocation5 + $0x1f80] sm:$0xff]  ;;  %v987_v45 = vadd.f32 1.0, %v6550_v25  ;;  %v1831_v25 = vld [vmem:[#allocation5 + $0x2218] sm:$0xff] }
 0x24e   : > { %5278 = vmatprep.subr.bf16.mxu0 %v5277_v14  ;;  %5534 = vmatprep.subr.bf16.mxu1 %v5533_v18  ;;  %v5549_v14 = vpack.c.bf16 %v1759_v56, %v1751_v7  ;;  %v1750_v18 = vld [vmem:[#allocation5 + $0x1f90] sm:$0xff]  ;;  %v1804_v2 = vld [vmem:[#allocation5 + $0x2140] sm:$0xff]  ;;  %v1813_v56 = vld [vmem:[#allocation5 + $0x2188] sm:$0xff] }
 0x24f   : > { %v1806_v7 = vld [vmem:[#allocation5 + $0x2150] sm:$0xff] }
 0x251   : > { %5280 = vmatpush1.bf16.msra.mxu0 %v5279_v26  ;;  %5536 = vmatpush1.bf16.msra.mxu1 %v5535_v27  ;;  %v5295_v26 = vpack.c.bf16 %v1756_v12, %v1748_v11  ;;  %v5551_v27 = vpack.c.bf16 %v1758_v19, %v1750_v18  ;;  %v1823_v11 = vld [vmem:[#allocation5 + $0x21d8] sm:$0xff]  ;;  %v1820_v18 = vld [vmem:[#allocation5 + $0x21c0] sm:$0xff] }
 0x252   : > { %5282 = vmatprep.subr.bf16.mxu0 %v5281_v31  ;;  %5538 = vmatprep.subr.bf16.mxu1 %v5537_v32  ;;  %v960_v31 = vmul.f32 0.5, %v7222_v9  ;;  %v984_v32 = vadd.f32 1.0, %v6548_v21  ;;  %v1788_v9 = vld [vmem:[#allocation5 + $0x20c0] sm:$0xff]  ;;  %v1814_v21 = vld [vmem:[#allocation5 + $0x2190] sm:$0xff] }
 0x253   : > { %v5567_v29 = vpack.c.bf16 %v1822_v22, %v1814_v21  ;;  %v1901_v21 = vld [vmem:[#allocation5 + $0x2448] sm:$0xff]  ;;  %v1895_v22 = vld [vmem:[#allocation5 + $0x2418] sm:$0xff] }
 0x254   : > { %v7231_v51 = vmul.f32 %v984_v32, %v960_v31  ;;  %v1836_v31 = vld [vmem:[#allocation5 + $0x2240] sm:$0xff]  ;;  %v5313_v32 = vpack.c.bf16 %v1837_v33, %v1829_v24  ;;  %v1903_v24 = vld [vmem:[#allocation5 + $0x2458] sm:$0xff] }
 0x255   : > { %5284 = vmatpush1.bf16.msra.mxu0 %v5283_v41  ;;  %5540 = vmatpush1.bf16.msra.mxu1 %v5539_v5  ;;  %v1791_v41 = vld [vmem:[#allocation5 + $0x20d8] sm:$0xff]  ;;  %v963_v5 = vmul.f32 0.5, %v7225_v44 }
 0x256   : > { %5286 = vmatprep.subr.bf16.mxu0 %v5285_v48  ;;  %5542 = vmatprep.subr.bf16.mxu1 %v5541_v50  ;;  %v5555_v48 = vpack.c.bf16 %v1774_v43, %v1766_v36  ;;  %v1780_v50 = vld [vmem:[#allocation5 + $0x2080] sm:$0xff]  ;;  %v5557_v16 = vpack.c.bf16 %v1791_v41, %v1783_v40  ;;  %v1838_v36 = vld [vmem:[#allocation5 + $0x2250] sm:$0xff]  ;;  %v1845_v43 = vld [vmem:[#allocation5 + $0x2288] sm:$0xff]  ;;  %v5315_v41 = vpack.c.bf16 %v1836_v31, %v1828_v30 }
 0x257   : > { %v7233_v44 = vmul.f32 %v987_v45, %v963_v5  ;;  %v5303_v63 = vpack.c.bf16 %v1788_v9, %v1780_v50  ;;  %v1855_v40 = vld [vmem:[#allocation5 + $0x22d8] sm:$0xff]  ;;  %v1844_v45 = vld [vmem:[#allocation5 + $0x2280] sm:$0xff]  ;;  %v1846_v9 = vld [vmem:[#allocation5 + $0x2290] sm:$0xff]  ;;  %v5585_v30 = vpack.c.bf16 %v1903_v24, %v1895_v22 }
 0x258   : > { %v5573_v50 = vpack.c.bf16 %v1855_v40, %v1847_v39  ;;  %v1894_v31 = vld [vmem:[#allocation5 + $0x2410] sm:$0xff]  ;;  %v1965_v22 = vld [vmem:[#allocation5 + $0x2648] sm:$0xff]  ;;  %v1959_v24 = vld [vmem:[#allocation5 + $0x2618] sm:$0xff] }
 0x259   : > { %5288 = vmatpush1.bf16.msra.mxu0 %v5287_v58  ;;  %5544 = vmatpush1.bf16.msra.mxu1 %v5543_v61  ;;  %v1805_v58 = vld [vmem:[#allocation5 + $0x2148] sm:$0xff]  ;;  %v1799_v61 = vld [vmem:[#allocation5 + $0x2118] sm:$0xff] }
 0x25a   : > { %5290 = vmatprep.subr.bf16.mxu0 %v5289_v0  ;;  %5546 = vmatprep.subr.bf16.mxu1 %v5545_v1  ;;  %v5559_v0 = vpack.c.bf16 %v1790_v55, %v1782_v38  ;;  %v1796_v1 = vld [vmem:[#allocation5 + $0x2100] sm:$0xff]  ;;  %v5305_v3 = vpack.c.bf16 %v1805_v58, %v1797_v52  ;;  %v5561_v4 = vpack.c.bf16 %v1807_v62, %v1799_v61  ;;  %v1869_v38 = vld [vmem:[#allocation5 + $0x2348] sm:$0xff]  ;;  %v1863_v55 = vld [vmem:[#allocation5 + $0x2318] sm:$0xff] }
 0x25b   : > { %v5307_v12 = vpack.c.bf16 %v1804_v2, %v1796_v1  ;;  %v1871_v52 = vld [vmem:[#allocation5 + $0x2358] sm:$0xff]  ;;  %v1860_v62 = vld [vmem:[#allocation5 + $0x2300] sm:$0xff]  ;;  %v1862_v2 = vld [vmem:[#allocation5 + $0x2310] sm:$0xff] }
 0x25c   : > { %v5577_v1 = vpack.c.bf16 %v1871_v52, %v1863_v55  ;;  %v1935_v55 = vld [vmem:[#allocation5 + $0x2558] sm:$0xff] }
 0x25d   : > { %5292 = vmatpush1.bf16.msra.mxu0 %v5291_v8  ;;  %5548 = vmatpush1.bf16.msra.mxu1 %v5547_v10  ;;  %v1821_v8 = vld [vmem:[#allocation5 + $0x21c8] sm:$0xff]  ;;  %v1815_v10 = vld [vmem:[#allocation5 + $0x2198] sm:$0xff] }
 0x25e   : > { %5294 = vmatprep.subr.bf16.mxu0 %v5293_v13  ;;  %5550 = vmatprep.subr.bf16.mxu1 %v5549_v14  ;;  %v5563_v13 = vpack.c.bf16 %v1806_v7, %v1798_v59  ;;  %v1812_v14 = vld [vmem:[#allocation5 + $0x2180] sm:$0xff]  ;;  %v5309_v19 = vpack.c.bf16 %v1821_v8, %v1813_v56  ;;  %v5565_v20 = vpack.c.bf16 %v1823_v11, %v1815_v10  ;;  %v1885_v59 = vld [vmem:[#allocation5 + $0x23c8] sm:$0xff]  ;;  %v1879_v7 = vld [vmem:[#allocation5 + $0x2398] sm:$0xff] }
 0x25f   : > { %v1887_v56 = vld [vmem:[#allocation5 + $0x23d8] sm:$0xff]  ;;  %v1876_v11 = vld [vmem:[#allocation5 + $0x2380] sm:$0xff] }
 0x261   : > { %5296 = vmatpush1.bf16.msra.mxu0 %v5295_v26  ;;  %5552 = vmatpush1.bf16.msra.mxu1 %v5551_v27  ;;  %v1839_v26 = vld [vmem:[#allocation5 + $0x2258] sm:$0xff]  ;;  %v5311_v27 = vpack.c.bf16 %v1820_v18, %v1812_v14  ;;  %v5581_v14 = vpack.c.bf16 %v1887_v56, %v1879_v7  ;;  %v1878_v18 = vld [vmem:[#allocation5 + $0x2390] sm:$0xff] }
 0x262   : > { %5298 = vmatprep.subr.bf16.mxu0 %v5297_v34  ;;  %5554 = vmatprep.subr.bf16.mxu1 %v5553_v35  ;;  %v5569_v34 = vpack.c.bf16 %v1839_v26, %v1831_v25  ;;  %v1830_v35 = vld [vmem:[#allocation5 + $0x2210] sm:$0xff]  ;;  %v1892_v26 = vld [vmem:[#allocation5 + $0x2400] sm:$0xff]  ;;  %v1943_v7 = vld [vmem:[#allocation5 + $0x2598] sm:$0xff] }
 0x263   : > { %v5571_v5 = vpack.c.bf16 %v1838_v36, %v1830_v35  ;;  %v1917_v35 = vld [vmem:[#allocation5 + $0x24c8] sm:$0xff]  ;;  %v1911_v36 = vld [vmem:[#allocation5 + $0x2498] sm:$0xff] }
 0x264   : > { %2299 = vmatmul.mubr.f32.vlgmr.msra.gmra.mrb[4].mxu0 %v7231_v51  ;;  %2583 = vmatmul.mubr.f32.vlgmr.msra.gmra.mrb[4].mxu1 %v7231_v51  ;;  %v1951_v56 = vld [vmem:[#allocation5 + $0x25d8] sm:$0xff] }
 0x265   : > { %5300 = vmatpush1.bf16.msra.mxu0 %v5299_v46  ;;  %5556 = vmatpush1.bf16.msra.mxu1 %v5555_v48  ;;  %v1852_v46 = vld [vmem:[#allocation5 + $0x22c0] sm:$0xff]  ;;  %v5317_v48 = vpack.c.bf16 %v1853_v37, %v1845_v43  ;;  %v1919_v43 = vld [vmem:[#allocation5 + $0x24d8] sm:$0xff]  ;;  %v6577_v37 = vld [vmem:[#allocation7 + $0x8] sm:$0xff] }
 0x266   : > { %5302 = vmatprep.subr.bf16.mxu0 %v5301_v54  ;;  %5558 = vmatprep.subr.bf16.mxu1 %v5557_v16  ;;  %v1854_v54 = vld [vmem:[#allocation5 + $0x22d0] sm:$0xff]  ;;  %v1861_v16 = vld [vmem:[#allocation5 + $0x2308] sm:$0xff]  ;;  %v5319_v58 = vpack.c.bf16 %v1852_v46, %v1844_v45  ;;  %v627_v39 = vrot.slane %v6577_v37, %v7182_v23  ;;  %v1916_v45 = vld [vmem:[#allocation5 + $0x24c0] sm:$0xff] }
 0x267   : > { %2369 = vmatprep.mubr.f32.mxu0 %v7233_v44  ;;  %2653 = vmatprep.mubr.f32.mxu1 %v7233_v44  ;;  %v5575_v61 = vpack.c.bf16 %v1854_v54, %v1846_v9  ;;  %v1918_v9 = vld [vmem:[#allocation5 + $0x24d0] sm:$0xff]  ;;  %v1925_v54 = vld [vmem:[#allocation5 + $0x2508] sm:$0xff]  ;;  %v1983_v37 = vld [vmem:[#allocation5 + $0x26d8] sm:$0xff] }
 0x268   : > { %v667_v52 = vrot.slane %v627_v39, %v7148_v6 }
 0x269   : > { %5304 = vmatpush1.bf16.msra.mxu0 %v5303_v63  ;;  %5560 = vmatpush1.bf16.msra.mxu1 %v5559_v0  ;;  %v1868_v63 = vld [vmem:[#allocation5 + $0x2340] sm:$0xff]  ;;  %v5321_v0 = vpack.c.bf16 %v1869_v38, %v1861_v16  ;;  %v1933_v16 = vld [vmem:[#allocation5 + $0x2548] sm:$0xff]  ;;  %v1927_v38 = vld [vmem:[#allocation5 + $0x2518] sm:$0xff] }
 0x26a   : > { %5306 = vmatprep.subr.bf16.mxu0 %v5305_v3  ;;  %5562 = vmatprep.subr.bf16.mxu1 %v5561_v4  ;;  %v1870_v3 = vld [vmem:[#allocation5 + $0x2350] sm:$0xff]  ;;  %v1877_v4 = vld [vmem:[#allocation5 + $0x2388] sm:$0xff]  ;;  %v5323_v8 = vpack.c.bf16 %v1868_v63, %v1860_v62  ;;  %v1924_v62 = vld [vmem:[#allocation5 + $0x2500] sm:$0xff] }
 0x26b   : > { %v5579_v10 = vpack.c.bf16 %v1870_v3, %v1862_v2  ;;  %v1932_v63 = vld [vmem:[#allocation5 + $0x2540] sm:$0xff]  ;;  %v1926_v2 = vld [vmem:[#allocation5 + $0x2510] sm:$0xff] }
 0x26c   : > { %v1934_v3 = vld [vmem:[#allocation5 + $0x2550] sm:$0xff] }
 0x26d   : > { %5308 = vmatpush1.bf16.msra.mxu0 %v5307_v12  ;;  %5564 = vmatpush1.bf16.msra.mxu1 %v5563_v13  ;;  %v1884_v12 = vld [vmem:[#allocation5 + $0x23c0] sm:$0xff]  ;;  %v5325_v13 = vpack.c.bf16 %v1885_v59, %v1877_v4  ;;  %v1941_v4 = vld [vmem:[#allocation5 + $0x2588] sm:$0xff] }
 0x26e   : > { %5310 = vmatprep.subr.bf16.mxu0 %v5309_v19  ;;  %5566 = vmatprep.subr.bf16.mxu1 %v5565_v20  ;;  %v1886_v19 = vld [vmem:[#allocation5 + $0x23d0] sm:$0xff]  ;;  %v1893_v20 = vld [vmem:[#allocation5 + $0x2408] sm:$0xff]  ;;  %v5327_v33 = vpack.c.bf16 %v1884_v12, %v1876_v11  ;;  %v5595_v11 = vpack.c.bf16 %v1934_v3, %v1926_v2  ;;  %v1940_v12 = vld [vmem:[#allocation5 + $0x2580] sm:$0xff] }
 0x26f   : > { %v5583_v25 = vpack.c.bf16 %v1886_v19, %v1878_v18  ;;  %v1949_v59 = vld [vmem:[#allocation5 + $0x25c8] sm:$0xff]  ;;  %v5597_v18 = vpack.c.bf16 %v1951_v56, %v1943_v7  ;;  %v1942_v19 = vld [vmem:[#allocation5 + $0x2590] sm:$0xff] }
 0x270   : > { %v2005_v2 = vld [vmem:[#allocation5 + $0x2788] sm:$0xff] }
 0x271   : > { %5312 = vmatpush1.bf16.msra.mxu0 %v5311_v27  ;;  %5568 = vmatpush1.bf16.msra.mxu1 %v5567_v29  ;;  %v1900_v27 = vld [vmem:[#allocation5 + $0x2440] sm:$0xff]  ;;  %v5329_v29 = vpack.c.bf16 %v1901_v21, %v1893_v20  ;;  %v1950_v20 = vld [vmem:[#allocation5 + $0x25d0] sm:$0xff]  ;;  %v1957_v21 = vld [vmem:[#allocation5 + $0x2608] sm:$0xff] }
 0x272   : > { %5314 = vmatprep.subr.bf16.mxu0 %v5313_v32  ;;  %5570 = vmatprep.subr.bf16.mxu1 %v5569_v34  ;;  %v1902_v32 = vld [vmem:[#allocation5 + $0x2450] sm:$0xff]  ;;  %v1909_v34 = vld [vmem:[#allocation5 + $0x2488] sm:$0xff]  ;;  %v5331_v40 = vpack.c.bf16 %v1900_v27, %v1892_v26  ;;  %v5599_v26 = vpack.c.bf16 %v1950_v20, %v1942_v19  ;;  %v1956_v27 = vld [vmem:[#allocation5 + $0x2600] sm:$0xff] }
 0x273   : > { %v5333_v46 = vpack.c.bf16 %v1917_v35, %v1909_v34  ;;  %v1966_v34 = vld [vmem:[#allocation5 + $0x2650] sm:$0xff]  ;;  %v1973_v35 = vld [vmem:[#allocation5 + $0x2688] sm:$0xff] }
 0x274   : > { %v2013_v3 = vld [vmem:[#allocation5 + $0x27c8] sm:$0xff] }
 0x275   : > { %5316 = vmatpush1.bf16.msra.mxu0 %v5315_v41  ;;  %5572 = vmatpush1.bf16.msra.mxu1 %v5571_v5  ;;  %v5587_v41 = vpack.c.bf16 %v1902_v32, %v1894_v31  ;;  %v1908_v5 = vld [vmem:[#allocation5 + $0x2480] sm:$0xff]  ;;  %v1958_v32 = vld [vmem:[#allocation5 + $0x2610] sm:$0xff]  ;;  %v1001_v19 = vld [vmem:[#allocation5 + $0x828] sm:$0xff] }
 0x276   : > { %5318 = vmatprep.subr.bf16.mxu0 %v5317_v48  ;;  %5574 = vmatprep.subr.bf16.mxu1 %v5573_v50  ;;  %v5589_v48 = vpack.c.bf16 %v1919_v43, %v1911_v36  ;;  %v1910_v50 = vld [vmem:[#allocation5 + $0x2490] sm:$0xff]  ;;  %v1981_v36 = vld [vmem:[#allocation5 + $0x26c8] sm:$0xff]  ;;  %v1975_v43 = vld [vmem:[#allocation5 + $0x2698] sm:$0xff] }
 0x279   : > { %5320 = vmatpush1.bf16.msra.mxu0 %v5319_v58  ;;  %5576 = vmatpush1.bf16.msra.mxu1 %v5575_v61  ;;  %v5335_v58 = vpack.c.bf16 %v1916_v45, %v1908_v5  ;;  %v5591_v61 = vpack.c.bf16 %v1918_v9, %v1910_v50  ;;  %v1980_v5 = vld [vmem:[#allocation5 + $0x26c0] sm:$0xff]  ;;  %v5349_v45 = vpack.c.bf16 %v1981_v36, %v1973_v35  ;;  %v1982_v50 = vld [vmem:[#allocation5 + $0x26d0] sm:$0xff]  ;;  %v1989_v9 = vld [vmem:[#allocation5 + $0x2708] sm:$0xff] }
 0x27a   : > { %5322 = vmatprep.subr.bf16.mxu0 %v5321_v0  ;;  %5578 = vmatprep.subr.bf16.mxu1 %v5577_v1  ;;  %v5337_v0 = vpack.c.bf16 %v1933_v16, %v1925_v54  ;;  %v5593_v1 = vpack.c.bf16 %v1935_v55, %v1927_v38  ;;  %v1997_v54 = vld [vmem:[#allocation5 + $0x2748] sm:$0xff]  ;;  %v1991_v16 = vld [vmem:[#allocation5 + $0x2718] sm:$0xff] }
 0x27b   : > { %v1999_v38 = vld [vmem:[#allocation5 + $0x2758] sm:$0xff]  ;;  %v1017_v35 = vld [vmem:[#allocation5 + $0x8a8] sm:$0xff] }
 0x27c   : > { %v1025_v36 = vld [vmem:[#allocation5 + $0x8e8] sm:$0xff] }
 0x27d   : > { %5324 = vmatpush1.bf16.msra.mxu0 %v5323_v8  ;;  %5580 = vmatpush1.bf16.msra.mxu1 %v5579_v10  ;;  %v7242_v8 = vadd.f32 %v7203_v42, %v667_v52  ;;  %v5339_v10 = vpack.c.bf16 %v1932_v63, %v1924_v62  ;;  %v5353_v62 = vpack.c.bf16 %v1997_v54, %v1989_v9  ;;  %v1033_v9 = vld [vmem:[#allocation5 + $0x928] sm:$0xff] }
 0x27e   : > { %5326 = vmatprep.subr.bf16.mxu0 %v5325_v13  ;;  %5582 = vmatprep.subr.bf16.mxu1 %v5581_v14  ;;  %v1948_v13 = vld [vmem:[#allocation5 + $0x25c0] sm:$0xff]  ;;  %v5341_v14 = vpack.c.bf16 %v1949_v59, %v1941_v4  ;;  %v5609_v63 = vpack.c.bf16 %v1999_v38, %v1991_v16  ;;  %v2007_v4 = vld [vmem:[#allocation5 + $0x2798] sm:$0xff]  ;;  %v1041_v54 = vld [vmem:[#allocation5 + $0x968] sm:$0xff] }
 0x27f   : > { %v5343_v42 = vpack.c.bf16 %v1948_v13, %v1940_v12  ;;  %v2015_v59 = vld [vmem:[#allocation5 + $0x27d8] sm:$0xff]  ;;  %v5357_v12 = vpack.c.bf16 %v2013_v3, %v2005_v2  ;;  %v1049_v2 = vld [vmem:[#allocation5 + $0x9a8] sm:$0xff] }
 0x280   : > { %v5613_v13 = vpack.c.bf16 %v2015_v59, %v2007_v4  ;;  %v1035_v16 = vld [vmem:[#allocation5 + $0x938] sm:$0xff]  ;;  %v1057_v3 = vld [vmem:[#allocation5 + $0x9e8] sm:$0xff] }
 0x281   : > { %5328 = vmatpush1.bf16.msra.mxu0 %v5327_v33  ;;  %5584 = vmatpush1.bf16.msra.mxu1 %v5583_v25  ;;  %v1967_v33 = vld [vmem:[#allocation5 + $0x2658] sm:$0xff]  ;;  %v970_v25 = vmul.f32 0.70710677, %v7242_v8 }
 0x282   : > { %5330 = vmatprep.subr.bf16.mxu0 %v5329_v29  ;;  %5586 = vmatprep.subr.bf16.mxu1 %v5585_v30  ;;  %v1964_v29 = vld [vmem:[#allocation5 + $0x2640] sm:$0xff]  ;;  %v5345_v30 = vpack.c.bf16 %v1965_v22, %v1957_v21  ;;  %v5601_v31 = vpack.c.bf16 %v1967_v33, %v1959_v24  ;;  %v1009_v21 = vld [vmem:[#allocation5 + $0x868] sm:$0xff]  ;;  %v1003_v22 = vld [vmem:[#allocation5 + $0x838] sm:$0xff] }
 0x283   : > { %6551 = verf.f32 %v970_v25  ;;  %v5347_v39 = vpack.c.bf16 %v1964_v29, %v1956_v27  ;;  %v1011_v24 = vld [vmem:[#allocation5 + $0x878] sm:$0xff]  ;;  %v5617_v27 = vpack.c.bf16 %v1009_v21, %v1001_v19  ;;  %v1073_v19 = vld [vmem:[#allocation5 + $0xa68] sm:$0xff] }
 0x284   : > { %v5873_v29 = vpack.c.bf16 %v1011_v24, %v1003_v22  ;;  %v1043_v38 = vld [vmem:[#allocation5 + $0x978] sm:$0xff] }
 0x285   : > { %5332 = vmatpush1.bf16.msra.mxu0 %v5331_v40  ;;  %5588 = vmatpush1.bf16.msra.mxu1 %v5587_v41  ;;  %v5603_v40 = vpack.c.bf16 %v1966_v34, %v1958_v32  ;;  %v1972_v41 = vld [vmem:[#allocation5 + $0x2680] sm:$0xff]  ;;  %v1002_v32 = vld [vmem:[#allocation5 + $0x830] sm:$0xff]  ;;  %v1051_v4 = vld [vmem:[#allocation5 + $0x9b8] sm:$0xff] }
 0x286   : > { %5334 = vmatprep.subr.bf16.mxu0 %v5333_v46  ;;  %5590 = vmatprep.subr.bf16.mxu1 %v5589_v48  ;;  %v5605_v46 = vpack.c.bf16 %v1983_v37, %v1975_v43  ;;  %v1974_v48 = vld [vmem:[#allocation5 + $0x2690] sm:$0xff]  ;;  %v5351_v55 = vpack.c.bf16 %v1980_v5, %v1972_v41  ;;  %v1019_v43 = vld [vmem:[#allocation5 + $0x8b8] sm:$0xff]  ;;  %v1016_v41 = vld [vmem:[#allocation5 + $0x8a0] sm:$0xff] }
 0x287   : > { %v5607_v52 = vpack.c.bf16 %v1982_v50, %v1974_v48  ;;  %v1010_v34 = vld [vmem:[#allocation5 + $0x870] sm:$0xff]  ;;  %v1027_v37 = vld [vmem:[#allocation5 + $0x8f8] sm:$0xff]  ;;  %v1024_v5 = vld [vmem:[#allocation5 + $0x8e0] sm:$0xff] }
 0x288   : > { %v5877_v48 = vpack.c.bf16 %v1027_v37, %v1019_v43  ;;  %v1026_v50 = vld [vmem:[#allocation5 + $0x8f0] sm:$0xff]  ;;  %v1059_v59 = vld [vmem:[#allocation5 + $0x9f8] sm:$0xff]  ;;  %v1080_v37 = vld [vmem:[#allocation5 + $0xaa0] sm:$0xff] }
 0x289   : > { %5336 = vmatpush1.bf16.msra.mxu0 %v5335_v58  ;;  %5592 = vmatpush1.bf16.msra.mxu1 %v5591_v61  ;;  %v1988_v58 = vld [vmem:[#allocation5 + $0x2700] sm:$0xff]  ;;  %v1075_v21 = vld [vmem:[#allocation5 + $0xa78] sm:$0xff] }
 0x28a   : > { %5338 = vmatprep.subr.bf16.mxu0 %v5337_v0  ;;  %5594 = vmatprep.subr.bf16.mxu1 %v5593_v1  ;;  %v1996_v61 = vld [vmem:[#allocation5 + $0x2740] sm:$0xff]  ;;  %v1990_v0 = vld [vmem:[#allocation5 + $0x2710] sm:$0xff] }
 0x28b   : > { %v1998_v1 = vld [vmem:[#allocation5 + $0x2750] sm:$0xff]  ;;  %v5355_v7 = vpack.c.bf16 %v1996_v61, %v1988_v58  ;;  %v5625_v58 = vpack.c.bf16 %v1041_v54, %v1033_v9  ;;  %v1032_v61 = vld [vmem:[#allocation5 + $0x920] sm:$0xff] }
 0x28c   : > { %v5611_v56 = vpack.c.bf16 %v1998_v1, %v1990_v0  ;;  %v5881_v0 = vpack.c.bf16 %v1043_v38, %v1035_v16  ;;  %v1042_v1 = vld [vmem:[#allocation5 + $0x970] sm:$0xff]  ;;  %v1096_v38 = vld [vmem:[#allocation5 + $0xb20] sm:$0xff] }
 0x28d   : > { %5340 = vmatpush1.bf16.msra.mxu0 %v5339_v10  ;;  %5596 = vmatpush1.bf16.msra.mxu1 %v5595_v11  ;;  %v2004_v10 = vld [vmem:[#allocation5 + $0x2780] sm:$0xff]  ;;  %v6552_v20 = vpop.eup %6551 }
 0x28e   : > { %5342 = vmatprep.subr.bf16.mxu0 %v5341_v14  ;;  %5598 = vmatprep.subr.bf16.mxu1 %v5597_v18  ;;  %v2012_v11 = vld [vmem:[#allocation5 + $0x27c0] sm:$0xff]  ;;  %v2006_v14 = vld [vmem:[#allocation5 + $0x2790] sm:$0xff] }
 0x28f   : > { %v2014_v18 = vld [vmem:[#allocation5 + $0x27d0] sm:$0xff]  ;;  %v5359_v33 = vpack.c.bf16 %v2012_v11, %v2004_v10  ;;  %v5629_v10 = vpack.c.bf16 %v1057_v3, %v1049_v2  ;;  %v1056_v11 = vld [vmem:[#allocation5 + $0x9e0] sm:$0xff] }
 0x290   : > { %v5615_v25 = vpack.c.bf16 %v2014_v18, %v2006_v14  ;;  %v1058_v14 = vld [vmem:[#allocation5 + $0x9f0] sm:$0xff]  ;;  %v1065_v18 = vld [vmem:[#allocation5 + $0xa28] sm:$0xff] }
 0x291   : > { %5344 = vmatpush1.bf16.msra.mxu0 %v5343_v42  ;;  %5600 = vmatpush1.bf16.msra.mxu1 %v5599_v26  ;;  %v962_v42 = vmul.f32 0.5, %v7242_v8  ;;  %v986_v26 = vadd.f32 1.0, %v6552_v20  ;;  %v5875_v8 = vpack.c.bf16 %v1010_v34, %v1002_v32  ;;  %v1067_v20 = vld [vmem:[#allocation5 + $0xa38] sm:$0xff] }
 0x292   : > { %5346 = vmatprep.subr.bf16.mxu0 %v5345_v30  ;;  %5602 = vmatprep.subr.bf16.mxu1 %v5601_v31  ;;  %v1000_v30 = vld [vmem:[#allocation5 + $0x820] sm:$0xff]  ;;  %v1083_v32 = vld [vmem:[#allocation5 + $0xab8] sm:$0xff] }
 0x293   : > { %v1008_v31 = vld [vmem:[#allocation5 + $0x860] sm:$0xff]  ;;  %v1091_v34 = vld [vmem:[#allocation5 + $0xaf8] sm:$0xff] }
 0x295   : > { %5348 = vmatpush1.bf16.msra.mxu0 %v5347_v39  ;;  %5604 = vmatpush1.bf16.msra.mxu1 %v5603_v40  ;;  %v5619_v39 = vpack.c.bf16 %v1008_v31, %v1000_v30  ;;  %v7246_v40 = vmul.f32 %v986_v26, %v962_v42  ;;  %v1072_v42 = vld [vmem:[#allocation5 + $0xa60] sm:$0xff]  ;;  %v1066_v26 = vld [vmem:[#allocation5 + $0xa30] sm:$0xff]  ;;  %v1081_v30 = vld [vmem:[#allocation5 + $0xaa8] sm:$0xff] }
 0x296   : > { %5350 = vmatprep.subr.bf16.mxu0 %v5349_v45  ;;  %5606 = vmatprep.subr.bf16.mxu1 %v5605_v46  ;;  %v1018_v45 = vld [vmem:[#allocation5 + $0x8b0] sm:$0xff]  ;;  %v5621_v46 = vpack.c.bf16 %v1025_v36, %v1017_v35  ;;  %v1089_v31 = vld [vmem:[#allocation5 + $0xae8] sm:$0xff] }
 0x297   : > { %v5637_v43 = vpack.c.bf16 %v1089_v31, %v1081_v30 }
 0x299   : > { %5352 = vmatpush1.bf16.msra.mxu0 %v5351_v55  ;;  %5608 = vmatpush1.bf16.msra.mxu1 %v5607_v52  ;;  %v5623_v55 = vpack.c.bf16 %v1024_v5, %v1016_v41  ;;  %v5879_v52 = vpack.c.bf16 %v1026_v50, %v1018_v45  ;;  %v5893_v41 = vpack.c.bf16 %v1091_v34, %v1083_v32  ;;  %v1090_v5 = vld [vmem:[#allocation5 + $0xaf0] sm:$0xff]  ;;  %v1097_v45 = vld [vmem:[#allocation5 + $0xb28] sm:$0xff]  ;;  %v1107_v50 = vld [vmem:[#allocation5 + $0xb78] sm:$0xff] }
 0x29a   : > { %5354 = vmatprep.subr.bf16.mxu0 %v5353_v62  ;;  %5610 = vmatprep.subr.bf16.mxu1 %v5609_v63  ;;  %v1040_v62 = vld [vmem:[#allocation5 + $0x960] sm:$0xff]  ;;  %v1034_v63 = vld [vmem:[#allocation5 + $0x930] sm:$0xff] }
 0x29b   : > { %v1144_v34 = vld [vmem:[#allocation5 + $0xca0] sm:$0xff] }
 0x29d   : > { %5356 = vmatpush1.bf16.msra.mxu0 %v5355_v7  ;;  %5612 = vmatpush1.bf16.msra.mxu1 %v5611_v56  ;;  %v5627_v7 = vpack.c.bf16 %v1040_v62, %v1032_v61  ;;  %v5883_v56 = vpack.c.bf16 %v1042_v1, %v1034_v63  ;;  %v1106_v61 = vld [vmem:[#allocation5 + $0xb70] sm:$0xff]  ;;  %v1113_v62 = vld [vmem:[#allocation5 + $0xba8] sm:$0xff]  ;;  %v1123_v1 = vld [vmem:[#allocation5 + $0xbf8] sm:$0xff] }
 0x29e   : > { %5358 = vmatprep.subr.bf16.mxu0 %v5357_v12  ;;  %5614 = vmatprep.subr.bf16.mxu1 %v5613_v13  ;;  %v1050_v12 = vld [vmem:[#allocation5 + $0x9b0] sm:$0xff]  ;;  %v5885_v13 = vpack.c.bf16 %v1059_v59, %v1051_v4  ;;  %v1121_v63 = vld [vmem:[#allocation5 + $0xbe8] sm:$0xff]  ;;  %v1112_v59 = vld [vmem:[#allocation5 + $0xba0] sm:$0xff] }
 0x29f   : > { %v5887_v24 = vpack.c.bf16 %v1058_v14, %v1050_v12  ;;  %v5645_v4 = vpack.c.bf16 %v1121_v63, %v1113_v62  ;;  %v1137_v12 = vld [vmem:[#allocation5 + $0xc68] sm:$0xff]  ;;  %v1139_v14 = vld [vmem:[#allocation5 + $0xc78] sm:$0xff] }
 0x2a1   : > { %5360 = vmatpush1.bf16.msra.mxu0 %v5359_v33  ;;  %5616 = vmatpush1.bf16.msra.mxu1 %v5615_v25  ;;  %v5633_v33 = vpack.c.bf16 %v1073_v19, %v1065_v18  ;;  %v1064_v25 = vld [vmem:[#allocation5 + $0xa20] sm:$0xff] }
 0x2a2   : > { %5618 = vmatprep.subr.bf16.mxu0 %v5617_v27  ;;  %5874 = vmatprep.subr.bf16.mxu1 %v5873_v29  ;;  %v5889_v27 = vpack.c.bf16 %v1075_v21, %v1067_v20  ;;  %v1074_v29 = vld [vmem:[#allocation5 + $0xa70] sm:$0xff]  ;;  %v5635_v35 = vpack.c.bf16 %v1072_v42, %v1064_v25  ;;  %v1128_v21 = vld [vmem:[#allocation5 + $0xc20] sm:$0xff]  ;;  %v1145_v42 = vld [vmem:[#allocation5 + $0xca8] sm:$0xff] }
 0x2a3   : > { %v5891_v36 = vpack.c.bf16 %v1074_v29, %v1066_v26  ;;  %v1138_v25 = vld [vmem:[#allocation5 + $0xc70] sm:$0xff]  ;;  %v1153_v26 = vld [vmem:[#allocation5 + $0xce8] sm:$0xff]  ;;  %v1155_v29 = vld [vmem:[#allocation5 + $0xcf8] sm:$0xff] }
 0x2a4   : > { %2370 = vmatmul.mubr.f32.vlgmr.msra.gmra.mrb[4].mxu0 %v7246_v40  ;;  %2654 = vmatmul.mubr.f32.vlgmr.msra.gmra.mrb[4].mxu1 %v7246_v40  ;;  %v5653_v32 = vpack.c.bf16 %v1153_v26, %v1145_v42 }
 0x2a5   : > { %5620 = vmatpush1.bf16.msra.mxu0 %v5619_v39  ;;  %2724 = vmatprep.mubr.f32.mxu0 %v7169_v47  ;;  %v1088_v39 = vld [vmem:[#allocation5 + $0xae0] sm:$0xff] }
 0x2a6   : > { %5876 = vmatpush1.bf16.msra.mxu1 %v5875_v8  ;;  %3008 = vmatprep.mubr.f32.mxu1 %v7169_v47  ;;  %v1048_v47 = vld [vmem:[#allocation5 + $0x9a0] sm:$0xff]  ;;  %v1082_v8 = vld [vmem:[#allocation5 + $0xab0] sm:$0xff]  ;;  %v5639_v9 = vpack.c.bf16 %v1088_v39, %v1080_v37  ;;  %v1161_v39 = vld [vmem:[#allocation5 + $0xd28] sm:$0xff] }
 0x2a7   : > { %5622 = vmatprep.subr.bf16.mxu0 %v5621_v46  ;;  %5878 = vmatprep.subr.bf16.mxu1 %v5877_v48  ;;  %v5631_v22 = vpack.c.bf16 %v1056_v11, %v1048_v47  ;;  %v1105_v46 = vld [vmem:[#allocation5 + $0xb68] sm:$0xff]  ;;  %v1099_v48 = vld [vmem:[#allocation5 + $0xb38] sm:$0xff]  ;;  %v5895_v54 = vpack.c.bf16 %v1090_v5, %v1082_v8  ;;  %v1122_v47 = vld [vmem:[#allocation5 + $0xbf0] sm:$0xff] }
 0x2a8   : > { %v5641_v16 = vpack.c.bf16 %v1105_v46, %v1097_v45  ;;  %v1129_v11 = vld [vmem:[#allocation5 + $0xc28] sm:$0xff]  ;;  %v1154_v37 = vld [vmem:[#allocation5 + $0xcf0] sm:$0xff]  ;;  %v1171_v5 = vld [vmem:[#allocation5 + $0xd78] sm:$0xff] }
 0x2a9   : > { %5624 = vmatpush1.bf16.msra.mxu0 %v5623_v55  ;;  %v1104_v55 = vld [vmem:[#allocation5 + $0xb60] sm:$0xff]  ;;  %v5649_v20 = vpack.c.bf16 %v1137_v12, %v1129_v11  ;;  %v1169_v8 = vld [vmem:[#allocation5 + $0xd68] sm:$0xff] }
 0x2aa   : > { %5880 = vmatpush1.bf16.msra.mxu1 %v5879_v52  ;;  %5626 = vmatprep.subr.bf16.mxu0 %v5625_v58  ;;  %v1098_v52 = vld [vmem:[#allocation5 + $0xb30] sm:$0xff]  ;;  %v5897_v58 = vpack.c.bf16 %v1107_v50, %v1099_v48  ;;  %v5643_v2 = vpack.c.bf16 %v1104_v55, %v1096_v38  ;;  %v5657_v48 = vpack.c.bf16 %v1169_v8, %v1161_v39  ;;  %v1160_v50 = vld [vmem:[#allocation5 + $0xd20] sm:$0xff]  ;;  %v1177_v55 = vld [vmem:[#allocation5 + $0xda8] sm:$0xff] }
 0x2ab   : > { %5882 = vmatprep.subr.bf16.mxu1 %v5881_v0  ;;  %v1115_v0 = vld [vmem:[#allocation5 + $0xbb8] sm:$0xff]  ;;  %v5899_v3 = vpack.c.bf16 %v1106_v61, %v1098_v52  ;;  %v1170_v38 = vld [vmem:[#allocation5 + $0xd70] sm:$0xff]  ;;  %v1185_v52 = vld [vmem:[#allocation5 + $0xde8] sm:$0xff] }
 0x2ac   : > { %v1187_v61 = vld [vmem:[#allocation5 + $0xdf8] sm:$0xff] }
 0x2ad   : > { %5628 = vmatpush1.bf16.msra.mxu0 %v5627_v7  ;;  %v1120_v7 = vld [vmem:[#allocation5 + $0xbe0] sm:$0xff] }
 0x2ae   : > { %5884 = vmatpush1.bf16.msra.mxu1 %v5883_v56  ;;  %5630 = vmatprep.subr.bf16.mxu0 %v5629_v10  ;;  %v1114_v56 = vld [vmem:[#allocation5 + $0xbb0] sm:$0xff]  ;;  %v5901_v10 = vpack.c.bf16 %v1123_v1, %v1115_v0  ;;  %v5647_v18 = vpack.c.bf16 %v1120_v7, %v1112_v59  ;;  %v5661_v0 = vpack.c.bf16 %v1185_v52, %v1177_v55  ;;  %v1176_v1 = vld [vmem:[#allocation5 + $0xda0] sm:$0xff]  ;;  %v1193_v7 = vld [vmem:[#allocation5 + $0xe28] sm:$0xff] }
 0x2af   : > { %5886 = vmatprep.subr.bf16.mxu1 %v5885_v13  ;;  %v1131_v13 = vld [vmem:[#allocation5 + $0xc38] sm:$0xff]  ;;  %v5903_v19 = vpack.c.bf16 %v1122_v47, %v1114_v56  ;;  %v1186_v59 = vld [vmem:[#allocation5 + $0xdf0] sm:$0xff]  ;;  %v1201_v56 = vld [vmem:[#allocation5 + $0xe68] sm:$0xff] }
 0x2b0   : > { %v1203_v47 = vld [vmem:[#allocation5 + $0xe78] sm:$0xff] }
 0x2b1   : > { %5632 = vmatpush1.bf16.msra.mxu0 %v5631_v22  ;;  %v1136_v22 = vld [vmem:[#allocation5 + $0xc60] sm:$0xff] }
 0x2b2   : > { %5888 = vmatpush1.bf16.msra.mxu1 %v5887_v24  ;;  %5634 = vmatprep.subr.bf16.mxu0 %v5633_v33  ;;  %v1130_v24 = vld [vmem:[#allocation5 + $0xc30] sm:$0xff]  ;;  %v5905_v33 = vpack.c.bf16 %v1139_v14, %v1131_v13  ;;  %v5651_v30 = vpack.c.bf16 %v1136_v22, %v1128_v21  ;;  %v5665_v13 = vpack.c.bf16 %v1201_v56, %v1193_v7  ;;  %v1192_v14 = vld [vmem:[#allocation5 + $0xe20] sm:$0xff]  ;;  %v1209_v22 = vld [vmem:[#allocation5 + $0xea8] sm:$0xff] }
 0x2b3   : > { %5890 = vmatprep.subr.bf16.mxu1 %v5889_v27  ;;  %v1147_v27 = vld [vmem:[#allocation5 + $0xcb8] sm:$0xff]  ;;  %v5907_v31 = vpack.c.bf16 %v1138_v25, %v1130_v24  ;;  %v1202_v21 = vld [vmem:[#allocation5 + $0xe70] sm:$0xff]  ;;  %v1217_v24 = vld [vmem:[#allocation5 + $0xee8] sm:$0xff] }
 0x2b4   : > { %v1219_v25 = vld [vmem:[#allocation5 + $0xef8] sm:$0xff] }
 0x2b5   : > { %5636 = vmatpush1.bf16.msra.mxu0 %v5635_v35  ;;  %v1152_v35 = vld [vmem:[#allocation5 + $0xce0] sm:$0xff] }
 0x2b6   : > { %5892 = vmatpush1.bf16.msra.mxu1 %v5891_v36  ;;  %5638 = vmatprep.subr.bf16.mxu0 %v5637_v43  ;;  %v1146_v36 = vld [vmem:[#allocation5 + $0xcb0] sm:$0xff]  ;;  %v5909_v43 = vpack.c.bf16 %v1155_v29, %v1147_v27  ;;  %v5655_v45 = vpack.c.bf16 %v1152_v35, %v1144_v34  ;;  %v5669_v27 = vpack.c.bf16 %v1217_v24, %v1209_v22  ;;  %v1208_v29 = vld [vmem:[#allocation5 + $0xea0] sm:$0xff]  ;;  %v1225_v35 = vld [vmem:[#allocation5 + $0xf28] sm:$0xff] }
 0x2b7   : > { %5894 = vmatprep.subr.bf16.mxu1 %v5893_v41  ;;  %v1163_v41 = vld [vmem:[#allocation5 + $0xd38] sm:$0xff]  ;;  %v5911_v46 = vpack.c.bf16 %v1154_v37, %v1146_v36  ;;  %v1218_v34 = vld [vmem:[#allocation5 + $0xef0] sm:$0xff]  ;;  %v1233_v36 = vld [vmem:[#allocation5 + $0xf68] sm:$0xff] }
 0x2b8   : > { %v1235_v37 = vld [vmem:[#allocation5 + $0xf78] sm:$0xff] }
 0x2b9   : > { %5640 = vmatpush1.bf16.msra.mxu0 %v5639_v9  ;;  %v1168_v9 = vld [vmem:[#allocation5 + $0xd60] sm:$0xff]  ;;  %v1283_v22 = vld [vmem:[#allocation5 + $0x10f8] sm:$0xff] }
 0x2ba   : > { %5896 = vmatpush1.bf16.msra.mxu1 %v5895_v54  ;;  %5642 = vmatprep.subr.bf16.mxu0 %v5641_v16  ;;  %v1162_v54 = vld [vmem:[#allocation5 + $0xd30] sm:$0xff]  ;;  %v5913_v16 = vpack.c.bf16 %v1171_v5, %v1163_v41  ;;  %v5659_v62 = vpack.c.bf16 %v1168_v9, %v1160_v50  ;;  %v5673_v41 = vpack.c.bf16 %v1233_v36, %v1225_v35  ;;  %v1224_v5 = vld [vmem:[#allocation5 + $0xf20] sm:$0xff]  ;;  %v1241_v9 = vld [vmem:[#allocation5 + $0xfa8] sm:$0xff] }
 0x2bb   : > { %5898 = vmatprep.subr.bf16.mxu1 %v5897_v58  ;;  %v1179_v58 = vld [vmem:[#allocation5 + $0xdb8] sm:$0xff]  ;;  %v5915_v63 = vpack.c.bf16 %v1170_v38, %v1162_v54  ;;  %v1234_v50 = vld [vmem:[#allocation5 + $0xf70] sm:$0xff]  ;;  %v1249_v54 = vld [vmem:[#allocation5 + $0xfe8] sm:$0xff] }
 0x2bc   : > { %v1251_v38 = vld [vmem:[#allocation5 + $0xff8] sm:$0xff] }
 0x2bd   : > { %5644 = vmatpush1.bf16.msra.mxu0 %v5643_v2  ;;  %v1184_v2 = vld [vmem:[#allocation5 + $0xde0] sm:$0xff] }
 0x2be   : > { %5900 = vmatpush1.bf16.msra.mxu1 %v5899_v3  ;;  %5646 = vmatprep.subr.bf16.mxu0 %v5645_v4  ;;  %v1178_v3 = vld [vmem:[#allocation5 + $0xdb0] sm:$0xff]  ;;  %v5917_v4 = vpack.c.bf16 %v1187_v61, %v1179_v58  ;;  %v5663_v11 = vpack.c.bf16 %v1184_v2, %v1176_v1  ;;  %v5677_v58 = vpack.c.bf16 %v1249_v54, %v1241_v9  ;;  %v1240_v61 = vld [vmem:[#allocation5 + $0xfa0] sm:$0xff]  ;;  %v1257_v2 = vld [vmem:[#allocation5 + $0x1028] sm:$0xff] }
 0x2bf   : > { %5902 = vmatprep.subr.bf16.mxu1 %v5901_v10  ;;  %v1195_v10 = vld [vmem:[#allocation5 + $0xe38] sm:$0xff]  ;;  %v5919_v12 = vpack.c.bf16 %v1186_v59, %v1178_v3  ;;  %v1250_v1 = vld [vmem:[#allocation5 + $0xff0] sm:$0xff]  ;;  %v1265_v3 = vld [vmem:[#allocation5 + $0x1068] sm:$0xff] }
 0x2c0   : > { %v1267_v59 = vld [vmem:[#allocation5 + $0x1078] sm:$0xff] }
 0x2c1   : > { %5648 = vmatpush1.bf16.msra.mxu0 %v5647_v18  ;;  %v1200_v18 = vld [vmem:[#allocation5 + $0xe60] sm:$0xff] }
 0x2c2   : > { %5904 = vmatpush1.bf16.msra.mxu1 %v5903_v19  ;;  %5650 = vmatprep.subr.bf16.mxu0 %v5649_v20  ;;  %v1194_v19 = vld [vmem:[#allocation5 + $0xe30] sm:$0xff]  ;;  %v5921_v20 = vpack.c.bf16 %v1203_v47, %v1195_v10  ;;  %v5667_v42 = vpack.c.bf16 %v1200_v18, %v1192_v14  ;;  %v5681_v10 = vpack.c.bf16 %v1265_v3, %v1257_v2  ;;  %v1256_v47 = vld [vmem:[#allocation5 + $0x1020] sm:$0xff]  ;;  %v1273_v18 = vld [vmem:[#allocation5 + $0x10a8] sm:$0xff] }
 0x2c3   : > { %5906 = vmatprep.subr.bf16.mxu1 %v5905_v33  ;;  %v1211_v33 = vld [vmem:[#allocation5 + $0xeb8] sm:$0xff]  ;;  %v5923_v26 = vpack.c.bf16 %v1202_v21, %v1194_v19  ;;  %v1266_v14 = vld [vmem:[#allocation5 + $0x1070] sm:$0xff]  ;;  %v1281_v19 = vld [vmem:[#allocation5 + $0x10e8] sm:$0xff] }
 0x2c4   : > { %v1275_v21 = vld [vmem:[#allocation5 + $0x10b8] sm:$0xff]  ;;  %v1320_v3 = vld [vmem:[#allocation5 + $0x1220] sm:$0xff] }
 0x2c5   : > { %5652 = vmatpush1.bf16.msra.mxu0 %v5651_v30  ;;  %v1216_v30 = vld [vmem:[#allocation5 + $0xee0] sm:$0xff] }
 0x2c6   : > { %5908 = vmatpush1.bf16.msra.mxu1 %v5907_v31  ;;  %5654 = vmatprep.subr.bf16.mxu0 %v5653_v32  ;;  %v1210_v31 = vld [vmem:[#allocation5 + $0xeb0] sm:$0xff]  ;;  %v5925_v32 = vpack.c.bf16 %v1219_v25, %v1211_v33  ;;  %v5671_v39 = vpack.c.bf16 %v1216_v30, %v1208_v29  ;;  %v1272_v33 = vld [vmem:[#allocation5 + $0x10a0] sm:$0xff]  ;;  %v1289_v29 = vld [vmem:[#allocation5 + $0x1128] sm:$0xff] }
 0x2c7   : > { %5910 = vmatprep.subr.bf16.mxu1 %v5909_v43  ;;  %v1227_v43 = vld [vmem:[#allocation5 + $0xf38] sm:$0xff]  ;;  %v5927_v8 = vpack.c.bf16 %v1218_v34, %v1210_v31  ;;  %v1280_v25 = vld [vmem:[#allocation5 + $0x10e0] sm:$0xff]  ;;  %v1297_v30 = vld [vmem:[#allocation5 + $0x1168] sm:$0xff]  ;;  %v5941_v31 = vpack.c.bf16 %v1283_v22, %v1275_v21 }
 0x2c8   : > { %v1299_v34 = vld [vmem:[#allocation5 + $0x1178] sm:$0xff]  ;;  %v5687_v35 = vpack.c.bf16 %v1280_v25, %v1272_v33  ;;  %v1338_v21 = vld [vmem:[#allocation5 + $0x12b0] sm:$0xff]  ;;  %v1353_v33 = vld [vmem:[#allocation5 + $0x1328] sm:$0xff] }
 0x2c9   : > { %5656 = vmatpush1.bf16.msra.mxu0 %v5655_v45  ;;  %v1232_v45 = vld [vmem:[#allocation5 + $0xf60] sm:$0xff]  ;;  %v1361_v25 = vld [vmem:[#allocation5 + $0x1368] sm:$0xff] }
 0x2ca   : > { %5912 = vmatpush1.bf16.msra.mxu1 %v5911_v46  ;;  %5658 = vmatprep.subr.bf16.mxu0 %v5657_v48  ;;  %v1226_v46 = vld [vmem:[#allocation5 + $0xf30] sm:$0xff]  ;;  %v5929_v48 = vpack.c.bf16 %v1235_v37, %v1227_v43  ;;  %v5675_v55 = vpack.c.bf16 %v1232_v45, %v1224_v5  ;;  %v5689_v43 = vpack.c.bf16 %v1297_v30, %v1289_v29  ;;  %v1288_v37 = vld [vmem:[#allocation5 + $0x1120] sm:$0xff]  ;;  %v1305_v45 = vld [vmem:[#allocation5 + $0x11a8] sm:$0xff] }
 0x2cb   : > { %5914 = vmatprep.subr.bf16.mxu1 %v5913_v16  ;;  %v1243_v16 = vld [vmem:[#allocation5 + $0xfb8] sm:$0xff]  ;;  %v5931_v52 = vpack.c.bf16 %v1234_v50, %v1226_v46  ;;  %v1298_v5 = vld [vmem:[#allocation5 + $0x1170] sm:$0xff]  ;;  %v1313_v46 = vld [vmem:[#allocation5 + $0x11e8] sm:$0xff]  ;;  %v5705_v30 = vpack.c.bf16 %v1361_v25, %v1353_v33 }
 0x2cc   : > { %v5693_v54 = vpack.c.bf16 %v1313_v46, %v1305_v45  ;;  %v1368_v46 = vld [vmem:[#allocation5 + $0x13a0] sm:$0xff] }
 0x2cd   : > { %5660 = vmatpush1.bf16.msra.mxu0 %v5659_v62  ;;  %v1248_v62 = vld [vmem:[#allocation5 + $0xfe0] sm:$0xff] }
 0x2ce   : > { %5916 = vmatpush1.bf16.msra.mxu1 %v5915_v63  ;;  %5662 = vmatprep.subr.bf16.mxu0 %v5661_v0  ;;  %v1242_v63 = vld [vmem:[#allocation5 + $0xfb0] sm:$0xff]  ;;  %v5933_v0 = vpack.c.bf16 %v1251_v38, %v1243_v16  ;;  %v5679_v7 = vpack.c.bf16 %v1248_v62, %v1240_v61  ;;  %v1304_v16 = vld [vmem:[#allocation5 + $0x11a0] sm:$0xff]  ;;  %v1329_v61 = vld [vmem:[#allocation5 + $0x1268] sm:$0xff] }
 0x2cf   : > { %5918 = vmatprep.subr.bf16.mxu1 %v5917_v4  ;;  %v1259_v4 = vld [vmem:[#allocation5 + $0x1038] sm:$0xff]  ;;  %v5935_v56 = vpack.c.bf16 %v1250_v1, %v1242_v63  ;;  %v1312_v38 = vld [vmem:[#allocation5 + $0x11e0] sm:$0xff] }
 0x2d0   : > { %v1323_v62 = vld [vmem:[#allocation5 + $0x1238] sm:$0xff]  ;;  %v1416_v25 = vld [vmem:[#allocation5 + $0x1520] sm:$0xff] }
 0x2d1   : > { %5664 = vmatpush1.bf16.msra.mxu0 %v5663_v11  ;;  %v1264_v11 = vld [vmem:[#allocation5 + $0x1060] sm:$0xff]  ;;  %v1331_v63 = vld [vmem:[#allocation5 + $0x1278] sm:$0xff] }
 0x2d2   : > { %5920 = vmatpush1.bf16.msra.mxu1 %v5919_v12  ;;  %5666 = vmatprep.subr.bf16.mxu0 %v5665_v13  ;;  %v5937_v12 = vpack.c.bf16 %v1267_v59, %v1259_v4  ;;  %v1258_v13 = vld [vmem:[#allocation5 + $0x1030] sm:$0xff]  ;;  %v1328_v4 = vld [vmem:[#allocation5 + $0x1260] sm:$0xff] }
 0x2d3   : > { %5922 = vmatprep.subr.bf16.mxu1 %v5921_v20  ;;  %v5683_v20 = vpack.c.bf16 %v1264_v11, %v1256_v47  ;;  %v5939_v24 = vpack.c.bf16 %v1266_v14, %v1258_v13  ;;  %v1322_v59 = vld [vmem:[#allocation5 + $0x1230] sm:$0xff]  ;;  %v1345_v47 = vld [vmem:[#allocation5 + $0x12e8] sm:$0xff]  ;;  %v1339_v11 = vld [vmem:[#allocation5 + $0x12b8] sm:$0xff]  ;;  %v5699_v13 = vpack.c.bf16 %v1328_v4, %v1320_v3 }
 0x2d4   : > { %v1409_v3 = vld [vmem:[#allocation5 + $0x14e8] sm:$0xff]  ;;  %v1403_v4 = vld [vmem:[#allocation5 + $0x14b8] sm:$0xff] }
 0x2d5   : > { %5668 = vmatpush1.bf16.msra.mxu0 %v5667_v42  ;;  %v1274_v42 = vld [vmem:[#allocation5 + $0x10b0] sm:$0xff] }
 0x2d6   : > { %5924 = vmatpush1.bf16.msra.mxu1 %v5923_v26  ;;  %5670 = vmatprep.subr.bf16.mxu0 %v5669_v27  ;;  %v5685_v26 = vpack.c.bf16 %v1281_v19, %v1273_v18  ;;  %v1282_v27 = vld [vmem:[#allocation5 + $0x10f0] sm:$0xff]  ;;  %v1336_v19 = vld [vmem:[#allocation5 + $0x12a0] sm:$0xff] }
 0x2d7   : > { %5926 = vmatprep.subr.bf16.mxu1 %v5925_v32  ;;  %v1291_v32 = vld [vmem:[#allocation5 + $0x1138] sm:$0xff]  ;;  %v5943_v36 = vpack.c.bf16 %v1282_v27, %v1274_v42 }
 0x2d8   : > { %v1355_v42 = vld [vmem:[#allocation5 + $0x1338] sm:$0xff] }
 0x2d9   : > { %5672 = vmatpush1.bf16.msra.mxu0 %v5671_v39  ;;  %v1296_v39 = vld [vmem:[#allocation5 + $0x1160] sm:$0xff] }
 0x2da   : > { %5928 = vmatpush1.bf16.msra.mxu1 %v5927_v8  ;;  %5674 = vmatprep.subr.bf16.mxu0 %v5673_v41  ;;  %v1290_v8 = vld [vmem:[#allocation5 + $0x1130] sm:$0xff]  ;;  %v5945_v41 = vpack.c.bf16 %v1299_v34, %v1291_v32  ;;  %v5691_v50 = vpack.c.bf16 %v1296_v39, %v1288_v37  ;;  %v1360_v32 = vld [vmem:[#allocation5 + $0x1360] sm:$0xff]  ;;  %v1377_v37 = vld [vmem:[#allocation5 + $0x13e8] sm:$0xff] }
 0x2db   : > { %5930 = vmatprep.subr.bf16.mxu1 %v5929_v48  ;;  %v1307_v48 = vld [vmem:[#allocation5 + $0x11b8] sm:$0xff]  ;;  %v5947_v9 = vpack.c.bf16 %v1298_v5, %v1290_v8  ;;  %v1354_v34 = vld [vmem:[#allocation5 + $0x1330] sm:$0xff] }
 0x2dc   : > { %v1371_v39 = vld [vmem:[#allocation5 + $0x13b8] sm:$0xff] }
 0x2dd   : > { %5676 = vmatpush1.bf16.msra.mxu0 %v5675_v55  ;;  %v1306_v55 = vld [vmem:[#allocation5 + $0x11b0] sm:$0xff]  ;;  %v1379_v8 = vld [vmem:[#allocation5 + $0x13f8] sm:$0xff] }
 0x2de   : > { %5932 = vmatpush1.bf16.msra.mxu1 %v5931_v52  ;;  %5678 = vmatprep.subr.bf16.mxu0 %v5677_v58  ;;  %v1321_v58 = vld [vmem:[#allocation5 + $0x1228] sm:$0xff] }
 0x2df   : > { %5934 = vmatprep.subr.bf16.mxu1 %v5933_v0  ;;  %v5695_v0 = vpack.c.bf16 %v1312_v38, %v1304_v16  ;;  %v5697_v2 = vpack.c.bf16 %v1329_v61, %v1321_v58  ;;  %v1393_v16 = vld [vmem:[#allocation5 + $0x1468] sm:$0xff]  ;;  %v1387_v38 = vld [vmem:[#allocation5 + $0x1438] sm:$0xff]  ;;  %v1384_v61 = vld [vmem:[#allocation5 + $0x1420] sm:$0xff] }
 0x2e1   : > { %5680 = vmatpush1.bf16.msra.mxu0 %v5679_v7  ;;  %v5953_v7 = vpack.c.bf16 %v1331_v63, %v1323_v62  ;;  %v1392_v62 = vld [vmem:[#allocation5 + $0x1460] sm:$0xff]  ;;  %v1386_v63 = vld [vmem:[#allocation5 + $0x1430] sm:$0xff] }
 0x2e2   : > { %5936 = vmatpush1.bf16.msra.mxu1 %v5935_v56  ;;  %5682 = vmatprep.subr.bf16.mxu0 %v5681_v10  ;;  %v1330_v56 = vld [vmem:[#allocation5 + $0x1270] sm:$0xff]  ;;  %v1337_v10 = vld [vmem:[#allocation5 + $0x12a8] sm:$0xff] }
 0x2e3   : > { %5938 = vmatprep.subr.bf16.mxu1 %v5937_v12  ;;  %v1347_v12 = vld [vmem:[#allocation5 + $0x12f8] sm:$0xff]  ;;  %v5955_v14 = vpack.c.bf16 %v1330_v56, %v1322_v59  ;;  %v5701_v18 = vpack.c.bf16 %v1345_v47, %v1337_v10  ;;  %v1400_v47 = vld [vmem:[#allocation5 + $0x14a0] sm:$0xff] }
 0x2e4   : > { %2725 = vmatmul.mubr.f32.vlgmr.msra.gmra.mrb[6].mxu0 %v7171_v53  ;;  %v5957_v22 = vpack.c.bf16 %v1347_v12, %v1339_v11  ;;  %v1411_v59 = vld [vmem:[#allocation5 + $0x14f8] sm:$0xff]  ;;  %v1408_v11 = vld [vmem:[#allocation5 + $0x14e0] sm:$0xff]  ;;  %v1402_v12 = vld [vmem:[#allocation5 + $0x14b0] sm:$0xff] }
 0x2e5   : > { %3009 = vmatmul.mubr.f32.vlgmr.msra.gmra.mrb[6].mxu1 %v7171_v53  ;;  %5684 = vmatpush1.bf16.msra.mxu0 %v5683_v20  ;;  %v1315_v53 = vld [vmem:[#allocation5 + $0x11f8] sm:$0xff]  ;;  %v1344_v20 = vld [vmem:[#allocation5 + $0x12e0] sm:$0xff] }
 0x2e6   : > { %2795 = vmatprep.mubr.f32.mxu0 %v7177_v57  ;;  %5940 = vmatpush1.bf16.msra.mxu1 %v5939_v24  ;;  %v5949_v52 = vpack.c.bf16 %v1315_v53, %v1307_v48  ;;  %v1346_v24 = vld [vmem:[#allocation5 + $0x12f0] sm:$0xff]  ;;  %v5703_v27 = vpack.c.bf16 %v1344_v20, %v1336_v19  ;;  %v1376_v48 = vld [vmem:[#allocation5 + $0x13e0] sm:$0xff]  ;;  %v1425_v19 = vld [vmem:[#allocation5 + $0x1568] sm:$0xff] }
 0x2e7   : > { %3079 = vmatprep.mubr.f32.mxu1 %v7177_v57  ;;  %5686 = vmatprep.subr.bf16.mxu0 %v5685_v26  ;;  %v1314_v57 = vld [vmem:[#allocation5 + $0x11f0] sm:$0xff]  ;;  %v1363_v26 = vld [vmem:[#allocation5 + $0x1378] sm:$0xff]  ;;  %v5959_v29 = vpack.c.bf16 %v1346_v24, %v1338_v21 }
 0x2e8   : > { %5942 = vmatprep.subr.bf16.mxu1 %v5941_v31  ;;  %v5951_v1 = vpack.c.bf16 %v1314_v57, %v1306_v55  ;;  %v1352_v31 = vld [vmem:[#allocation5 + $0x1320] sm:$0xff]  ;;  %v1370_v53 = vld [vmem:[#allocation5 + $0x13b0] sm:$0xff]  ;;  %v1395_v55 = vld [vmem:[#allocation5 + $0x1478] sm:$0xff] }
 0x2e9   : > { %5688 = vmatpush1.bf16.msra.mxu0 %v5687_v35  ;;  %v5961_v35 = vpack.c.bf16 %v1363_v26, %v1355_v42  ;;  %v1419_v20 = vld [vmem:[#allocation5 + $0x1538] sm:$0xff]  ;;  %v1424_v42 = vld [vmem:[#allocation5 + $0x1560] sm:$0xff]  ;;  %v1418_v26 = vld [vmem:[#allocation5 + $0x1530] sm:$0xff] }
 0x2ea   : > { %5944 = vmatpush1.bf16.msra.mxu1 %v5943_v36  ;;  %5690 = vmatprep.subr.bf16.mxu0 %v5689_v43  ;;  %v1362_v36 = vld [vmem:[#allocation5 + $0x1370] sm:$0xff]  ;;  %v1369_v43 = vld [vmem:[#allocation5 + $0x13a8] sm:$0xff]  ;;  %v1427_v21 = vld [vmem:[#allocation5 + $0x1578] sm:$0xff] }
 0x2eb   : > { %5946 = vmatprep.subr.bf16.mxu1 %v5945_v41  ;;  %v5707_v41 = vpack.c.bf16 %v1360_v32, %v1352_v31  ;;  %v5963_v5 = vpack.c.bf16 %v1362_v36, %v1354_v34  ;;  %v5709_v45 = vpack.c.bf16 %v1377_v37, %v1369_v43  ;;  %v1441_v31 = vld [vmem:[#allocation5 + $0x15e8] sm:$0xff]  ;;  %v1435_v32 = vld [vmem:[#allocation5 + $0x15b8] sm:$0xff]  ;;  %v1432_v37 = vld [vmem:[#allocation5 + $0x15a0] sm:$0xff] }
 0x2ec   : > { %v1443_v34 = vld [vmem:[#allocation5 + $0x15f8] sm:$0xff] }
 0x2ed   : > { %5692 = vmatpush1.bf16.msra.mxu0 %v5691_v50  ;;  %v5965_v50 = vpack.c.bf16 %v1379_v8, %v1371_v39  ;;  %v1440_v39 = vld [vmem:[#allocation5 + $0x15e0] sm:$0xff]  ;;  %v1434_v8 = vld [vmem:[#allocation5 + $0x15b0] sm:$0xff] }
 0x2ee   : > { %5948 = vmatpush1.bf16.msra.mxu1 %v5947_v9  ;;  %5694 = vmatprep.subr.bf16.mxu0 %v5693_v54  ;;  %v1378_v9 = vld [vmem:[#allocation5 + $0x13f0] sm:$0xff]  ;;  %v1385_v54 = vld [vmem:[#allocation5 + $0x1428] sm:$0xff] }
 0x2ef   : > { %5950 = vmatprep.subr.bf16.mxu1 %v5949_v52  ;;  %v5711_v52 = vpack.c.bf16 %v1376_v48, %v1368_v46  ;;  %v5967_v57 = vpack.c.bf16 %v1378_v9, %v1370_v53  ;;  %v5713_v58 = vpack.c.bf16 %v1393_v16, %v1385_v54  ;;  %v1457_v46 = vld [vmem:[#allocation5 + $0x1668] sm:$0xff]  ;;  %v1451_v48 = vld [vmem:[#allocation5 + $0x1638] sm:$0xff]  ;;  %v1448_v16 = vld [vmem:[#allocation5 + $0x1620] sm:$0xff] }
 0x2f0   : > { %v1459_v53 = vld [vmem:[#allocation5 + $0x1678] sm:$0xff] }
 0x2f1   : > { %5696 = vmatpush1.bf16.msra.mxu0 %v5695_v0  ;;  %v5969_v0 = vpack.c.bf16 %v1395_v55, %v1387_v38  ;;  %v1456_v38 = vld [vmem:[#allocation5 + $0x1660] sm:$0xff]  ;;  %v1450_v55 = vld [vmem:[#allocation5 + $0x1630] sm:$0xff] }
 0x2f2   : > { %5952 = vmatpush1.bf16.msra.mxu1 %v5951_v1  ;;  %5698 = vmatprep.subr.bf16.mxu0 %v5697_v2  ;;  %v1394_v1 = vld [vmem:[#allocation5 + $0x1470] sm:$0xff]  ;;  %v1401_v2 = vld [vmem:[#allocation5 + $0x14a8] sm:$0xff] }
 0x2f3   : > { %5954 = vmatprep.subr.bf16.mxu1 %v5953_v7  ;;  %v5715_v7 = vpack.c.bf16 %v1392_v62, %v1384_v61  ;;  %v5971_v56 = vpack.c.bf16 %v1394_v1, %v1386_v63  ;;  %v5717_v10 = vpack.c.bf16 %v1409_v3, %v1401_v2  ;;  %v1473_v61 = vld [vmem:[#allocation5 + $0x16e8] sm:$0xff]  ;;  %v1467_v62 = vld [vmem:[#allocation5 + $0x16b8] sm:$0xff]  ;;  %v1464_v3 = vld [vmem:[#allocation5 + $0x16a0] sm:$0xff] }
 0x2f4   : > { %v1475_v63 = vld [vmem:[#allocation5 + $0x16f8] sm:$0xff] }
 0x2f5   : > { %5700 = vmatpush1.bf16.msra.mxu0 %v5699_v13  ;;  %v5973_v13 = vpack.c.bf16 %v1411_v59, %v1403_v4  ;;  %v1472_v4 = vld [vmem:[#allocation5 + $0x16e0] sm:$0xff]  ;;  %v1466_v59 = vld [vmem:[#allocation5 + $0x16b0] sm:$0xff] }
 0x2f6   : > { %5956 = vmatpush1.bf16.msra.mxu1 %v5955_v14  ;;  %5702 = vmatprep.subr.bf16.mxu0 %v5701_v18  ;;  %v1410_v14 = vld [vmem:[#allocation5 + $0x14f0] sm:$0xff]  ;;  %v1417_v18 = vld [vmem:[#allocation5 + $0x1528] sm:$0xff] }
 0x2f7   : > { %5958 = vmatprep.subr.bf16.mxu1 %v5957_v22  ;;  %v5719_v22 = vpack.c.bf16 %v1408_v11, %v1400_v47  ;;  %v5975_v24 = vpack.c.bf16 %v1410_v14, %v1402_v12  ;;  %v5721_v33 = vpack.c.bf16 %v1425_v19, %v1417_v18  ;;  %v1489_v47 = vld [vmem:[#allocation5 + $0x1768] sm:$0xff]  ;;  %v1483_v11 = vld [vmem:[#allocation5 + $0x1738] sm:$0xff]  ;;  %v1480_v19 = vld [vmem:[#allocation5 + $0x1720] sm:$0xff] }
 0x2f8   : > { %v1491_v12 = vld [vmem:[#allocation5 + $0x1778] sm:$0xff] }
 0x2f9   : > { %5704 = vmatpush1.bf16.msra.mxu0 %v5703_v27  ;;  %v5977_v27 = vpack.c.bf16 %v1427_v21, %v1419_v20  ;;  %v1488_v20 = vld [vmem:[#allocation5 + $0x1760] sm:$0xff]  ;;  %v1482_v21 = vld [vmem:[#allocation5 + $0x1730] sm:$0xff] }
 0x2fa   : > { %5960 = vmatpush1.bf16.msra.mxu1 %v5959_v29  ;;  %5706 = vmatprep.subr.bf16.mxu0 %v5705_v30  ;;  %v1426_v29 = vld [vmem:[#allocation5 + $0x1570] sm:$0xff]  ;;  %v1433_v30 = vld [vmem:[#allocation5 + $0x15a8] sm:$0xff] }
 0x2fb   : > { %5962 = vmatprep.subr.bf16.mxu1 %v5961_v35  ;;  %v5723_v35 = vpack.c.bf16 %v1424_v42, %v1416_v25  ;;  %v5979_v36 = vpack.c.bf16 %v1426_v29, %v1418_v26  ;;  %v5725_v43 = vpack.c.bf16 %v1441_v31, %v1433_v30  ;;  %v1505_v25 = vld [vmem:[#allocation5 + $0x17e8] sm:$0xff]  ;;  %v1499_v42 = vld [vmem:[#allocation5 + $0x17b8] sm:$0xff]  ;;  %v1496_v31 = vld [vmem:[#allocation5 + $0x17a0] sm:$0xff] }
 0x2fc   : > { %v1507_v26 = vld [vmem:[#allocation5 + $0x17f8] sm:$0xff] }
 0x2fd   : > { %5708 = vmatpush1.bf16.msra.mxu0 %v5707_v41  ;;  %v5981_v41 = vpack.c.bf16 %v1443_v34, %v1435_v32  ;;  %v1504_v32 = vld [vmem:[#allocation5 + $0x17e0] sm:$0xff]  ;;  %v1498_v34 = vld [vmem:[#allocation5 + $0x17b0] sm:$0xff] }
 0x2fe   : > { %5964 = vmatpush1.bf16.msra.mxu1 %v5963_v5  ;;  %5710 = vmatprep.subr.bf16.mxu0 %v5709_v45  ;;  %v1442_v5 = vld [vmem:[#allocation5 + $0x15f0] sm:$0xff]  ;;  %v1449_v45 = vld [vmem:[#allocation5 + $0x1628] sm:$0xff] }
 0x2ff   : > { %5966 = vmatprep.subr.bf16.mxu1 %v5965_v50  ;;  %v5727_v50 = vpack.c.bf16 %v1440_v39, %v1432_v37  ;;  %v5983_v9 = vpack.c.bf16 %v1442_v5, %v1434_v8  ;;  %v5729_v54 = vpack.c.bf16 %v1457_v46, %v1449_v45  ;;  %v1521_v37 = vld [vmem:[#allocation5 + $0x1868] sm:$0xff]  ;;  %v1515_v39 = vld [vmem:[#allocation5 + $0x1838] sm:$0xff]  ;;  %v1512_v46 = vld [vmem:[#allocation5 + $0x1820] sm:$0xff] }
 0x300   : > { %v1523_v8 = vld [vmem:[#allocation5 + $0x1878] sm:$0xff] }
 0x301   : > { %5712 = vmatpush1.bf16.msra.mxu0 %v5711_v52  ;;  %v5985_v52 = vpack.c.bf16 %v1459_v53, %v1451_v48  ;;  %v1520_v48 = vld [vmem:[#allocation5 + $0x1860] sm:$0xff]  ;;  %v6001_v53 = vpack.c.bf16 %v1523_v8, %v1515_v39  ;;  %v1586_v8 = vld [vmem:[#allocation5 + $0x1a70] sm:$0xff] }
 0x302   : > { %5968 = vmatpush1.bf16.msra.mxu1 %v5967_v57  ;;  %5714 = vmatprep.subr.bf16.mxu0 %v5713_v58  ;;  %v1458_v57 = vld [vmem:[#allocation5 + $0x1670] sm:$0xff]  ;;  %v1465_v58 = vld [vmem:[#allocation5 + $0x16a8] sm:$0xff] }
 0x303   : > { %5970 = vmatprep.subr.bf16.mxu1 %v5969_v0  ;;  %v5731_v0 = vpack.c.bf16 %v1456_v38, %v1448_v16  ;;  %v5987_v1 = vpack.c.bf16 %v1458_v57, %v1450_v55  ;;  %v5733_v2 = vpack.c.bf16 %v1473_v61, %v1465_v58  ;;  %v1537_v16 = vld [vmem:[#allocation5 + $0x18e8] sm:$0xff]  ;;  %v5747_v38 = vpack.c.bf16 %v1520_v48, %v1512_v46  ;;  %v1531_v55 = vld [vmem:[#allocation5 + $0x18b8] sm:$0xff]  ;;  %v1528_v58 = vld [vmem:[#allocation5 + $0x18a0] sm:$0xff] }
 0x304   : > { %v1536_v61 = vld [vmem:[#allocation5 + $0x18e0] sm:$0xff]  ;;  %v1603_v46 = vld [vmem:[#allocation5 + $0x1af8] sm:$0xff] }
 0x305   : > { %5716 = vmatpush1.bf16.msra.mxu0 %v5715_v7  ;;  %v5989_v7 = vpack.c.bf16 %v1475_v63, %v1467_v62  ;;  %v1530_v62 = vld [vmem:[#allocation5 + $0x18b0] sm:$0xff] }
 0x306   : > { %5972 = vmatpush1.bf16.msra.mxu1 %v5971_v56  ;;  %5718 = vmatprep.subr.bf16.mxu0 %v5717_v10  ;;  %v1474_v56 = vld [vmem:[#allocation5 + $0x16f0] sm:$0xff]  ;;  %v1481_v10 = vld [vmem:[#allocation5 + $0x1728] sm:$0xff] }
 0x307   : > { %5974 = vmatprep.subr.bf16.mxu1 %v5973_v13  ;;  %v5735_v13 = vpack.c.bf16 %v1472_v4, %v1464_v3  ;;  %v5991_v14 = vpack.c.bf16 %v1474_v56, %v1466_v59  ;;  %v5737_v18 = vpack.c.bf16 %v1489_v47, %v1481_v10  ;;  %v1547_v4 = vld [vmem:[#allocation5 + $0x1938] sm:$0xff]  ;;  %v1544_v47 = vld [vmem:[#allocation5 + $0x1920] sm:$0xff] }
 0x308   : > { %v1555_v59 = vld [vmem:[#allocation5 + $0x1978] sm:$0xff] }
 0x309   : > { %5720 = vmatpush1.bf16.msra.mxu0 %v5719_v22  ;;  %v5993_v22 = vpack.c.bf16 %v1491_v12, %v1483_v11  ;;  %v1552_v11 = vld [vmem:[#allocation5 + $0x1960] sm:$0xff]  ;;  %v1546_v12 = vld [vmem:[#allocation5 + $0x1930] sm:$0xff] }
 0x30a   : > { %5976 = vmatpush1.bf16.msra.mxu1 %v5975_v24  ;;  %5722 = vmatprep.subr.bf16.mxu0 %v5721_v33  ;;  %v1490_v24 = vld [vmem:[#allocation5 + $0x1770] sm:$0xff]  ;;  %v1497_v33 = vld [vmem:[#allocation5 + $0x17a8] sm:$0xff] }
 0x30b   : > { %5978 = vmatprep.subr.bf16.mxu1 %v5977_v27  ;;  %v5739_v27 = vpack.c.bf16 %v1488_v20, %v1480_v19  ;;  %v5995_v29 = vpack.c.bf16 %v1490_v24, %v1482_v21  ;;  %v5741_v30 = vpack.c.bf16 %v1505_v25, %v1497_v33  ;;  %v1569_v19 = vld [vmem:[#allocation5 + $0x19e8] sm:$0xff]  ;;  %v1563_v20 = vld [vmem:[#allocation5 + $0x19b8] sm:$0xff]  ;;  %v5755_v21 = vpack.c.bf16 %v1552_v11, %v1544_v47  ;;  %v1560_v33 = vld [vmem:[#allocation5 + $0x19a0] sm:$0xff] }
 0x30c   : > { %v1568_v25 = vld [vmem:[#allocation5 + $0x19e0] sm:$0xff]  ;;  %v1635_v47 = vld [vmem:[#allocation5 + $0x1bf8] sm:$0xff] }
 0x30d   : > { %5724 = vmatpush1.bf16.msra.mxu0 %v5723_v35  ;;  %v5997_v35 = vpack.c.bf16 %v1507_v26, %v1499_v42  ;;  %v1562_v42 = vld [vmem:[#allocation5 + $0x19b0] sm:$0xff] }
 0x30e   : > { %5980 = vmatpush1.bf16.msra.mxu1 %v5979_v36  ;;  %5726 = vmatprep.subr.bf16.mxu0 %v5725_v43  ;;  %v1506_v36 = vld [vmem:[#allocation5 + $0x17f0] sm:$0xff]  ;;  %v1513_v43 = vld [vmem:[#allocation5 + $0x1828] sm:$0xff] }
 0x30f   : > { %5982 = vmatprep.subr.bf16.mxu1 %v5981_v41  ;;  %v5743_v41 = vpack.c.bf16 %v1504_v32, %v1496_v31  ;;  %v5999_v5 = vpack.c.bf16 %v1506_v36, %v1498_v34  ;;  %v5745_v45 = vpack.c.bf16 %v1521_v37, %v1513_v43  ;;  %v1587_v31 = vld [vmem:[#allocation5 + $0x1a78] sm:$0xff]  ;;  %v5759_v32 = vpack.c.bf16 %v1568_v25, %v1560_v33  ;;  %v1576_v36 = vld [vmem:[#allocation5 + $0x1a20] sm:$0xff]  ;;  %v1578_v37 = vld [vmem:[#allocation5 + $0x1a30] sm:$0xff] }
 0x310   : > { %v1584_v43 = vld [vmem:[#allocation5 + $0x1a60] sm:$0xff]  ;;  %v1651_v33 = vld [vmem:[#allocation5 + $0x1c78] sm:$0xff] }
 0x311   : > { %5728 = vmatpush1.bf16.msra.mxu0 %v5727_v50  ;;  %v1514_v50 = vld [vmem:[#allocation5 + $0x1830] sm:$0xff]  ;;  %v5763_v48 = vpack.c.bf16 %v1584_v43, %v1576_v36  ;;  %v1667_v36 = vld [vmem:[#allocation5 + $0x1cf8] sm:$0xff] }
 0x312   : > { %5984 = vmatpush1.bf16.msra.mxu1 %v5983_v9  ;;  %5730 = vmatprep.subr.bf16.mxu0 %v5729_v54  ;;  %v1522_v9 = vld [vmem:[#allocation5 + $0x1870] sm:$0xff]  ;;  %v1529_v54 = vld [vmem:[#allocation5 + $0x18a8] sm:$0xff] }
 0x313   : > { %5986 = vmatprep.subr.bf16.mxu1 %v5985_v52  ;;  %v1539_v52 = vld [vmem:[#allocation5 + $0x18f8] sm:$0xff]  ;;  %v6003_v57 = vpack.c.bf16 %v1522_v9, %v1514_v50  ;;  %v5749_v63 = vpack.c.bf16 %v1537_v16, %v1529_v54  ;;  %v1592_v9 = vld [vmem:[#allocation5 + $0x1aa0] sm:$0xff]  ;;  %v1594_v16 = vld [vmem:[#allocation5 + $0x1ab0] sm:$0xff] }
 0x314   : > { %v6005_v3 = vpack.c.bf16 %v1539_v52, %v1531_v55  ;;  %v1600_v54 = vld [vmem:[#allocation5 + $0x1ae0] sm:$0xff]  ;;  %v1602_v55 = vld [vmem:[#allocation5 + $0x1af0] sm:$0xff]  ;;  %v1609_v52 = vld [vmem:[#allocation5 + $0x1b28] sm:$0xff] }
 0x315   : > { %5732 = vmatpush1.bf16.msra.mxu0 %v5731_v0  ;;  %v1538_v0 = vld [vmem:[#allocation5 + $0x18f0] sm:$0xff] }
 0x316   : > { %5988 = vmatpush1.bf16.msra.mxu1 %v5987_v1  ;;  %5734 = vmatprep.subr.bf16.mxu0 %v5733_v2  ;;  %v1545_v1 = vld [vmem:[#allocation5 + $0x1928] sm:$0xff]  ;;  %v6007_v56 = vpack.c.bf16 %v1538_v0, %v1530_v62  ;;  %v5767_v62 = vpack.c.bf16 %v1600_v54, %v1592_v9  ;;  %v1683_v9 = vld [vmem:[#allocation5 + $0x1d78] sm:$0xff] }
 0x317   : > { %5990 = vmatprep.subr.bf16.mxu1 %v5989_v7  ;;  %v1553_v2 = vld [vmem:[#allocation5 + $0x1968] sm:$0xff]  ;;  %v5751_v7 = vpack.c.bf16 %v1536_v61, %v1528_v58  ;;  %v1611_v58 = vld [vmem:[#allocation5 + $0x1b38] sm:$0xff] }
 0x318   : > { %v5753_v10 = vpack.c.bf16 %v1553_v2, %v1545_v1  ;;  %v1619_v61 = vld [vmem:[#allocation5 + $0x1b78] sm:$0xff]  ;;  %v1608_v1 = vld [vmem:[#allocation5 + $0x1b20] sm:$0xff] }
 0x319   : > { %5736 = vmatpush1.bf16.msra.mxu0 %v5735_v13  ;;  %v6009_v13 = vpack.c.bf16 %v1555_v59, %v1547_v4  ;;  %v1616_v2 = vld [vmem:[#allocation5 + $0x1b60] sm:$0xff]  ;;  %v6025_v4 = vpack.c.bf16 %v1619_v61, %v1611_v58  ;;  %v1618_v59 = vld [vmem:[#allocation5 + $0x1b70] sm:$0xff] }
 0x31a   : > { %5992 = vmatpush1.bf16.msra.mxu1 %v5991_v14  ;;  %5738 = vmatprep.subr.bf16.mxu0 %v5737_v18  ;;  %v1554_v14 = vld [vmem:[#allocation5 + $0x1970] sm:$0xff]  ;;  %v1561_v18 = vld [vmem:[#allocation5 + $0x19a8] sm:$0xff]  ;;  %v5771_v11 = vpack.c.bf16 %v1616_v2, %v1608_v1  ;;  %v1699_v1 = vld [vmem:[#allocation5 + $0x1df8] sm:$0xff] }
 0x31b   : > { %5994 = vmatprep.subr.bf16.mxu1 %v5993_v22  ;;  %v6011_v22 = vpack.c.bf16 %v1554_v14, %v1546_v12  ;;  %v5757_v24 = vpack.c.bf16 %v1569_v19, %v1561_v18  ;;  %v1624_v14 = vld [vmem:[#allocation5 + $0x1ba0] sm:$0xff]  ;;  %v1626_v19 = vld [vmem:[#allocation5 + $0x1bb0] sm:$0xff] }
 0x31c   : > { %v1632_v18 = vld [vmem:[#allocation5 + $0x1be0] sm:$0xff]  ;;  %v1682_v61 = vld [vmem:[#allocation5 + $0x1d70] sm:$0xff] }
 0x31d   : > { %5740 = vmatpush1.bf16.msra.mxu0 %v5739_v27  ;;  %v1577_v27 = vld [vmem:[#allocation5 + $0x1a28] sm:$0xff]  ;;  %v5775_v25 = vpack.c.bf16 %v1632_v18, %v1624_v14  ;;  %v1715_v14 = vld [vmem:[#allocation5 + $0x1e78] sm:$0xff] }
 0x31e   : > { %5996 = vmatpush1.bf16.msra.mxu1 %v5995_v29  ;;  %5742 = vmatprep.subr.bf16.mxu0 %v5741_v30  ;;  %v1585_v29 = vld [vmem:[#allocation5 + $0x1a68] sm:$0xff]  ;;  %v1579_v30 = vld [vmem:[#allocation5 + $0x1a38] sm:$0xff] }
 0x31f   : > { %5998 = vmatprep.subr.bf16.mxu1 %v5997_v35  ;;  %v5761_v35 = vpack.c.bf16 %v1585_v29, %v1577_v27  ;;  %v6017_v39 = vpack.c.bf16 %v1587_v31, %v1579_v30  ;;  %v1648_v27 = vld [vmem:[#allocation5 + $0x1c60] sm:$0xff]  ;;  %v1642_v29 = vld [vmem:[#allocation5 + $0x1c30] sm:$0xff] }
 0x320   : > { %v1650_v31 = vld [vmem:[#allocation5 + $0x1c70] sm:$0xff] }
 0x321   : > { %5744 = vmatpush1.bf16.msra.mxu0 %v5743_v41  ;;  %v1593_v41 = vld [vmem:[#allocation5 + $0x1aa8] sm:$0xff] }
 0x322   : > { %6000 = vmatpush1.bf16.msra.mxu1 %v5999_v5  ;;  %5746 = vmatprep.subr.bf16.mxu0 %v5745_v45  ;;  %v1601_v5 = vld [vmem:[#allocation5 + $0x1ae8] sm:$0xff]  ;;  %v1595_v45 = vld [vmem:[#allocation5 + $0x1ab8] sm:$0xff] }
 0x323   : > { %6002 = vmatprep.subr.bf16.mxu1 %v6001_v53  ;;  %v6019_v53 = vpack.c.bf16 %v1586_v8, %v1578_v37  ;;  %v5765_v50 = vpack.c.bf16 %v1601_v5, %v1593_v41  ;;  %v6035_v37 = vpack.c.bf16 %v1650_v31, %v1642_v29  ;;  %v1656_v8 = vld [vmem:[#allocation5 + $0x1ca0] sm:$0xff]  ;;  %v1658_v5 = vld [vmem:[#allocation5 + $0x1cb0] sm:$0xff] }
 0x324   : > { %2796 = vmatmul.mubr.f32.vlgmr.msra.gmra.mrb[6].mxu0 %v7207_v49  ;;  %v1664_v41 = vld [vmem:[#allocation5 + $0x1ce0] sm:$0xff] }
 0x325   : > { %3080 = vmatmul.mubr.f32.vlgmr.msra.gmra.mrb[6].mxu1 %v7207_v49  ;;  %5748 = vmatpush1.bf16.msra.mxu0 %v5747_v38  ;;  %v1571_v49 = vld [vmem:[#allocation5 + $0x19f8] sm:$0xff]  ;;  %v6021_v38 = vpack.c.bf16 %v1603_v46, %v1595_v45  ;;  %v1666_v46 = vld [vmem:[#allocation5 + $0x1cf0] sm:$0xff]  ;;  %v5783_v54 = vpack.c.bf16 %v1664_v41, %v1656_v8  ;;  %v1720_v31 = vld [vmem:[#allocation5 + $0x1ea0] sm:$0xff] }
 0x326   : > { %2866 = vmatprep.mubr.f32.mxu0 %v7209_v60  ;;  %6004 = vmatpush1.bf16.msra.mxu1 %v6003_v57  ;;  %v6013_v26 = vpack.c.bf16 %v1571_v49, %v1563_v20  ;;  %v1617_v57 = vld [vmem:[#allocation5 + $0x1b68] sm:$0xff]  ;;  %v1634_v49 = vld [vmem:[#allocation5 + $0x1bf0] sm:$0xff]  ;;  %v1747_v8 = vld [vmem:[#allocation5 + $0x1f78] sm:$0xff] }
 0x327   : > { %3150 = vmatprep.mubr.f32.mxu1 %v7209_v60  ;;  %5750 = vmatprep.subr.bf16.mxu0 %v5749_v63  ;;  %v1570_v60 = vld [vmem:[#allocation5 + $0x19f0] sm:$0xff]  ;;  %v6023_v63 = vpack.c.bf16 %v1602_v55, %v1594_v16  ;;  %v5769_v0 = vpack.c.bf16 %v1617_v57, %v1609_v52  ;;  %v6039_v16 = vpack.c.bf16 %v1666_v46, %v1658_v5  ;;  %v1672_v55 = vld [vmem:[#allocation5 + $0x1d20] sm:$0xff] }
 0x328   : > { %6006 = vmatprep.subr.bf16.mxu1 %v6005_v3  ;;  %v6015_v34 = vpack.c.bf16 %v1570_v60, %v1562_v42  ;;  %v1610_v3 = vld [vmem:[#allocation5 + $0x1b30] sm:$0xff]  ;;  %v6031_v42 = vpack.c.bf16 %v1634_v49, %v1626_v19  ;;  %v1640_v60 = vld [vmem:[#allocation5 + $0x1c20] sm:$0xff] }
 0x329   : > { %5752 = vmatpush1.bf16.msra.mxu0 %v5751_v7  ;;  %v1625_v7 = vld [vmem:[#allocation5 + $0x1ba8] sm:$0xff]  ;;  %v6027_v12 = vpack.c.bf16 %v1618_v59, %v1610_v3  ;;  %v5779_v43 = vpack.c.bf16 %v1648_v27, %v1640_v60  ;;  %v1680_v52 = vld [vmem:[#allocation5 + $0x1d60] sm:$0xff]  ;;  %v1674_v57 = vld [vmem:[#allocation5 + $0x1d30] sm:$0xff] }
 0x32a   : > { %6008 = vmatpush1.bf16.msra.mxu1 %v6007_v56  ;;  %5754 = vmatprep.subr.bf16.mxu0 %v5753_v10  ;;  %v1633_v56 = vld [vmem:[#allocation5 + $0x1be8] sm:$0xff]  ;;  %v1627_v10 = vld [vmem:[#allocation5 + $0x1bb8] sm:$0xff]  ;;  %v5787_v2 = vpack.c.bf16 %v1680_v52, %v1672_v55  ;;  %v6043_v3 = vpack.c.bf16 %v1682_v61, %v1674_v57  ;;  %v1688_v59 = vld [vmem:[#allocation5 + $0x1da0] sm:$0xff] }
 0x32b   : > { %6010 = vmatprep.subr.bf16.mxu1 %v6009_v13  ;;  %v5773_v13 = vpack.c.bf16 %v1633_v56, %v1625_v7  ;;  %v6029_v20 = vpack.c.bf16 %v1635_v47, %v1627_v10  ;;  %v1696_v7 = vld [vmem:[#allocation5 + $0x1de0] sm:$0xff]  ;;  %v1690_v56 = vld [vmem:[#allocation5 + $0x1db0] sm:$0xff]  ;;  %v1731_v60 = vld [vmem:[#allocation5 + $0x1ef8] sm:$0xff] }
 0x32c   : > { %v1698_v47 = vld [vmem:[#allocation5 + $0x1df0] sm:$0xff]  ;;  %v5791_v18 = vpack.c.bf16 %v1696_v7, %v1688_v59  ;;  %v1704_v49 = vld [vmem:[#allocation5 + $0x1e20] sm:$0xff]  ;;  %v1763_v55 = vld [vmem:[#allocation5 + $0x1ff8] sm:$0xff] }
 0x32d   : > { %5756 = vmatpush1.bf16.msra.mxu0 %v5755_v21  ;;  %v1641_v21 = vld [vmem:[#allocation5 + $0x1c28] sm:$0xff]  ;;  %v6047_v19 = vpack.c.bf16 %v1698_v47, %v1690_v56  ;;  %v1736_v46 = vld [vmem:[#allocation5 + $0x1f20] sm:$0xff]  ;;  %v1779_v59 = vld [vmem:[#allocation5 + $0x2078] sm:$0xff] }
 0x32e   : > { %6012 = vmatpush1.bf16.msra.mxu1 %v6011_v22  ;;  %5758 = vmatprep.subr.bf16.mxu0 %v5757_v24  ;;  %v1649_v22 = vld [vmem:[#allocation5 + $0x1c68] sm:$0xff]  ;;  %v1643_v24 = vld [vmem:[#allocation5 + $0x1c38] sm:$0xff]  ;;  %v1752_v61 = vld [vmem:[#allocation5 + $0x1fa0] sm:$0xff] }
 0x32f   : > { %6014 = vmatprep.subr.bf16.mxu1 %v6013_v26  ;;  %v5777_v26 = vpack.c.bf16 %v1649_v22, %v1641_v21  ;;  %v6033_v30 = vpack.c.bf16 %v1651_v33, %v1643_v24  ;;  %v1712_v21 = vld [vmem:[#allocation5 + $0x1e60] sm:$0xff]  ;;  %v1706_v22 = vld [vmem:[#allocation5 + $0x1e30] sm:$0xff] }
 0x330   : > { %v1714_v33 = vld [vmem:[#allocation5 + $0x1e70] sm:$0xff]  ;;  %v5795_v27 = vpack.c.bf16 %v1712_v21, %v1704_v49  ;;  %v1768_v47 = vld [vmem:[#allocation5 + $0x2020] sm:$0xff]  ;;  %v1787_v49 = vld [vmem:[#allocation5 + $0x20b8] sm:$0xff] }
 0x331   : > { %5760 = vmatpush1.bf16.msra.mxu0 %v5759_v32  ;;  %v1657_v32 = vld [vmem:[#allocation5 + $0x1ca8] sm:$0xff]  ;;  %v6051_v29 = vpack.c.bf16 %v1714_v33, %v1706_v22  ;;  %v1795_v21 = vld [vmem:[#allocation5 + $0x20f8] sm:$0xff]  ;;  %v1792_v33 = vld [vmem:[#allocation5 + $0x20e0] sm:$0xff] }
 0x332   : > { %6016 = vmatpush1.bf16.msra.mxu1 %v6015_v34  ;;  %5762 = vmatprep.subr.bf16.mxu0 %v5761_v35  ;;  %v1665_v34 = vld [vmem:[#allocation5 + $0x1ce8] sm:$0xff]  ;;  %v1659_v35 = vld [vmem:[#allocation5 + $0x1cb8] sm:$0xff] }
 0x333   : > { %6018 = vmatprep.subr.bf16.mxu1 %v6017_v39  ;;  %v5781_v39 = vpack.c.bf16 %v1665_v34, %v1657_v32  ;;  %v6037_v45 = vpack.c.bf16 %v1667_v36, %v1659_v35  ;;  %v1728_v32 = vld [vmem:[#allocation5 + $0x1ee0] sm:$0xff]  ;;  %v1722_v34 = vld [vmem:[#allocation5 + $0x1eb0] sm:$0xff] }
 0x334   : > { %v1730_v36 = vld [vmem:[#allocation5 + $0x1ef0] sm:$0xff]  ;;  %v5799_v41 = vpack.c.bf16 %v1728_v32, %v1720_v31  ;;  %v1811_v31 = vld [vmem:[#allocation5 + $0x2178] sm:$0xff] }
 0x335   : > { %5764 = vmatpush1.bf16.msra.mxu0 %v5763_v48  ;;  %v1673_v48 = vld [vmem:[#allocation5 + $0x1d28] sm:$0xff]  ;;  %v6055_v5 = vpack.c.bf16 %v1730_v36, %v1722_v34  ;;  %v1800_v36 = vld [vmem:[#allocation5 + $0x2120] sm:$0xff] }
 0x336   : > { %6020 = vmatpush1.bf16.msra.mxu1 %v6019_v53  ;;  %5766 = vmatprep.subr.bf16.mxu0 %v5765_v50  ;;  %v1681_v53 = vld [vmem:[#allocation5 + $0x1d68] sm:$0xff]  ;;  %v1675_v50 = vld [vmem:[#allocation5 + $0x1d38] sm:$0xff] }
 0x337   : > { %6022 = vmatprep.subr.bf16.mxu1 %v6021_v38  ;;  %v5785_v38 = vpack.c.bf16 %v1681_v53, %v1673_v48  ;;  %v6041_v58 = vpack.c.bf16 %v1683_v9, %v1675_v50  ;;  %v1744_v48 = vld [vmem:[#allocation5 + $0x1f60] sm:$0xff]  ;;  %v1738_v53 = vld [vmem:[#allocation5 + $0x1f30] sm:$0xff] }
 0x338   : > { %v1746_v9 = vld [vmem:[#allocation5 + $0x1f70] sm:$0xff]  ;;  %v5803_v52 = vpack.c.bf16 %v1744_v48, %v1736_v46 }
 0x339   : > { %5768 = vmatpush1.bf16.msra.mxu0 %v5767_v62  ;;  %v1689_v62 = vld [vmem:[#allocation5 + $0x1da8] sm:$0xff]  ;;  %v6059_v57 = vpack.c.bf16 %v1746_v9, %v1738_v53  ;;  %v1824_v9 = vld [vmem:[#allocation5 + $0x21e0] sm:$0xff] }
 0x33a   : > { %6024 = vmatpush1.bf16.msra.mxu1 %v6023_v63  ;;  %5770 = vmatprep.subr.bf16.mxu0 %v5769_v0  ;;  %v1697_v63 = vld [vmem:[#allocation5 + $0x1de8] sm:$0xff]  ;;  %v1691_v0 = vld [vmem:[#allocation5 + $0x1db8] sm:$0xff] }
 0x33b   : > { %6026 = vmatprep.subr.bf16.mxu1 %v6025_v4  ;;  %v5789_v4 = vpack.c.bf16 %v1697_v63, %v1689_v62  ;;  %v6045_v10 = vpack.c.bf16 %v1699_v1, %v1691_v0  ;;  %v1760_v62 = vld [vmem:[#allocation5 + $0x1fe0] sm:$0xff]  ;;  %v1754_v63 = vld [vmem:[#allocation5 + $0x1fb0] sm:$0xff] }
 0x33c   : > { %v1762_v1 = vld [vmem:[#allocation5 + $0x1ff0] sm:$0xff]  ;;  %v5807_v7 = vpack.c.bf16 %v1760_v62, %v1752_v61 }
 0x33d   : > { %5772 = vmatpush1.bf16.msra.mxu0 %v5771_v11  ;;  %v1705_v11 = vld [vmem:[#allocation5 + $0x1e28] sm:$0xff]  ;;  %v6063_v56 = vpack.c.bf16 %v1762_v1, %v1754_v63  ;;  %v1832_v63 = vld [vmem:[#allocation5 + $0x2220] sm:$0xff]  ;;  %v1834_v1 = vld [vmem:[#allocation5 + $0x2230] sm:$0xff] }
 0x33e   : > { %6028 = vmatpush1.bf16.msra.mxu1 %v6027_v12  ;;  %5774 = vmatprep.subr.bf16.mxu0 %v5773_v13  ;;  %v1713_v12 = vld [vmem:[#allocation5 + $0x1e68] sm:$0xff]  ;;  %v1707_v13 = vld [vmem:[#allocation5 + $0x1e38] sm:$0xff] }
 0x33f   : > { %6030 = vmatprep.subr.bf16.mxu1 %v6029_v20  ;;  %v5793_v20 = vpack.c.bf16 %v1713_v12, %v1705_v11  ;;  %v6049_v24 = vpack.c.bf16 %v1715_v14, %v1707_v13  ;;  %v1776_v11 = vld [vmem:[#allocation5 + $0x2060] sm:$0xff]  ;;  %v1770_v13 = vld [vmem:[#allocation5 + $0x2030] sm:$0xff] }
 0x340   : > { %v1778_v14 = vld [vmem:[#allocation5 + $0x2070] sm:$0xff] }
 0x341   : > { %5776 = vmatpush1.bf16.msra.mxu0 %v5775_v25  ;;  %v1721_v25 = vld [vmem:[#allocation5 + $0x1ea8] sm:$0xff]  ;;  %v6067_v22 = vpack.c.bf16 %v1778_v14, %v1770_v13  ;;  %v1856_v13 = vld [vmem:[#allocation5 + $0x22e0] sm:$0xff]  ;;  %v1850_v14 = vld [vmem:[#allocation5 + $0x22b0] sm:$0xff] }
 0x342   : > { %6032 = vmatpush1.bf16.msra.mxu1 %v6031_v42  ;;  %5778 = vmatprep.subr.bf16.mxu0 %v5777_v26  ;;  %v1729_v42 = vld [vmem:[#allocation5 + $0x1ee8] sm:$0xff]  ;;  %v1723_v26 = vld [vmem:[#allocation5 + $0x1eb8] sm:$0xff] }
 0x343   : > { %6034 = vmatprep.subr.bf16.mxu1 %v6033_v30  ;;  %v5797_v30 = vpack.c.bf16 %v1729_v42, %v1721_v25  ;;  %v6053_v35 = vpack.c.bf16 %v1731_v60, %v1723_v26  ;;  %v1786_v25 = vld [vmem:[#allocation5 + $0x20b0] sm:$0xff]  ;;  %v1801_v60 = vld [vmem:[#allocation5 + $0x2128] sm:$0xff] }
 0x344   : > { %v1794_v26 = vld [vmem:[#allocation5 + $0x20f0] sm:$0xff] }
 0x345   : > { %5780 = vmatpush1.bf16.msra.mxu0 %v5779_v43  ;;  %v1737_v43 = vld [vmem:[#allocation5 + $0x1f28] sm:$0xff]  ;;  %v6071_v34 = vpack.c.bf16 %v1794_v26, %v1786_v25  ;;  %v1872_v26 = vld [vmem:[#allocation5 + $0x2360] sm:$0xff] }
 0x346   : > { %6036 = vmatpush1.bf16.msra.mxu1 %v6035_v37  ;;  %5782 = vmatprep.subr.bf16.mxu0 %v5781_v39  ;;  %v1745_v37 = vld [vmem:[#allocation5 + $0x1f68] sm:$0xff]  ;;  %v1739_v39 = vld [vmem:[#allocation5 + $0x1f38] sm:$0xff] }
 0x347   : > { %6038 = vmatprep.subr.bf16.mxu1 %v6037_v45  ;;  %v5801_v45 = vpack.c.bf16 %v1745_v37, %v1737_v43  ;;  %v6057_v50 = vpack.c.bf16 %v1747_v8, %v1739_v39  ;;  %v1808_v43 = vld [vmem:[#allocation5 + $0x2160] sm:$0xff]  ;;  %v1802_v37 = vld [vmem:[#allocation5 + $0x2130] sm:$0xff] }
 0x348   : > { %v1810_v8 = vld [vmem:[#allocation5 + $0x2170] sm:$0xff]  ;;  %v5819_v46 = vpack.c.bf16 %v1808_v43, %v1800_v36  ;;  %v1883_v43 = vld [vmem:[#allocation5 + $0x23b8] sm:$0xff] }
 0x349   : > { %5784 = vmatpush1.bf16.msra.mxu0 %v5783_v54  ;;  %v1753_v54 = vld [vmem:[#allocation5 + $0x1fa8] sm:$0xff]  ;;  %v6075_v48 = vpack.c.bf16 %v1810_v8, %v1802_v37  ;;  %v1891_v37 = vld [vmem:[#allocation5 + $0x23f8] sm:$0xff] }
 0x34a   : > { %6040 = vmatpush1.bf16.msra.mxu1 %v6039_v16  ;;  %5786 = vmatprep.subr.bf16.mxu0 %v5785_v38  ;;  %v1761_v16 = vld [vmem:[#allocation5 + $0x1fe8] sm:$0xff]  ;;  %v1755_v38 = vld [vmem:[#allocation5 + $0x1fb8] sm:$0xff] }
 0x34b   : > { %6042 = vmatprep.subr.bf16.mxu1 %v6041_v58  ;;  %v5805_v58 = vpack.c.bf16 %v1761_v16, %v1753_v54  ;;  %v6061_v0 = vpack.c.bf16 %v1763_v55, %v1755_v38  ;;  %v1818_v54 = vld [vmem:[#allocation5 + $0x21b0] sm:$0xff]  ;;  %v1833_v38 = vld [vmem:[#allocation5 + $0x2228] sm:$0xff] }
 0x34c   : > { %v1841_v55 = vld [vmem:[#allocation5 + $0x2268] sm:$0xff] }
 0x34d   : > { %5788 = vmatpush1.bf16.msra.mxu0 %v5787_v2  ;;  %v1769_v2 = vld [vmem:[#allocation5 + $0x2028] sm:$0xff]  ;;  %v5825_v62 = vpack.c.bf16 %v1841_v55, %v1833_v38  ;;  %v1896_v55 = vld [vmem:[#allocation5 + $0x2420] sm:$0xff] }
 0x34e   : > { %6044 = vmatpush1.bf16.msra.mxu1 %v6043_v3  ;;  %5790 = vmatprep.subr.bf16.mxu0 %v5789_v4  ;;  %v1777_v3 = vld [vmem:[#allocation5 + $0x2068] sm:$0xff]  ;;  %v1771_v4 = vld [vmem:[#allocation5 + $0x2038] sm:$0xff] }
 0x34f   : > { %6046 = vmatprep.subr.bf16.mxu1 %v6045_v10  ;;  %v5809_v10 = vpack.c.bf16 %v1777_v3, %v1769_v2  ;;  %v6065_v12 = vpack.c.bf16 %v1779_v59, %v1771_v4  ;;  %v1842_v3 = vld [vmem:[#allocation5 + $0x2270] sm:$0xff]  ;;  %v1849_v4 = vld [vmem:[#allocation5 + $0x22a8] sm:$0xff] }
 0x350   : > { %v1857_v59 = vld [vmem:[#allocation5 + $0x22e8] sm:$0xff] }
 0x351   : > { %5792 = vmatpush1.bf16.msra.mxu0 %v5791_v18  ;;  %v1785_v18 = vld [vmem:[#allocation5 + $0x20a8] sm:$0xff] }
 0x352   : > { %6048 = vmatpush1.bf16.msra.mxu1 %v6047_v19  ;;  %5794 = vmatprep.subr.bf16.mxu0 %v5793_v20  ;;  %v1793_v19 = vld [vmem:[#allocation5 + $0x20e8] sm:$0xff]  ;;  %v5811_v20 = vpack.c.bf16 %v1776_v11, %v1768_v47  ;;  %v6083_v47 = vpack.c.bf16 %v1842_v3, %v1834_v1  ;;  %v5829_v11 = vpack.c.bf16 %v1857_v59, %v1849_v4  ;;  %v2034_v1 = vsub.s32 7, %v7145_v15  ;;  %v1923_v3 = vld [vmem:[#allocation5 + $0x24f8] sm:$0xff] }
 0x353   : > { %6050 = vmatprep.subr.bf16.mxu1 %v6049_v24  ;;  %v1784_v24 = vld [vmem:[#allocation5 + $0x20a0] sm:$0xff]  ;;  %v5813_v42 = vpack.c.bf16 %v1793_v19, %v1785_v18  ;;  %v1858_v19 = vld [vmem:[#allocation5 + $0x22f0] sm:$0xff] }
 0x354   : > { %v5815_v32 = vpack.c.bf16 %v1792_v33, %v1784_v24  ;;  %v6087_v33 = vpack.c.bf16 %v1858_v19, %v1850_v14  ;;  %v1922_v14 = vld [vmem:[#allocation5 + $0x24f0] sm:$0xff]  ;;  %v1937_v19 = vld [vmem:[#allocation5 + $0x2568] sm:$0xff] }
 0x355   : > { %5796 = vmatpush1.bf16.msra.mxu0 %v5795_v27  ;;  %v1809_v27 = vld [vmem:[#allocation5 + $0x2168] sm:$0xff] }
 0x356   : > { %6052 = vmatpush1.bf16.msra.mxu1 %v6051_v29  ;;  %5798 = vmatprep.subr.bf16.mxu0 %v5797_v30  ;;  %v6069_v29 = vpack.c.bf16 %v1795_v21, %v1787_v49  ;;  %v1803_v30 = vld [vmem:[#allocation5 + $0x2138] sm:$0xff]  ;;  %v1873_v49 = vld [vmem:[#allocation5 + $0x2368] sm:$0xff] }
 0x357   : > { %6054 = vmatprep.subr.bf16.mxu1 %v6053_v35  ;;  %v5817_v35 = vpack.c.bf16 %v1809_v27, %v1801_v60  ;;  %v6073_v39 = vpack.c.bf16 %v1811_v31, %v1803_v30  ;;  %v1867_v21 = vld [vmem:[#allocation5 + $0x2338] sm:$0xff]  ;;  %v1866_v60 = vld [vmem:[#allocation5 + $0x2330] sm:$0xff] }
 0x358   : > { %v1874_v31 = vld [vmem:[#allocation5 + $0x2370] sm:$0xff] }
 0x359   : > { %5800 = vmatpush1.bf16.msra.mxu0 %v5799_v41  ;;  %v1817_v41 = vld [vmem:[#allocation5 + $0x21a8] sm:$0xff]  ;;  %v6091_v8 = vpack.c.bf16 %v1874_v31, %v1866_v60  ;;  %v1930_v60 = vld [vmem:[#allocation5 + $0x2530] sm:$0xff] }
 0x35a   : > { %6056 = vmatpush1.bf16.msra.mxu1 %v6055_v5  ;;  %5802 = vmatprep.subr.bf16.mxu0 %v5801_v45  ;;  %v1825_v5 = vld [vmem:[#allocation5 + $0x21e8] sm:$0xff]  ;;  %v1819_v45 = vld [vmem:[#allocation5 + $0x21b8] sm:$0xff] }
 0x35b   : > { %6058 = vmatprep.subr.bf16.mxu1 %v6057_v50  ;;  %v5821_v53 = vpack.c.bf16 %v1825_v5, %v1817_v41  ;;  %v1816_v50 = vld [vmem:[#allocation5 + $0x21a0] sm:$0xff] }
 0x35c   : > { %v1880_v5 = vld [vmem:[#allocation5 + $0x23a0] sm:$0xff] }
 0x35d   : > { %5804 = vmatpush1.bf16.msra.mxu0 %v5803_v52  ;;  %v1835_v52 = vld [vmem:[#allocation5 + $0x2238] sm:$0xff] }
 0x35e   : > { %6060 = vmatpush1.bf16.msra.mxu1 %v6059_v57  ;;  %5806 = vmatprep.subr.bf16.mxu0 %v5805_v58  ;;  %v1843_v57 = vld [vmem:[#allocation5 + $0x2278] sm:$0xff]  ;;  %v5823_v58 = vpack.c.bf16 %v1824_v9, %v1816_v50  ;;  %v1905_v50 = vld [vmem:[#allocation5 + $0x2468] sm:$0xff] }
 0x35f   : > { %6062 = vmatprep.subr.bf16.mxu1 %v6061_v0  ;;  %v1840_v0 = vld [vmem:[#allocation5 + $0x2260] sm:$0xff]  ;;  %v6081_v2 = vpack.c.bf16 %v1843_v57, %v1835_v52  ;;  %v1899_v9 = vld [vmem:[#allocation5 + $0x2438] sm:$0xff]  ;;  %v1898_v57 = vld [vmem:[#allocation5 + $0x2430] sm:$0xff] }
 0x360   : > { %v1904_v52 = vld [vmem:[#allocation5 + $0x2460] sm:$0xff] }
 0x361   : > { %5808 = vmatpush1.bf16.msra.mxu0 %v5807_v7  ;;  %v1851_v7 = vld [vmem:[#allocation5 + $0x22b8] sm:$0xff]  ;;  %v5843_v4 = vpack.c.bf16 %v1904_v52, %v1896_v55 }
 0x362   : > { %6064 = vmatpush1.bf16.msra.mxu1 %v6063_v56  ;;  %5810 = vmatprep.subr.bf16.mxu0 %v5809_v10  ;;  %v1859_v56 = vld [vmem:[#allocation5 + $0x22f8] sm:$0xff]  ;;  %v5827_v10 = vpack.c.bf16 %v1840_v0, %v1832_v63  ;;  %v1913_v63 = vld [vmem:[#allocation5 + $0x24a8] sm:$0xff] }
 0x363   : > { %6066 = vmatprep.subr.bf16.mxu1 %v6065_v12  ;;  %v1848_v12 = vld [vmem:[#allocation5 + $0x22a0] sm:$0xff]  ;;  %v6085_v18 = vpack.c.bf16 %v1859_v56, %v1851_v7  ;;  %v1921_v0 = vld [vmem:[#allocation5 + $0x24e8] sm:$0xff]  ;;  %v1971_v55 = vld [vmem:[#allocation5 + $0x2678] sm:$0xff] }
 0x364   : > { %2867 = vmatmul.mubr.f32.vlgmr.msra.gmra.mrb[6].mxu0 %v7231_v51  ;;  %v5831_v24 = vpack.c.bf16 %v1856_v13, %v1848_v12  ;;  %v5845_v7 = vpack.c.bf16 %v1921_v0, %v1913_v63  ;;  %v1912_v56 = vld [vmem:[#allocation5 + $0x24a0] sm:$0xff] }
 0x365   : > { %3151 = vmatmul.mubr.f32.vlgmr.msra.gmra.mrb[6].mxu1 %v7231_v51  ;;  %5812 = vmatpush1.bf16.msra.mxu0 %v5811_v20  ;;  %v1827_v51 = vld [vmem:[#allocation5 + $0x21f8] sm:$0xff]  ;;  %v1865_v20 = vld [vmem:[#allocation5 + $0x2328] sm:$0xff]  ;;  %v1968_v63 = vld [vmem:[#allocation5 + $0x2660] sm:$0xff] }
 0x366   : > { %2937 = vmatprep.mubr.f32.mxu0 %v7233_v44  ;;  %6068 = vmatpush1.bf16.msra.mxu1 %v6067_v22  ;;  %v6077_v16 = vpack.c.bf16 %v1827_v51, %v1819_v45  ;;  %v1875_v22 = vld [vmem:[#allocation5 + $0x2378] sm:$0xff]  ;;  %v5833_v25 = vpack.c.bf16 %v1873_v49, %v1865_v20  ;;  %v1888_v45 = vld [vmem:[#allocation5 + $0x23e0] sm:$0xff]  ;;  %v1882_v51 = vld [vmem:[#allocation5 + $0x23b0] sm:$0xff] }
 0x367   : > { %3221 = vmatprep.mubr.f32.mxu1 %v7233_v44  ;;  %5814 = vmatprep.subr.bf16.mxu0 %v5813_v42  ;;  %v1826_v44 = vld [vmem:[#allocation5 + $0x21f0] sm:$0xff]  ;;  %v1864_v42 = vld [vmem:[#allocation5 + $0x2320] sm:$0xff]  ;;  %v6089_v30 = vpack.c.bf16 %v1875_v22, %v1867_v21  ;;  %v1931_v49 = vld [vmem:[#allocation5 + $0x2538] sm:$0xff]  ;;  %v7284_v22 = vsub.s32 1, %v7145_v15 }
 0x368   : > { %6070 = vmatprep.subr.bf16.mxu1 %v6069_v29  ;;  %v6079_v61 = vpack.c.bf16 %v1826_v44, %v1818_v54  ;;  %v1907_v54 = vld [vmem:[#allocation5 + $0x2478] sm:$0xff] }
 0x369   : > { %5816 = vmatpush1.bf16.msra.mxu0 %v5815_v32  ;;  %v1881_v32 = vld [vmem:[#allocation5 + $0x23a8] sm:$0xff]  ;;  %v1939_v21 = vld [vmem:[#allocation5 + $0x2578] sm:$0xff] }
 0x36a   : > { %6072 = vmatpush1.bf16.msra.mxu1 %v6071_v34  ;;  %5818 = vmatprep.subr.bf16.mxu0 %v5817_v35  ;;  %v1889_v34 = vld [vmem:[#allocation5 + $0x23e8] sm:$0xff]  ;;  %v6105_v31 = vpack.c.bf16 %v1939_v21, %v1931_v49 }
 0x36b   : > { %6074 = vmatprep.subr.bf16.mxu1 %v6073_v39  ;;  %v5835_v39 = vpack.c.bf16 %v1872_v26, %v1864_v42  ;;  %v5837_v41 = vpack.c.bf16 %v1889_v34, %v1881_v32  ;;  %v1928_v42 = vld [vmem:[#allocation5 + $0x2520] sm:$0xff]  ;;  %v1938_v32 = vld [vmem:[#allocation5 + $0x2570] sm:$0xff]  ;;  %v1945_v34 = vld [vmem:[#allocation5 + $0x25a8] sm:$0xff] }
 0x36c   : > { %v1936_v26 = vld [vmem:[#allocation5 + $0x2560] sm:$0xff]  ;;  %v1993_v49 = vld [vmem:[#allocation5 + $0x2728] sm:$0xff] }
 0x36d   : > { %5820 = vmatpush1.bf16.msra.mxu0 %v5819_v46  ;;  %v6093_v46 = vpack.c.bf16 %v1891_v37, %v1883_v43  ;;  %v1953_v43 = vld [vmem:[#allocation5 + $0x25e8] sm:$0xff] }
 0x36e   : > { %6076 = vmatpush1.bf16.msra.mxu1 %v6075_v48  ;;  %5822 = vmatprep.subr.bf16.mxu0 %v5821_v53  ;;  %v1890_v48 = vld [vmem:[#allocation5 + $0x23f0] sm:$0xff]  ;;  %v1897_v53 = vld [vmem:[#allocation5 + $0x2428] sm:$0xff] }
 0x36f   : > { %6078 = vmatprep.subr.bf16.mxu1 %v6077_v16  ;;  %v5839_v16 = vpack.c.bf16 %v1888_v45, %v1880_v5  ;;  %v6095_v44 = vpack.c.bf16 %v1890_v48, %v1882_v51  ;;  %v5841_v38 = vpack.c.bf16 %v1905_v50, %v1897_v53  ;;  %v6107_v5 = vpack.c.bf16 %v1938_v32, %v1930_v60  ;;  %v1944_v51 = vld [vmem:[#allocation5 + $0x25a0] sm:$0xff]  ;;  %v1946_v48 = vld [vmem:[#allocation5 + $0x25b0] sm:$0xff]  ;;  %v2001_v21 = vld [vmem:[#allocation5 + $0x2768] sm:$0xff] }
 0x370   : > { %v5853_v45 = vpack.c.bf16 %v1953_v43, %v1945_v34  ;;  %v1992_v60 = vld [vmem:[#allocation5 + $0x2720] sm:$0xff]  ;;  %v2002_v34 = vld [vmem:[#allocation5 + $0x2770] sm:$0xff]  ;;  %v2009_v43 = vld [vmem:[#allocation5 + $0x27a8] sm:$0xff] }
 0x371   : > { %5824 = vmatpush1.bf16.msra.mxu0 %v5823_v58  ;;  %v7273_v58 = vsub.s32 3, %v7145_v15 }
 0x372   : > { %6080 = vmatpush1.bf16.msra.mxu1 %v6079_v61  ;;  %5826 = vmatprep.subr.bf16.mxu0 %v5825_v62  ;;  %v6097_v61 = vpack.c.bf16 %v1907_v54, %v1899_v9  ;;  %v1906_v62 = vld [vmem:[#allocation5 + $0x2470] sm:$0xff]  ;;  %v1961_v54 = vld [vmem:[#allocation5 + $0x2628] sm:$0xff] }
 0x373   : > { %6082 = vmatprep.subr.bf16.mxu1 %v6081_v2  ;;  %v1915_v2 = vld [vmem:[#allocation5 + $0x24b8] sm:$0xff]  ;;  %v6099_v59 = vpack.c.bf16 %v1906_v62, %v1898_v57  ;;  %v1954_v9 = vld [vmem:[#allocation5 + $0x25f0] sm:$0xff]  ;;  %v1960_v62 = vld [vmem:[#allocation5 + $0x2620] sm:$0xff] }
 0x374   : > { %v6101_v13 = vpack.c.bf16 %v1923_v3, %v1915_v2  ;;  %v6111_v57 = vpack.c.bf16 %v1954_v9, %v1946_v48  ;;  %v1970_v3 = vld [vmem:[#allocation5 + $0x2670] sm:$0xff] }
 0x375   : > { %5828 = vmatpush1.bf16.msra.mxu0 %v5827_v10  ;;  %v1920_v10 = vld [vmem:[#allocation5 + $0x24e0] sm:$0xff]  ;;  %v2010_v48 = vld [vmem:[#allocation5 + $0x27b0] sm:$0xff] }
 0x376   : > { %6084 = vmatpush1.bf16.msra.mxu1 %v6083_v47  ;;  %5830 = vmatprep.subr.bf16.mxu0 %v5829_v11  ;;  %v1914_v47 = vld [vmem:[#allocation5 + $0x24b0] sm:$0xff]  ;;  %v7276_v11 = vld [vmem:[#allocation7] sm:$0xff] }
 0x377   : > { %v7264_v27 = vpop.f32.mrb[4].mxu0  ;;  %v7266_v29 = vpop.f32.mrb[4].mxu1  ;;  %6086 = vmatprep.subr.bf16.mxu1 %v6085_v18  ;;  %v2027_v12 = vrot.slane %v7276_v11, %v7273_v58  ;;  %v1929_v18 = vld [vmem:[#allocation5 + $0x2528] sm:$0xff]  ;;  %v2035_v20 = vrot.slane %v7276_v11, %v2034_v1  ;;  %v2018_v9 = vld [vmem:[#allocation5 + $0x27f0] sm:$0xff] }
 0x378   : > { %v7268_v35 = vpop.f32.mrb[5].mxu0  ;;  %v7270_v36 = vpop.f32.mrb[5].mxu1 }
 0x379   : > { %5832 = vmatpush1.bf16.msra.mxu0 %v5831_v24  ;;  %v5847_v24 = vpack.c.bf16 %v1920_v10, %v1912_v56  ;;  %v2075_v37 = vrot.slane %v2035_v20, %v7284_v22  ;;  %v1987_v56 = vld [vmem:[#allocation5 + $0x26f8] sm:$0xff]  ;;  %v5859_v10 = vpack.c.bf16 %v1968_v63, %v1960_v62  ;;  %v1986_v20 = vld [vmem:[#allocation5 + $0x26f0] sm:$0xff]  ;;  %v7297_v62 = vsub.s32 5, %v7145_v15 }
 0x37a   : > { %6088 = vmatpush1.bf16.msra.mxu1 %v6087_v33  ;;  %5834 = vmatprep.subr.bf16.mxu0 %v5833_v25  ;;  %v6103_v33 = vpack.c.bf16 %v1922_v14, %v1914_v47  ;;  %v5849_v25 = vpack.c.bf16 %v1937_v19, %v1929_v18  ;;  %v1984_v14 = vld [vmem:[#allocation5 + $0x26e0] sm:$0xff]  ;;  %v1978_v18 = vld [vmem:[#allocation5 + $0x26b0] sm:$0xff]  ;;  %v6127_v63 = vpack.c.bf16 %v2018_v9, %v2010_v48  ;;  %v3291_v48 = vld [vmem:[#allocation8 + $0xb8] sm:$0xff] }
 0x37b   : > { %6090 = vmatprep.subr.bf16.mxu1 %v6089_v30  ;;  %v2067_v30 = vrot.slane %v2027_v12, %v7284_v22 }
 0x37d   : > { %5836 = vmatpush1.bf16.msra.mxu0 %v5835_v39  ;;  %v1947_v39 = vld [vmem:[#allocation5 + $0x25b8] sm:$0xff]  ;;  %v7289_v53 = vadd.f32 %v7268_v35, %v2067_v30  ;;  %v1962_v35 = vld [vmem:[#allocation5 + $0x2630] sm:$0xff]  ;;  %v2000_v30 = vld [vmem:[#allocation5 + $0x2760] sm:$0xff] }
 0x37e   : > { %6092 = vmatpush1.bf16.msra.mxu1 %v6091_v8  ;;  %5838 = vmatprep.subr.bf16.mxu0 %v5837_v41  ;;  %v1955_v8 = vld [vmem:[#allocation5 + $0x25f8] sm:$0xff]  ;;  %v5851_v41 = vpack.c.bf16 %v1936_v26, %v1928_v42  ;;  %v6115_v47 = vpack.c.bf16 %v1970_v3, %v1962_v35  ;;  %v6119_v42 = vpack.c.bf16 %v1986_v20, %v1978_v18 }
 0x37f   : > { %6094 = vmatprep.subr.bf16.mxu1 %v6093_v46  ;;  %v1952_v46 = vld [vmem:[#allocation5 + $0x25e0] sm:$0xff]  ;;  %v6109_v50 = vpack.c.bf16 %v1955_v8, %v1947_v39  ;;  %v3237_v0 = vmul.f32 0.70710677, %v7289_v53  ;;  %v5865_v26 = vpack.c.bf16 %v2001_v21, %v1993_v49  ;;  %v2011_v39 = vld [vmem:[#allocation5 + $0x27b8] sm:$0xff]  ;;  %v2031_v18 = vrot.slane %v7276_v11, %v7297_v62  ;;  %v3271_v21 = vld [vmem:[#allocation8 + $0x18] sm:$0xff] }
 0x380   : > { %v5855_v52 = vpack.c.bf16 %v1952_v46, %v1944_v51  ;;  %v2019_v8 = vld [vmem:[#allocation5 + $0x27f8] sm:$0xff]  ;;  %v2008_v51 = vld [vmem:[#allocation5 + $0x27a0] sm:$0xff] }
 0x381   : > { %5840 = vmatpush1.bf16.msra.mxu0 %v5839_v16  ;;  %v1969_v16 = vld [vmem:[#allocation5 + $0x2668] sm:$0xff]  ;;  %6553 = verf.f32 %v3237_v0  ;;  %v2016_v46 = vld [vmem:[#allocation5 + $0x27e0] sm:$0xff]  ;;  %v3268_v0 = vld [vmem:[#allocation8] sm:$0xff] }
 0x382   : > { %6096 = vmatpush1.bf16.msra.mxu1 %v6095_v44  ;;  %5842 = vmatprep.subr.bf16.mxu0 %v5841_v38  ;;  %v7292_v44 = vadd.f32 %v7270_v36, %v2075_v37  ;;  %v1963_v38 = vld [vmem:[#allocation5 + $0x2638] sm:$0xff]  ;;  %v2017_v37 = vld [vmem:[#allocation5 + $0x27e8] sm:$0xff]  ;;  %v3270_v49 = vld [vmem:[#allocation8 + $0x10] sm:$0xff] }
 0x383   : > { %6098 = vmatprep.subr.bf16.mxu1 %v6097_v61  ;;  %v5857_v61 = vpack.c.bf16 %v1969_v16, %v1961_v54  ;;  %v6113_v2 = vpack.c.bf16 %v1971_v55, %v1963_v38  ;;  %v3284_v54 = vld [vmem:[#allocation8 + $0x80] sm:$0xff]  ;;  %v3285_v16 = vld [vmem:[#allocation8 + $0x88] sm:$0xff] }
 0x384   : > { %v3239_v36 = vmul.f32 0.70710677, %v7292_v44  ;;  %v3316_v38 = vld [vmem:[#allocation8 + $0x180] sm:$0xff]  ;;  %v3317_v55 = vld [vmem:[#allocation8 + $0x188] sm:$0xff]  ;;  %v6129_v35 = vpack.c.bf16 %v3285_v16, %v3284_v54 }
 0x385   : > { %5844 = vmatpush1.bf16.msra.mxu0 %v5843_v4  ;;  %v1977_v4 = vld [vmem:[#allocation5 + $0x26a8] sm:$0xff]  ;;  %v6161_v3 = vpack.c.bf16 %v3317_v55, %v3316_v38 }
 0x386   : > { %6100 = vmatpush1.bf16.msra.mxu1 %v6099_v59  ;;  %5846 = vmatprep.subr.bf16.mxu0 %v5845_v7  ;;  %v1985_v59 = vld [vmem:[#allocation5 + $0x26e8] sm:$0xff]  ;;  %v1979_v7 = vld [vmem:[#allocation5 + $0x26b8] sm:$0xff]  ;;  %6555 = verf.f32 %v3239_v36 }
 0x387   : > { %6102 = vmatprep.subr.bf16.mxu1 %v6101_v13  ;;  %v5861_v12 = vpack.c.bf16 %v1985_v59, %v1977_v4  ;;  %v1976_v13 = vld [vmem:[#allocation5 + $0x26a0] sm:$0xff]  ;;  %v6117_v19 = vpack.c.bf16 %v1987_v56, %v1979_v7  ;;  %v3300_v4 = vld [vmem:[#allocation8 + $0x100] sm:$0xff]  ;;  %v3301_v59 = vld [vmem:[#allocation8 + $0x108] sm:$0xff] }
 0x388   : > { %v3286_v7 = vld [vmem:[#allocation8 + $0x90] sm:$0xff]  ;;  %v3287_v56 = vld [vmem:[#allocation8 + $0x98] sm:$0xff]  ;;  %v6163_v20 = vpack.c.bf16 %v3301_v59, %v3300_v4 }
 0x389   : > { %5848 = vmatpush1.bf16.msra.mxu0 %v5847_v24  ;;  %v1995_v24 = vld [vmem:[#allocation5 + $0x2738] sm:$0xff] }
 0x38a   : > { %6104 = vmatpush1.bf16.msra.mxu1 %v6103_v33  ;;  %5850 = vmatprep.subr.bf16.mxu0 %v5849_v25  ;;  %v2003_v33 = vld [vmem:[#allocation5 + $0x2778] sm:$0xff]  ;;  %v5863_v25 = vpack.c.bf16 %v1984_v14, %v1976_v13  ;;  %v3318_v13 = vld [vmem:[#allocation8 + $0x190] sm:$0xff]  ;;  %v3319_v14 = vld [vmem:[#allocation8 + $0x198] sm:$0xff] }
 0x38b   : > { %6106 = vmatprep.subr.bf16.mxu1 %v6105_v31  ;;  %v1994_v31 = vld [vmem:[#allocation5 + $0x2730] sm:$0xff]  ;;  %v6121_v32 = vpack.c.bf16 %v2003_v33, %v1995_v24  ;;  %v3302_v24 = vld [vmem:[#allocation8 + $0x110] sm:$0xff]  ;;  %v3231_v33 = vmul.f32 0.5, %v7292_v44  ;;  %v2071_v44 = vrot.slane %v2031_v18, %v7284_v22  ;;  %v3295_v18 = vld [vmem:[#allocation8 + $0xd8] sm:$0xff] }
 0x38d   : > { %5852 = vmatpush1.bf16.msra.mxu0 %v5851_v41  ;;  %v5867_v41 = vpack.c.bf16 %v2000_v30, %v1992_v60  ;;  %v3289_v60 = vld [vmem:[#allocation8 + $0xa8] sm:$0xff]  ;;  %v7313_v16 = vadd.f32 %v7266_v29, %v2071_v44  ;;  %v3280_v44 = vld [vmem:[#allocation8 + $0x60] sm:$0xff] }
 0x38e   : > { %6108 = vmatpush1.bf16.msra.mxu1 %v6107_v5  ;;  %5854 = vmatprep.subr.bf16.mxu0 %v5853_v45  ;;  %v6123_v5 = vpack.c.bf16 %v2002_v34, %v1994_v31  ;;  %v5869_v45 = vpack.c.bf16 %v2017_v37, %v2009_v43  ;;  %v6165_v31 = vpack.c.bf16 %v3319_v14, %v3318_v13  ;;  %v3309_v13 = vld [vmem:[#allocation8 + $0x148] sm:$0xff]  ;;  %v3294_v14 = vld [vmem:[#allocation8 + $0xd0] sm:$0xff] }
 0x38f   : > { %6110 = vmatprep.subr.bf16.mxu1 %v6109_v50  ;;  %v6125_v50 = vpack.c.bf16 %v2019_v8, %v2011_v39  ;;  %v6135_v43 = vpack.c.bf16 %v3271_v21, %v3270_v49  ;;  %v3272_v8 = vld [vmem:[#allocation8 + $0x20] sm:$0xff]  ;;  %v3238_v29 = vmul.f32 0.70710677, %v7313_v16 }
 0x391   : > { %5856 = vmatpush1.bf16.msra.mxu0 %v5855_v52  ;;  %v6554_v52 = vpop.eup %6553 }
 0x392   : > { %6112 = vmatpush1.bf16.msra.mxu1 %v6111_v57  ;;  %5858 = vmatprep.subr.bf16.mxu0 %v5857_v61  ;;  %v5871_v57 = vpack.c.bf16 %v2016_v46, %v2008_v51  ;;  %v6556_v61 = vpop.eup %6555  ;;  %v3253_v36 = vadd.f32 1.0, %v6554_v52  ;;  %v3305_v51 = vld [vmem:[#allocation8 + $0x128] sm:$0xff]  ;;  %v3290_v46 = vld [vmem:[#allocation8 + $0xb0] sm:$0xff] }
 0x393   : > { %6114 = vmatprep.subr.bf16.mxu1 %v6113_v2  ;;  %v3269_v2 = vld [vmem:[#allocation8 + $0x8] sm:$0xff]  ;;  %v6141_v55 = vpack.c.bf16 %v3291_v48, %v3290_v46  ;;  %v3274_v52 = vld [vmem:[#allocation8 + $0x30] sm:$0xff]  ;;  %v3331_v46 = vld [vmem:[#allocation8 + $0x1f8] sm:$0xff] }
 0x395   : > { %5860 = vmatpush1.bf16.msra.mxu0 %v5859_v10  ;;  %v2023_v10 = vrot.slane %v7276_v11, %v7284_v22  ;;  %v3320_v11 = vld [vmem:[#allocation8 + $0x1a0] sm:$0xff] }
 0x396   : > { %6116 = vmatpush1.bf16.msra.mxu1 %v6115_v47  ;;  %5862 = vmatprep.subr.bf16.mxu0 %v5861_v12  ;;  %v3255_v47 = vadd.f32 1.0, %v6556_v61  ;;  %v6131_v12 = vpack.c.bf16 %v3269_v2, %v3268_v0  ;;  %v3306_v61 = vld [vmem:[#allocation8 + $0x130] sm:$0xff]  ;;  %v3292_v0 = vld [vmem:[#allocation8 + $0xc0] sm:$0xff]  ;;  %v3293_v2 = vld [vmem:[#allocation8 + $0xc8] sm:$0xff] }
 0x397   : > { %6118 = vmatprep.subr.bf16.mxu1 %v6117_v19  ;;  %v3229_v19 = vmul.f32 0.5, %v7289_v53  ;;  %v2063_v53 = vrot.slane %v2023_v10, %v7284_v22  ;;  %v3277_v10 = vld [vmem:[#allocation8 + $0x48] sm:$0xff] }
 0x398   : > { %v3263_v34 = vmul.f32 %v3255_v47, %v3231_v33  ;;  %v3308_v47 = vld [vmem:[#allocation8 + $0x140] sm:$0xff]  ;;  %v3278_v33 = vld [vmem:[#allocation8 + $0x50] sm:$0xff] }
 0x399   : > { %5864 = vmatpush1.bf16.msra.mxu0 %v5863_v25  ;;  %v6133_v25 = vpack.c.bf16 %v3287_v56, %v3286_v7  ;;  %v3261_v30 = vmul.f32 %v3253_v36, %v3229_v19  ;;  %v7310_v9 = vadd.f32 %v7264_v27, %v2063_v53  ;;  %v3325_v27 = vld [vmem:[#allocation8 + $0x1c8] sm:$0xff]  ;;  %v6145_v7 = vpack.c.bf16 %v3293_v2, %v3292_v0  ;;  %v3276_v56 = vld [vmem:[#allocation8 + $0x40] sm:$0xff]  ;;  %v3326_v19 = vld [vmem:[#allocation8 + $0x1d0] sm:$0xff] }
 0x39a   : > { %6120 = vmatpush1.bf16.msra.mxu1 %v6119_v42  ;;  %5866 = vmatprep.subr.bf16.mxu0 %v5865_v26  ;;  %v3303_v42 = vld [vmem:[#allocation8 + $0x118] sm:$0xff]  ;;  %v3288_v26 = vld [vmem:[#allocation8 + $0xa0] sm:$0xff]  ;;  %v6147_v49 = vpack.c.bf16 %v3277_v10, %v3276_v56  ;;  %v6179_v21 = vpack.c.bf16 %v3309_v13, %v3308_v47  ;;  %v3350_v13 = vld [vmem:[#allocation8 + $0x290] sm:$0xff] }
 0x39b   : > { %6122 = vmatprep.subr.bf16.mxu1 %v6121_v32  ;;  %v3321_v32 = vld [vmem:[#allocation8 + $0x1a8] sm:$0xff]  ;;  %v6167_v37 = vpack.c.bf16 %v3303_v42, %v3302_v24  ;;  %v6137_v39 = vpack.c.bf16 %v3289_v60, %v3288_v26  ;;  %v3236_v4 = vmul.f32 0.70710677, %v7310_v9  ;;  %v6149_v24 = vpack.c.bf16 %v3295_v18, %v3294_v14  ;;  %v3310_v42 = vld [vmem:[#allocation8 + $0x150] sm:$0xff]  ;;  %v3311_v60 = vld [vmem:[#allocation8 + $0x158] sm:$0xff] }
 0x39c   : > { %v3380_v2 = vld [vmem:[#allocation8 + $0x380] sm:$0xff]  ;;  %v3351_v14 = vld [vmem:[#allocation8 + $0x298] sm:$0xff]  ;;  %v3228_v18 = vmul.f32 0.5, %v7310_v9  ;;  %v3353_v9 = vld [vmem:[#allocation8 + $0x2a8] sm:$0xff] }
 0x39d   : > { %5868 = vmatpush1.bf16.msra.mxu0 %v5867_v41  ;;  %v3273_v41 = vld [vmem:[#allocation8 + $0x28] sm:$0xff]  ;;  %6557 = verf.f32 %v3236_v4  ;;  %v3364_v56 = vld [vmem:[#allocation8 + $0x300] sm:$0xff] }
 0x39e   : > { %6124 = vmatpush1.bf16.msra.mxu1 %v6123_v5  ;;  %5870 = vmatprep.subr.bf16.mxu0 %v5869_v45  ;;  %v3304_v5 = vld [vmem:[#allocation8 + $0x120] sm:$0xff]  ;;  %v6169_v45 = vpack.c.bf16 %v3321_v32, %v3320_v11  ;;  %v6139_v54 = vpack.c.bf16 %v3273_v41, %v3272_v8  ;;  %6559 = verf.f32 %v3238_v29  ;;  %v3329_v32 = vld [vmem:[#allocation8 + $0x1e8] sm:$0xff] }
 0x39f   : > { %6126 = vmatprep.subr.bf16.mxu1 %v6125_v50  ;;  %v3323_v50 = vld [vmem:[#allocation8 + $0x1b8] sm:$0xff]  ;;  %v6171_v38 = vpack.c.bf16 %v3305_v51, %v3304_v5  ;;  %v3328_v11 = vld [vmem:[#allocation8 + $0x1e0] sm:$0xff]  ;;  %v3313_v41 = vld [vmem:[#allocation8 + $0x168] sm:$0xff] }
 0x3a0   : > { %v6185_v8 = vpack.c.bf16 %v3329_v32, %v3328_v11  ;;  %v3298_v5 = vld [vmem:[#allocation8 + $0xf0] sm:$0xff]  ;;  %v3367_v11 = vld [vmem:[#allocation8 + $0x318] sm:$0xff]  ;;  %v3352_v32 = vld [vmem:[#allocation8 + $0x2a0] sm:$0xff] }
 0x3a1   : > { %5872 = vmatpush1.bf16.msra.mxu0 %v5871_v57  ;;  %v3275_v57 = vld [vmem:[#allocation8 + $0x38] sm:$0xff]  ;;  %v3330_v51 = vld [vmem:[#allocation8 + $0x1f0] sm:$0xff] }
 0x3a2   : > { %6128 = vmatpush1.bf16.msra.mxu1 %v6127_v63  ;;  %6130 = vmatprep.subr.bf16.mxu0 %v6129_v35  ;;  %v3307_v35 = vld [vmem:[#allocation8 + $0x138] sm:$0xff]  ;;  %v6143_v59 = vpack.c.bf16 %v3275_v57, %v3274_v52  ;;  %v6189_v57 = vpack.c.bf16 %v3331_v46, %v3330_v51  ;;  %v3354_v46 = vld [vmem:[#allocation8 + $0x2b0] sm:$0xff] }
 0x3a3   : > { %6162 = vmatprep.subr.bf16.mxu1 %v6161_v3  ;;  %v3324_v3 = vld [vmem:[#allocation8 + $0x1c0] sm:$0xff]  ;;  %v6175_v36 = vpack.c.bf16 %v3307_v35, %v3306_v61  ;;  %v3315_v61 = vld [vmem:[#allocation8 + $0x178] sm:$0xff]  ;;  %v3349_v35 = vld [vmem:[#allocation8 + $0x288] sm:$0xff] }
 0x3a4   : > { %2938 = vmatmul.mubr.f32.vlgmr.msra.gmra.mrb[6].mxu0 %v7246_v40 }
 0x3a5   : > { %3222 = vmatmul.mubr.f32.vlgmr.msra.gmra.mrb[6].mxu1 %v7246_v40  ;;  %6132 = vmatpush3.bf16.msra.mxu0 %v6131_v12  ;;  %v3322_v40 = vld [vmem:[#allocation8 + $0x1b0] sm:$0xff]  ;;  %v6177_v12 = vpack.c.bf16 %v3325_v27, %v3324_v3  ;;  %v3381_v3 = vld [vmem:[#allocation8 + $0x388] sm:$0xff] }
 0x3a6   : > { %3464 = vmatprep.mubr.f32.mxu0 %v3261_v30  ;;  %6164 = vmatpush3.bf16.msra.mxu1 %v6163_v20  ;;  %v6173_v63 = vpack.c.bf16 %v3323_v50, %v3322_v40  ;;  %v3327_v20 = vld [vmem:[#allocation8 + $0x1d8] sm:$0xff]  ;;  %v3296_v30 = vld [vmem:[#allocation8 + $0xe0] sm:$0xff]  ;;  %v6225_v47 = vpack.c.bf16 %v3381_v3, %v3380_v2  ;;  %v3357_v2 = vld [vmem:[#allocation8 + $0x2c8] sm:$0xff] }
 0x3a7   : > { %3534 = vmatprep.mubr.f32.mxu1 %v3263_v34  ;;  %6134 = vmatprep.subr.bf16.mxu0 %v6133_v25  ;;  %v3279_v25 = vld [vmem:[#allocation8 + $0x58] sm:$0xff]  ;;  %v6181_v26 = vpack.c.bf16 %v3327_v20, %v3326_v19  ;;  %v6183_v34 = vpack.c.bf16 %v3311_v60, %v3310_v42  ;;  %v6558_v52 = vpop.eup %6557  ;;  %v3382_v19 = vld [vmem:[#allocation8 + $0x390] sm:$0xff]  ;;  %v3388_v3 = vld [vmem:[#allocation8 + $0x3c0] sm:$0xff] }
 0x3a8   : > { %6166 = vmatprep.subr.bf16.mxu1 %v6165_v31  ;;  %v3297_v31 = vld [vmem:[#allocation8 + $0xe8] sm:$0xff]  ;;  %v6151_v53 = vpack.c.bf16 %v3279_v25, %v3278_v33  ;;  %v6560_v0 = vpop.eup %6559  ;;  %v3252_v4 = vadd.f32 1.0, %v6558_v52  ;;  %v3383_v20 = vld [vmem:[#allocation8 + $0x398] sm:$0xff]  ;;  %v6197_v25 = vpack.c.bf16 %v3351_v14, %v3350_v13  ;;  %v3334_v42 = vld [vmem:[#allocation8 + $0x210] sm:$0xff] }
 0x3a9   : > { %6136 = vmatpush3.bf16.msra.mxu0 %v6135_v43  ;;  %v6153_v43 = vpack.c.bf16 %v3297_v31, %v3296_v30  ;;  %v3254_v10 = vadd.f32 1.0, %v6560_v0  ;;  %v3366_v60 = vld [vmem:[#allocation8 + $0x310] sm:$0xff]  ;;  %v6229_v31 = vpack.c.bf16 %v3383_v20, %v3382_v19  ;;  %v3356_v0 = vld [vmem:[#allocation8 + $0x2c0] sm:$0xff]  ;;  %v3359_v13 = vld [vmem:[#allocation8 + $0x2d8] sm:$0xff] }
 0x3aa   : > { %6168 = vmatpush3.bf16.msra.mxu1 %v6167_v37  ;;  %6138 = vmatprep.subr.bf16.mxu0 %v6137_v39  ;;  %v3281_v37 = vld [vmem:[#allocation8 + $0x68] sm:$0xff]  ;;  %v3312_v39 = vld [vmem:[#allocation8 + $0x160] sm:$0xff]  ;;  %v3390_v14 = vld [vmem:[#allocation8 + $0x3d0] sm:$0xff] }
 0x3ab   : > { %6170 = vmatprep.subr.bf16.mxu1 %v6169_v45  ;;  %v3299_v45 = vld [vmem:[#allocation8 + $0xf8] sm:$0xff]  ;;  %v6155_v48 = vpack.c.bf16 %v3281_v37, %v3280_v44  ;;  %v6187_v40 = vpack.c.bf16 %v3313_v41, %v3312_v39  ;;  %v6201_v44 = vpack.c.bf16 %v3353_v9, %v3352_v32  ;;  %v3336_v37 = vld [vmem:[#allocation8 + $0x220] sm:$0xff]  ;;  %v3337_v39 = vld [vmem:[#allocation8 + $0x228] sm:$0xff] }
 0x3ac   : > { %v6157_v50 = vpack.c.bf16 %v3299_v45, %v3298_v5  ;;  %v3368_v41 = vld [vmem:[#allocation8 + $0x320] sm:$0xff]  ;;  %v3369_v5 = vld [vmem:[#allocation8 + $0x328] sm:$0xff]  ;;  %v6203_v45 = vpack.c.bf16 %v3337_v39, %v3336_v37  ;;  %v3391_v19 = vld [vmem:[#allocation8 + $0x3d8] sm:$0xff] }
 0x3ad   : > { %6140 = vmatpush3.bf16.msra.mxu0 %v6139_v54  ;;  %v3282_v54 = vld [vmem:[#allocation8 + $0x70] sm:$0xff]  ;;  %v6235_v51 = vpack.c.bf16 %v3369_v5, %v3368_v41  ;;  %v3344_v32 = vld [vmem:[#allocation8 + $0x260] sm:$0xff]  ;;  %v3345_v9 = vld [vmem:[#allocation8 + $0x268] sm:$0xff] }
 0x3ae   : > { %6172 = vmatpush3.bf16.msra.mxu1 %v6171_v38  ;;  %6142 = vmatprep.subr.bf16.mxu0 %v6141_v55  ;;  %v3283_v38 = vld [vmem:[#allocation8 + $0x78] sm:$0xff]  ;;  %v3314_v55 = vld [vmem:[#allocation8 + $0x170] sm:$0xff] }
 0x3af   : > { %6174 = vmatprep.subr.bf16.mxu1 %v6173_v63  ;;  %v3348_v63 = vld [vmem:[#allocation8 + $0x280] sm:$0xff]  ;;  %v6159_v27 = vpack.c.bf16 %v3283_v38, %v3282_v54  ;;  %v3387_v54 = vld [vmem:[#allocation8 + $0x3b8] sm:$0xff]  ;;  %v3338_v38 = vld [vmem:[#allocation8 + $0x230] sm:$0xff] }
 0x3b0   : > { %v6193_v29 = vpack.c.bf16 %v3349_v35, %v3348_v63  ;;  %v3371_v63 = vld [vmem:[#allocation8 + $0x338] sm:$0xff]  ;;  %v3342_v20 = vld [vmem:[#allocation8 + $0x250] sm:$0xff] }
 0x3b1   : > { %6144 = vmatpush3.bf16.msra.mxu0 %v6143_v59  ;;  %v6191_v59 = vpack.c.bf16 %v3315_v61, %v3314_v55  ;;  %v3339_v55 = vld [vmem:[#allocation8 + $0x238] sm:$0xff]  ;;  %v3370_v61 = vld [vmem:[#allocation8 + $0x330] sm:$0xff] }
 0x3b2   : > { %6176 = vmatpush3.bf16.msra.mxu1 %v6175_v36  ;;  %6146 = vmatprep.subr.bf16.mxu0 %v6145_v7  ;;  %v3332_v36 = vld [vmem:[#allocation8 + $0x200] sm:$0xff]  ;;  %v3333_v7 = vld [vmem:[#allocation8 + $0x208] sm:$0xff]  ;;  %v6239_v35 = vpack.c.bf16 %v3371_v63, %v3370_v61  ;;  %v3362_v37 = vld [vmem:[#allocation8 + $0x2f0] sm:$0xff] }
 0x3b3   : > { %6178 = vmatprep.subr.bf16.mxu1 %v6177_v12  ;;  %v3365_v12 = vld [vmem:[#allocation8 + $0x308] sm:$0xff]  ;;  %v3363_v39 = vld [vmem:[#allocation8 + $0x2f8] sm:$0xff] }
 0x3b4   : > { %v6227_v33 = vpack.c.bf16 %v3365_v12, %v3364_v56  ;;  %v3372_v56 = vld [vmem:[#allocation8 + $0x340] sm:$0xff]  ;;  %v3358_v12 = vld [vmem:[#allocation8 + $0x2d0] sm:$0xff]  ;;  %v6221_v41 = vpack.c.bf16 %v3363_v39, %v3362_v37  ;;  %v3395_v5 = vld [vmem:[#allocation8 + $0x3f8] sm:$0xff] }
 0x3b5   : > { %6148 = vmatpush3.bf16.msra.mxu0 %v6147_v49  ;;  %v3230_v49 = vmul.f32 0.5, %v7313_v16  ;;  %v3685_v37 = vld [vmem:[#allocation10 + $0x28] sm:$0xff] }
 0x3b6   : > { %6180 = vmatpush3.bf16.msra.mxu1 %v6179_v21  ;;  %6150 = vmatprep.subr.bf16.mxu0 %v6149_v24  ;;  %v6195_v21 = vpack.c.bf16 %v3333_v7, %v3332_v36  ;;  %v3260_v24 = vmul.f32 %v3252_v4, %v3228_v18  ;;  %v3389_v4 = vld [vmem:[#allocation8 + $0x3c8] sm:$0xff]  ;;  %v6213_v18 = vpack.c.bf16 %v3359_v13, %v3358_v12 }
 0x3b7   : > { %6182 = vmatprep.subr.bf16.mxu1 %v6181_v26  ;;  %v3335_v26 = vld [vmem:[#allocation8 + $0x218] sm:$0xff]  ;;  %v3262_v30 = vmul.f32 %v3254_v10, %v3230_v49  ;;  %v6241_v36 = vpack.c.bf16 %v3389_v4, %v3388_v3  ;;  %v3373_v10 = vld [vmem:[#allocation8 + $0x348] sm:$0xff] }
 0x3b8   : > { %v6199_v16 = vpack.c.bf16 %v3335_v26, %v3334_v42  ;;  %v3343_v49 = vld [vmem:[#allocation8 + $0x258] sm:$0xff]  ;;  %v3360_v26 = vld [vmem:[#allocation8 + $0x2e0] sm:$0xff] }
 0x3b9   : > { %6152 = vmatpush3.bf16.msra.mxu0 %v6151_v53  ;;  %v3384_v53 = vld [vmem:[#allocation8 + $0x3a0] sm:$0xff] }
 0x3ba   : > { %6184 = vmatpush3.bf16.msra.mxu1 %v6183_v34  ;;  %6154 = vmatprep.subr.bf16.mxu0 %v6153_v43  ;;  %v3385_v34 = vld [vmem:[#allocation8 + $0x3a8] sm:$0xff]  ;;  %v6231_v43 = vpack.c.bf16 %v3367_v11, %v3366_v60 }
 0x3bb   : > { %6186 = vmatprep.subr.bf16.mxu1 %v6185_v8  ;;  %v6233_v8 = vpack.c.bf16 %v3385_v34, %v3384_v53  ;;  %v3361_v60 = vld [vmem:[#allocation8 + $0x2e8] sm:$0xff]  ;;  %v6219_v34 = vpack.c.bf16 %v3345_v9, %v3344_v32 }
 0x3bc   : > { %v3393_v11 = vld [vmem:[#allocation8 + $0x3e8] sm:$0xff] }
 0x3bd   : > { %6156 = vmatpush3.bf16.msra.mxu0 %v6155_v48  ;;  %v3355_v48 = vld [vmem:[#allocation8 + $0x2b8] sm:$0xff] }
 0x3be   : > { %6188 = vmatpush3.bf16.msra.mxu1 %v6187_v40  ;;  %6158 = vmatprep.subr.bf16.mxu0 %v6157_v50  ;;  %v3386_v40 = vld [vmem:[#allocation8 + $0x3b0] sm:$0xff]  ;;  %v6205_v50 = vpack.c.bf16 %v3355_v48, %v3354_v46 }
 0x3bf   : > { %6190 = vmatprep.subr.bf16.mxu1 %v6189_v57  ;;  %v6237_v52 = vpack.c.bf16 %v3387_v54, %v3386_v40  ;;  %v6207_v57 = vpack.c.bf16 %v3339_v55, %v3338_v38  ;;  %v3378_v40 = vld [vmem:[#allocation8 + $0x370] sm:$0xff]  ;;  %v6840_v38 = vmov 0.0|0.0   ;;  %v6579_v55 = vld [vmem:[#allocation7 + $0x8] sm:$0xff] }
 0x3c0   : > { %v2043_v61 = vrot.slane %v6579_v55, %v7273_v58  ;;  %v2051_v63 = vrot.slane %v6579_v55, %v2034_v1 }
 0x3c1   : > { %6160 = vmatpush3.bf16.msra.mxu0 %v6159_v27  ;;  %v6209_v27 = vpack.c.bf16 %v3357_v2, %v3356_v0 }
 0x3c2   : > { %6192 = vmatpush3.bf16.msra.mxu1 %v6191_v59  ;;  %6194 = vmatprep.subr.bf16.mxu0 %v6193_v29  ;;  %v3340_v59 = vld [vmem:[#allocation8 + $0x240] sm:$0xff]  ;;  %v3341_v29 = vld [vmem:[#allocation8 + $0x248] sm:$0xff]  ;;  %v2083_v2 = vrot.slane %v2043_v61, %v7284_v22  ;;  %v2091_v3 = vrot.slane %v2051_v63, %v7284_v22 }
 0x3c3   : > { %6226 = vmatprep.subr.bf16.mxu1 %v6225_v47  ;;  %v6211_v7 = vpack.c.bf16 %v3341_v29, %v3340_v59  ;;  %v6243_v47 = vpack.c.bf16 %v3373_v10, %v3372_v56 }
 0x3c4   : > { %3465 = vmatmul.mubr.f32.vlgmr.msra.gmra.mrb[8].mxu0 %v3260_v24  ;;  %v6215_v24 = vpack.c.bf16 %v3343_v49, %v3342_v20  ;;  %v3680_v20 = vld [vmem:[#allocation10] sm:$0xff]  ;;  %v3681_v49 = vld [vmem:[#allocation10 + $0x8] sm:$0xff] }
 0x3c5   : > { %3535 = vmatmul.mubr.f32.vlgmr.msra.gmra.mrb[8].mxu1 %v3262_v30  ;;  %6196 = vmatpush3.bf16.msra.mxu0 %v6195_v21  ;;  %v6245_v21 = vpack.c.bf16 %v3391_v19, %v3390_v14  ;;  %v3392_v30 = vld [vmem:[#allocation8 + $0x3e0] sm:$0xff] }
 0x3c6   : > { %6228 = vmatpush3.bf16.msra.mxu1 %v6227_v33  ;;  %6198 = vmatprep.subr.bf16.mxu0 %v6197_v25  ;;  %v3374_v33 = vld [vmem:[#allocation8 + $0x350] sm:$0xff]  ;;  %v3375_v25 = vld [vmem:[#allocation8 + $0x358] sm:$0xff]  ;;  %v6249_v53 = vpack.c.bf16 %v3393_v11, %v3392_v30  ;;  %v6258_v11 = vpack.c.bf16 %v3681_v49, %v3680_v20 }
 0x3c7   : > { %6230 = vmatprep.subr.bf16.mxu1 %v6229_v31  ;;  %v6247_v42 = vpack.c.bf16 %v3375_v25, %v3374_v33  ;;  %v6217_v31 = vpack.c.bf16 %v3361_v60, %v3360_v26 }
 0x3c9   : > { %6200 = vmatpush3.bf16.msra.mxu0 %v6199_v16  ;;  %v3376_v16 = vld [vmem:[#allocation8 + $0x360] sm:$0xff] }
 0x3ca   : > { %6232 = vmatpush3.bf16.msra.mxu1 %v6231_v43  ;;  %6202 = vmatprep.subr.bf16.mxu0 %v6201_v44  ;;  %v3377_v43 = vld [vmem:[#allocation8 + $0x368] sm:$0xff] }
 0x3cb   : > { %6234 = vmatprep.subr.bf16.mxu1 %v6233_v8  ;;  %v6251_v44 = vpack.c.bf16 %v3377_v43, %v3376_v16  ;;  %v3394_v8 = vld [vmem:[#allocation8 + $0x3f0] sm:$0xff] }
 0x3cc   : > { %v6253_v46 = vpack.c.bf16 %v3395_v5, %v3394_v8  ;;  %v7331_v8 = vld [vmem:[#allocation11] sm:$0x7f]  ;;  %v3687_v5 = vld [vmem:[#allocation10 + $0x38] sm:$0xff] }
 0x3cd   : > { %6204 = vmatpush3.bf16.msra.mxu0 %v6203_v45  ;;  %v3346_v45 = vld [vmem:[#allocation8 + $0x270] sm:$0xff] }
 0x3ce   : > { %6236 = vmatpush3.bf16.msra.mxu1 %v6235_v51  ;;  %6206 = vmatprep.subr.bf16.mxu0 %v6205_v50  ;;  %v3347_v51 = vld [vmem:[#allocation8 + $0x278] sm:$0xff] }
 0x3cf   : > { %6238 = vmatprep.subr.bf16.mxu1 %v6237_v52  ;;  %v6223_v48 = vpack.c.bf16 %v3347_v51, %v3346_v45  ;;  %v3379_v50 = vld [vmem:[#allocation8 + $0x378] sm:$0xff]  ;;  %v2039_v52 = vrot.slane %v6579_v55, %v7284_v22  ;;  %v3399_v51 = vrot.slane %v7331_v8, %v7148_v6 }
 0x3d0   : > { %v6255_v54 = vpack.c.bf16 %v3379_v50, %v3378_v40  ;;  %v3688_v50 = vld [vmem:[#allocation10 + $0x40] sm:$0xff] }
 0x3d1   : > { %6208 = vmatpush3.bf16.msra.mxu0 %v6207_v57  ;;  %v2047_v57 = vrot.slane %v6579_v55, %v7297_v62 }
 0x3d2   : > { %6240 = vmatpush3.bf16.msra.mxu1 %v6239_v35  ;;  %6210 = vmatprep.subr.bf16.mxu0 %v6209_v27  ;;  %v2079_v35 = vrot.slane %v2039_v52, %v7284_v22 }
 0x3d3   : > { %6242 = vmatprep.subr.bf16.mxu1 %v6241_v36  ;;  %v2087_v0 = vrot.slane %v2047_v57, %v7284_v22 }
 0x3d5   : > { %6212 = vmatpush3.bf16.msra.mxu0 %v6211_v7 }
 0x3d6   : > { %6244 = vmatpush3.bf16.msra.mxu1 %v6243_v47  ;;  %6214 = vmatprep.subr.bf16.mxu0 %v6213_v18 }
 0x3d7   : > { %6246 = vmatprep.subr.bf16.mxu1 %v6245_v21 }
 0x3d9   : > { %6216 = vmatpush3.bf16.msra.mxu0 %v6215_v24 }
 0x3da   : > { %6248 = vmatpush3.bf16.msra.mxu1 %v6247_v42  ;;  %6218 = vmatprep.subr.bf16.mxu0 %v6217_v31 }
 0x3db   : > { %6250 = vmatprep.subr.bf16.mxu1 %v6249_v53  ;;  %v3682_v53 = vld [vmem:[#allocation10 + $0x10] sm:$0xff] }
 0x3dd   : > { %6220 = vmatpush3.bf16.msra.mxu0 %v6219_v34  ;;  %v3683_v34 = vld [vmem:[#allocation10 + $0x18] sm:$0xff] }
 0x3de   : > { %6252 = vmatpush3.bf16.msra.mxu1 %v6251_v44  ;;  %6222 = vmatprep.subr.bf16.mxu0 %v6221_v41  ;;  %v6261_v43 = vpack.c.bf16 %v3683_v34, %v3682_v53  ;;  %v3684_v44 = vld [vmem:[#allocation10 + $0x20] sm:$0xff]  ;;  %v3686_v41 = vld [vmem:[#allocation10 + $0x30] sm:$0xff]  ;;  %v3786_v53 = vld [vmem:[#allocation10 + $0xd8] sm:$0xff] }
 0x3df   : > { %6254 = vmatprep.subr.bf16.mxu1 %v6253_v46  ;;  %v6264_v39 = vpack.c.bf16 %v3685_v37, %v3684_v44  ;;  %v6267_v46 = vpack.c.bf16 %v3687_v5, %v3686_v41  ;;  %v3789_v37 = vld [vmem:[#allocation10 + $0xf0] sm:$0xff]  ;;  %v3870_v5 = vld [vmem:[#allocation10 + $0x100] sm:$0xff] }
 0x3e1   : > { %6224 = vmatpush3.bf16.msra.mxu0 %v6223_v48 }
 0x3e2   : > { %6256 = vmatpush3.bf16.msra.mxu1 %v6255_v54  ;;  %6257 = vmatprep.subr.bf16.mxu0 %v6840_v38  ;;  %v3689_v54 = vld [vmem:[#allocation10 + $0x48] sm:$0xff] }
 0x3e3   : > { %6281 = vmatprep.subr.bf16.mxu1 %v6840_v38  ;;  %v6270_v63 = vpack.c.bf16 %v3689_v54, %v3688_v50  ;;  %v3874_v50 = vld [vmem:[#allocation10 + $0x120] sm:$0xff]  ;;  %v3875_v54 = vld [vmem:[#allocation10 + $0x128] sm:$0xff] }
 0x477   : > { %v2939_v27 = vpop.f32.mrb[6].mxu0 }
 0x478   : > { %v6405_v4 = vadd.f32 %v2939_v27, %v2079_v35  ;;  %v3223_v59 = vpop.f32.mrb[6].mxu1  ;;  %v2941_v29 = vpop.f32.mrb[7].mxu0  ;;  %v3690_v35 = vld [vmem:[#allocation10 + $0x50] sm:$0xff]  ;;  %v3693_v27 = vld [vmem:[#allocation10 + $0x68] sm:$0xff] }
 0x479   : > { %v6407_v36 = vadd.f32 %v3223_v59, %v2087_v0  ;;  %v6406_v7 = vadd.f32 %v2941_v29, %v2083_v2  ;;  %v3225_v56 = vpop.f32.mrb[7].mxu1  ;;  %v3691_v0 = vld [vmem:[#allocation10 + $0x58] sm:$0xff]  ;;  %v3694_v59 = vld [vmem:[#allocation10 + $0x70] sm:$0xff] }
 0x47a   : > { %v3240_v10 = vmul.f32 0.70710677, %v6405_v4  ;;  %v6408_v47 = vadd.f32 %v3225_v56, %v2091_v3  ;;  %v3232_v42 = vmul.f32 0.5, %v6405_v4  ;;  %v6273_v6 = vpack.c.bf16 %v3691_v0, %v3690_v35  ;;  %v3692_v3 = vld [vmem:[#allocation10 + $0x60] sm:$0xff]  ;;  %v3695_v29 = vld [vmem:[#allocation10 + $0x78] sm:$0xff] }
 0x47b   : > { %v3242_v12 = vmul.f32 0.70710677, %v6407_v36  ;;  %v3241_v15 = vmul.f32 0.70710677, %v6406_v7  ;;  %v3233_v33 = vmul.f32 0.5, %v6406_v7  ;;  %v3234_v30 = vmul.f32 0.5, %v6407_v36 }
 0x47c   : > { %6561 = verf.f32 %v3240_v10  ;;  %v3243_v1 = vmul.f32 0.70710677, %v6408_v47  ;;  %v3235_v26 = vmul.f32 0.5, %v6408_v47  ;;  %v6276_v4 = vpack.c.bf16 %v3693_v27, %v3692_v3  ;;  %v3775_v56 = vld [vmem:[#allocation10 + $0x80] sm:$0xff]  ;;  %v3776_v10 = vld [vmem:[#allocation10 + $0x88] sm:$0xff]  ;;  %v3777_v47 = vld [vmem:[#allocation10 + $0x90] sm:$0xff] }
 0x47d   : > { %6563 = verf.f32 %v3242_v12  ;;  %v6279_v36 = vpack.c.bf16 %v3695_v29, %v3694_v59  ;;  %v6842_v7 = vmov 0.0   ;;  %v6282_v12 = vpack.c.bf16 %v3776_v10, %v3775_v56  ;;  %v3876_v27 = vld [vmem:[#allocation10 + $0x130] sm:$0xff]  ;;  %v3879_v29 = vld [vmem:[#allocation10 + $0x148] sm:$0xff]  ;;  %v3881_v10 = vld [vmem:[#allocation10 + $0x158] sm:$0xff] }
 0x47e   : > { %6565 = verf.f32 %v3241_v15  ;;  %v3778_v15 = vld [vmem:[#allocation10 + $0x98] sm:$0xff]  ;;  %v3880_v56 = vld [vmem:[#allocation10 + $0x150] sm:$0xff] }
 0x47f   : > { %6567 = verf.f32 %v3243_v1  ;;  %v6285_v1 = vpack.c.bf16 %v3778_v15, %v3777_v47  ;;  %v6321_v47 = vpack.c.bf16 %v3881_v10, %v3880_v56  ;;  %v3883_v15 = vld [vmem:[#allocation10 + $0x168] sm:$0xff]  ;;  %v4063_v10 = vld [vmem:[#allocation10 + $0x240] sm:$0xff] }
 0x486   : > { %v6562_v13 = vpop.eup %6561 }
 0x487   : > { %v6564_v14 = vpop.eup %6563  ;;  %v3256_v19 = vadd.f32 1.0, %v6562_v13  ;;  %v3779_v13 = vld [vmem:[#allocation10 + $0xa0] sm:$0xff] }
 0x488   : > { %v6566_v18 = vpop.eup %6565  ;;  %v3258_v24 = vadd.f32 1.0, %v6564_v14  ;;  %v3780_v14 = vld [vmem:[#allocation10 + $0xa8] sm:$0xff] }
 0x489   : > { %v6568_v21 = vpop.eup %6567  ;;  %v3257_v25 = vadd.f32 1.0, %v6566_v18  ;;  %v3264_v32 = vmul.f32 %v3256_v19, %v3232_v42  ;;  %v6288_v18 = vpack.c.bf16 %v3780_v14, %v3779_v13  ;;  %v3884_v13 = vld [vmem:[#allocation10 + $0x170] sm:$0xff]  ;;  %v3885_v14 = vld [vmem:[#allocation10 + $0x178] sm:$0xff] }
 0x48a   : > { %v3259_v60 = vadd.f32 1.0, %v6568_v21  ;;  %v3266_v16 = vmul.f32 %v3258_v24, %v3234_v30 }
 0x48b   : > { %v3265_v31 = vmul.f32 %v3257_v25, %v3233_v33 }
 0x48c   : > { %v3267_v9 = vmul.f32 %v3259_v60, %v3235_v26  ;;  %v3781_v26 = vld [vmem:[#allocation10 + $0xb0] sm:$0xff]  ;;  %v3782_v60 = vld [vmem:[#allocation10 + $0xb8] sm:$0xff] }
 0x48d   : > { %3604 = vmatprep.mubr.f32.mxu0 %v3265_v31  ;;  %v6291_v30 = vpack.c.bf16 %v3782_v60, %v3781_v26  ;;  %v3783_v31 = vld [vmem:[#allocation10 + $0xc0] sm:$0xff]  ;;  %v3966_v60 = vld [vmem:[#allocation10 + $0x1b0] sm:$0xff] }
 0x48e   : > { %3674 = vmatprep.mubr.f32.mxu1 %v3267_v9  ;;  %3605 = vmatmul.mubr.f32.vlgmr.msra.gmra.mrb[10].mxu0 %v3264_v32  ;;  %v3785_v9 = vld [vmem:[#allocation10 + $0xd0] sm:$0xff] }
 0x48f   : > { %3675 = vmatmul.mubr.f32.vlgmr.msra.gmra.mrb[10].mxu1 %v3266_v16  ;;  %6259 = vmatpush3.bf16.msra.mxu0 %v6258_v11  ;;  %v3784_v11 = vld [vmem:[#allocation10 + $0xc8] sm:$0xff]  ;;  %v6297_v34 = vpack.c.bf16 %v3786_v53, %v3785_v9  ;;  %v3787_v16 = vld [vmem:[#allocation10 + $0xe0] sm:$0xff]  ;;  %v3970_v53 = vld [vmem:[#allocation10 + $0x1d0] sm:$0xff] }
 0x490   : > { %6260 = vmatprep.subr.bf16.mxu0 %v6840_v38  ;;  %4671 = vmatprep.mubr.msk.f32.mxu0 %vm6841_vm0, %v6842_v7  ;;  %v6294_v32 = vpack.c.bf16 %v3784_v11, %v3783_v31  ;;  %v3968_v11 = vld [vmem:[#allocation10 + $0x1c0] sm:$0xff] }
 0x491   : > { %4706 = vmatprep.mubr.msk.f32.mxu1 %vm6841_vm0, %v6842_v7  ;;  %6283 = vmatpush3.bf16.msra.mxu1 %v6282_v12  ;;  %v3882_v12 = vld [vmem:[#allocation10 + $0x160] sm:$0xff] }
 0x492   : > { %6284 = vmatprep.subr.bf16.mxu1 %v6840_v38 }
 0x493   : > { %6262 = vmatpush3.bf16.msra.mxu0 %v6261_v43  ;;  %v3788_v43 = vld [vmem:[#allocation10 + $0xe8] sm:$0xff] }
 0x494   : > { %6263 = vmatprep.subr.bf16.mxu0 %v6840_v38  ;;  %v6300_v44 = vpack.c.bf16 %v3788_v43, %v3787_v16  ;;  %v3972_v43 = vld [vmem:[#allocation10 + $0x1e0] sm:$0xff] }
 0x495   : > { %6286 = vmatpush3.bf16.msra.mxu1 %v6285_v1  ;;  %v6324_v1 = vpack.c.bf16 %v3883_v15, %v3882_v12  ;;  %v4066_v15 = vld [vmem:[#allocation10 + $0x258] sm:$0xff] }
 0x496   : > { %6287 = vmatprep.subr.bf16.mxu1 %v6840_v38 }
 0x497   : > { %v4429_v45 = vpop.f32.mrb[8].mxu0  ;;  %6265 = vmatpush3.bf16.msra.mxu0 %v6264_v39  ;;  %v3790_v39 = vld [vmem:[#allocation10 + $0xf8] sm:$0xff] }
 0x498   : > { %v4464_v48 = vpop.f32.mrb[8].mxu1  ;;  %v4430_v40 = vpop.f32.mrb[9].mxu0  ;;  %6266 = vmatprep.subr.bf16.mxu0 %v6840_v38  ;;  %v6303_v41 = vpack.c.bf16 %v3790_v39, %v3789_v37  ;;  %v3794_v39 = vrot.slane %v7331_v8, %v7153_v17  ;;  %v4055_v17 = vld [vmem:[#allocation10 + $0x200] sm:$0xff] }
 0x499   : > { %v4431_v55 = vadd.f32 %v4430_v40, %v4429_v45  ;;  %v4465_v52 = vpop.f32.mrb[9].mxu1  ;;  %6289 = vmatpush3.bf16.msra.mxu1 %v6288_v18  ;;  %v3871_v45 = vld [vmem:[#allocation10 + $0x108] sm:$0xff]  ;;  %v6327_v18 = vpack.c.bf16 %v3885_v14, %v3884_v13  ;;  %v4067_v13 = vld [vmem:[#allocation10 + $0x260] sm:$0xff] }
 0x49a   : > { %v4466_v57 = vadd.f32 %v4465_v52, %v4464_v48  ;;  %6290 = vmatprep.subr.bf16.mxu1 %v6840_v38  ;;  %v3873_v48 = vld [vmem:[#allocation10 + $0x118] sm:$0xff]  ;;  %v3699_v52 = vrot.slane %v7331_v8, %v7284_v22  ;;  %v3878_v22 = vld [vmem:[#allocation10 + $0x140] sm:$0xff] }
 0x49b   : > { %v3467_v61 = vadd.f32 %v4431_v55, %v3399_v51  ;;  %6268 = vmatpush3.bf16.msra.mxu0 %v6267_v46  ;;  %v3872_v51 = vld [vmem:[#allocation10 + $0x110] sm:$0xff]  ;;  %v6306_v46 = vpack.c.bf16 %v3871_v45, %v3870_v5  ;;  %v6312_v55 = vpack.c.bf16 %v3875_v54, %v3874_v50 }
 0x49c   : > { %6269 = vmatprep.subr.bf16.mxu0 %v6840_v38  ;;  %v6309_v40 = vpack.c.bf16 %v3873_v48, %v3872_v51  ;;  %v3974_v54 = vld [vmem:[#allocation10 + $0x1f0] sm:$0xff] }
 0x49d   : > { %v3537_v2 = vadd.f32 %v4466_v57, %v3467_v61  ;;  %6292 = vmatpush3.bf16.msra.mxu1 %v6291_v30  ;;  %v3967_v30 = vld [vmem:[#allocation10 + $0x1b8] sm:$0xff] }
 0x49e   : > { %6293 = vmatprep.subr.bf16.mxu1 %v6840_v38  ;;  %v6339_v31 = vpack.c.bf16 %v3967_v30, %v3966_v60  ;;  %v4155_v60 = vld [vmem:[#allocation10 + $0x2a8] sm:$0xff] }
 0x49f   : > { %6271 = vmatpush3.bf16.msra.mxu0 %v6270_v63 }
 0x4a0   : > { %6272 = vmatprep.subr.bf16.mxu0 %v6840_v38 }
 0x4a1   : > { %6295 = vmatpush3.bf16.msra.mxu1 %v6294_v32  ;;  %v3969_v32 = vld [vmem:[#allocation10 + $0x1c8] sm:$0xff] }
 0x4a2   : > { %6296 = vmatprep.subr.bf16.mxu1 %v6840_v38  ;;  %v6342_v9 = vpack.c.bf16 %v3969_v32, %v3968_v11 }
 0x4a3   : > { %6274 = vmatpush3.bf16.msra.mxu0 %v6273_v6 }
 0x4a4   : > { %6275 = vmatprep.subr.bf16.mxu0 %v6840_v38 }
 0x4a5   : > { %6298 = vmatpush3.bf16.msra.mxu1 %v6297_v34  ;;  %v3971_v34 = vld [vmem:[#allocation10 + $0x1d8] sm:$0xff] }
 0x4a6   : > { %6299 = vmatprep.subr.bf16.mxu1 %v6840_v38  ;;  %v6345_v16 = vpack.c.bf16 %v3971_v34, %v3970_v53 }
 0x4a7   : > { %6277 = vmatpush3.bf16.msra.mxu0 %v6276_v4  ;;  %v3877_v4 = vld [vmem:[#allocation10 + $0x138] sm:$0xff] }
 0x4a8   : > { %6278 = vmatprep.subr.bf16.mxu0 %v6840_v38  ;;  %v6315_v59 = vpack.c.bf16 %v3877_v4, %v3876_v27  ;;  %v3889_v27 = vrot.slane %v7331_v8, %v7273_v58  ;;  %v4065_v58 = vld [vmem:[#allocation10 + $0x250] sm:$0xff] }
 0x4a9   : > { %6301 = vmatpush3.bf16.msra.mxu1 %v6300_v44  ;;  %v3973_v44 = vld [vmem:[#allocation10 + $0x1e8] sm:$0xff] }
 0x4aa   : > { %6302 = vmatprep.subr.bf16.mxu1 %v6840_v38  ;;  %v6348_v37 = vpack.c.bf16 %v3973_v44, %v3972_v43 }
 0x4ab   : > { %6280 = vmatpush3.bf16.msra.mxu0 %v6279_v36  ;;  %v6318_v36 = vpack.c.bf16 %v3879_v29, %v3878_v22  ;;  %v4061_v29 = vld [vmem:[#allocation10 + $0x230] sm:$0xff] }
 0x4ac   : > { %6305 = vmatprep.subr.bf16.mxu0 %v6840_v38 }
 0x4ad   : > { %6304 = vmatpush3.bf16.msra.mxu1 %v6303_v41 }
 0x4ae   : > { %6329 = vmatprep.subr.bf16.mxu1 %v6840_v38 }
 0x561   : > { %v4499_v19 = vpop.f32.mrb[10].mxu0 }
 0x562   : > { %v4534_v20 = vpop.f32.mrb[10].mxu1  ;;  %v4500_v49 = vpop.f32.mrb[11].mxu0 }
 0x563   : > { %v4501_v21 = vadd.f32 %v4500_v49, %v4499_v19  ;;  %v4535_v24 = vpop.f32.mrb[11].mxu1  ;;  %v3960_v19 = vld [vmem:[#allocation10 + $0x180] sm:$0xff]  ;;  %v3962_v49 = vld [vmem:[#allocation10 + $0x190] sm:$0xff] }
 0x564   : > { %v4536_v33 = vadd.f32 %v4535_v24, %v4534_v20  ;;  %v3961_v20 = vld [vmem:[#allocation10 + $0x188] sm:$0xff]  ;;  %v3963_v24 = vld [vmem:[#allocation10 + $0x198] sm:$0xff] }
 0x565   : > { %v3607_v25 = vadd.f32 %v4501_v21, %v3537_v2  ;;  %v6330_v21 = vpack.c.bf16 %v3961_v20, %v3960_v19  ;;  %v4070_v19 = vld [vmem:[#allocation10 + $0x278] sm:$0xff] }
 0x567   : > { %v3677_v42 = vadd.f32 %v4536_v33, %v3607_v25  ;;  %v6333_v33 = vpack.c.bf16 %v3963_v24, %v3962_v49  ;;  %v3964_v25 = vld [vmem:[#allocation10 + $0x1a0] sm:$0xff]  ;;  %v4152_v24 = vld [vmem:[#allocation10 + $0x290] sm:$0xff] }
 0x568   : > { %v4150_v49 = vld [vmem:[#allocation10 + $0x280] sm:$0xff] }
 0x569   : > { %4672 = vmatmul.mubr.f32.vlgmr.msra.gmra.mrb[12].mxu0 %v3677_v42  ;;  %v3965_v42 = vld [vmem:[#allocation10 + $0x1a8] sm:$0xff] }
 0x56a   : > { %4741 = vmatprep.mubr.msk.f32.mxu0 %vm6841_vm0, %v6842_v7  ;;  %6307 = vmatpush3.bf16.msra.mxu0 %v6306_v46  ;;  %v6336_v26 = vpack.c.bf16 %v3965_v42, %v3964_v25  ;;  %v4153_v25 = vld [vmem:[#allocation10 + $0x298] sm:$0xff] }
 0x56b   : > { %6308 = vmatprep.subr.bf16.mxu0 %v6840_v38  ;;  %v6381_v42 = vpack.c.bf16 %v4153_v25, %v4152_v24 }
 0x56e   : > { %6310 = vmatpush3.bf16.msra.mxu0 %v6309_v40 }
 0x56f   : > { %6311 = vmatprep.subr.bf16.mxu0 %v6840_v38 }
 0x572   : > { %6313 = vmatpush3.bf16.msra.mxu0 %v6312_v55  ;;  %v3975_v55 = vld [vmem:[#allocation10 + $0x1f8] sm:$0xff] }
 0x573   : > { %6314 = vmatprep.subr.bf16.mxu0 %v6840_v38 }
 0x576   : > { %6316 = vmatpush3.bf16.msra.mxu0 %v6315_v59 }
 0x577   : > { %6317 = vmatprep.subr.bf16.mxu0 %v6840_v38 }
 0x57a   : > { %6319 = vmatpush3.bf16.msra.mxu0 %v6318_v36  ;;  %v4062_v36 = vld [vmem:[#allocation10 + $0x238] sm:$0xff] }
 0x57b   : > { %6320 = vmatprep.subr.bf16.mxu0 %v6840_v38  ;;  %v6363_v56 = vpack.c.bf16 %v4062_v36, %v4061_v29 }
 0x57e   : > { %6322 = vmatpush3.bf16.msra.mxu0 %v6321_v47  ;;  %v4064_v47 = vld [vmem:[#allocation10 + $0x248] sm:$0xff] }
 0x57f   : > { %6323 = vmatprep.subr.bf16.mxu0 %v6840_v38  ;;  %v6366_v12 = vpack.c.bf16 %v4064_v47, %v4063_v10 }
 0x582   : > { %6325 = vmatpush3.bf16.msra.mxu0 %v6324_v1  ;;  %v6369_v1 = vpack.c.bf16 %v4066_v15, %v4065_v58 }
 0x583   : > { %6326 = vmatprep.subr.bf16.mxu0 %v6840_v38 }
 0x586   : > { %6328 = vmatpush3.bf16.msra.mxu0 %v6327_v18  ;;  %v4069_v18 = vld [vmem:[#allocation10 + $0x270] sm:$0xff] }
 0x587   : > { %6353 = vmatprep.subr.bf16.mxu0 %v6840_v38  ;;  %v6375_v20 = vpack.c.bf16 %v4070_v19, %v4069_v18 }
 0x63c   : > { %v3766_v57 = vpop.f32.mrb[12].mxu0 }
 0x63d   : > { %v3767_v61 = vadd.f32 %v3766_v57, %v3699_v52  ;;  %v4673_v63 = vpop.f32.mrb[13].mxu0  ;;  %v6351_v52 = vpack.c.bf16 %v3975_v55, %v3974_v54  ;;  %v4056_v57 = vld [vmem:[#allocation10 + $0x208] sm:$0xff]  ;;  %v4164_v55 = vld [vmem:[#allocation10 + $0x2f0] sm:$0xff] }
 0x63e   : > { %v6354_v63 = vpack.c.bf16 %v4056_v57, %v4055_v17  ;;  %v4074_v57 = vrot.slane %v7331_v8, %v7297_v62 }
 0x63f   : > { %v3771_v35 = vmul.f32 0.70710677, %v3767_v61  ;;  %v3770_v2 = vmul.f32 0.5, %v3767_v61  ;;  %v4057_v61 = vld [vmem:[#allocation10 + $0x210] sm:$0xff] }
 0x641   : > { %6569 = verf.f32 %v3771_v35  ;;  %v4058_v35 = vld [vmem:[#allocation10 + $0x218] sm:$0xff] }
 0x64b   : > { %v6570_v0 = vpop.eup %6569 }
 0x64c   : > { %v3773_v6 = vadd.f32 1.0, %v6570_v0  ;;  %v6357_v0 = vpack.c.bf16 %v4058_v35, %v4057_v61 }
 0x64e   : > { %v3774_v3 = vmul.f32 %v3773_v6, %v3770_v2  ;;  %v4059_v2 = vld [vmem:[#allocation10 + $0x220] sm:$0xff]  ;;  %v4060_v6 = vld [vmem:[#allocation10 + $0x228] sm:$0xff] }
 0x650   : > { %4707 = vmatmul.mubr.f32.vlgmr.msra.gmra.mrb[12].mxu1 %v3774_v3  ;;  %v6360_v3 = vpack.c.bf16 %v4060_v6, %v4059_v2 }
 0x651   : > { %4776 = vmatprep.mubr.msk.f32.mxu1 %vm6841_vm0, %v6842_v7  ;;  %6331 = vmatpush3.bf16.msra.mxu1 %v6330_v21  ;;  %v4151_v21 = vld [vmem:[#allocation10 + $0x288] sm:$0xff] }
 0x652   : > { %6332 = vmatprep.subr.bf16.mxu1 %v6840_v38 }
 0x655   : > { %6334 = vmatpush3.bf16.msra.mxu1 %v6333_v33  ;;  %v6378_v33 = vpack.c.bf16 %v4151_v21, %v4150_v49 }
 0x656   : > { %6335 = vmatprep.subr.bf16.mxu1 %v6840_v38 }
 0x659   : > { %6337 = vmatpush3.bf16.msra.mxu1 %v6336_v26  ;;  %v4154_v26 = vld [vmem:[#allocation10 + $0x2a0] sm:$0xff] }
 0x65a   : > { %6338 = vmatprep.subr.bf16.mxu1 %v6840_v38  ;;  %v6384_v30 = vpack.c.bf16 %v4155_v60, %v4154_v26 }
 0x65d   : > { %6340 = vmatpush3.bf16.msra.mxu1 %v6339_v31  ;;  %v3979_v31 = vrot.slane %v7331_v8, %v7182_v23  ;;  %v4160_v23 = vld [vmem:[#allocation10 + $0x2d0] sm:$0xff] }
 0x65e   : > { %6341 = vmatprep.subr.bf16.mxu1 %v6840_v38 }
 0x661   : > { %6343 = vmatpush3.bf16.msra.mxu1 %v6342_v9 }
 0x662   : > { %6344 = vmatprep.subr.bf16.mxu1 %v6840_v38 }
 0x665   : > { %6346 = vmatpush3.bf16.msra.mxu1 %v6345_v16 }
 0x666   : > { %6347 = vmatprep.subr.bf16.mxu1 %v6840_v38 }
 0x669   : > { %6349 = vmatpush3.bf16.msra.mxu1 %v6348_v37  ;;  %v4156_v37 = vld [vmem:[#allocation10 + $0x2b0] sm:$0xff] }
 0x66a   : > { %6350 = vmatprep.subr.bf16.mxu1 %v6840_v38 }
 0x66d   : > { %6352 = vmatpush3.bf16.msra.mxu1 %v6351_v52  ;;  %v4165_v52 = vld [vmem:[#allocation10 + $0x2f8] sm:$0xff] }
 0x66e   : > { %6377 = vmatprep.subr.bf16.mxu1 %v6840_v38  ;;  %v6399_v17 = vpack.c.bf16 %v4165_v52, %v4164_v55 }
 0x723   : > { %v3861_v41 = vpop.f32.mrb[12].mxu1 }
 0x724   : > { %v3862_v5 = vadd.f32 %v3861_v41, %v3794_v39  ;;  %v4708_v45 = vpop.f32.mrb[13].mxu1  ;;  %v4157_v39 = vld [vmem:[#allocation10 + $0x2b8] sm:$0xff] }
 0x725   : > { %v6387_v41 = vpack.c.bf16 %v4157_v39, %v4156_v37  ;;  %v4159_v45 = vld [vmem:[#allocation10 + $0x2c8] sm:$0xff] }
 0x726   : > { %v3866_v51 = vmul.f32 0.70710677, %v3862_v5  ;;  %v3865_v48 = vmul.f32 0.5, %v3862_v5  ;;  %v4158_v5 = vld [vmem:[#allocation10 + $0x2c0] sm:$0xff] }
 0x728   : > { %6571 = verf.f32 %v3866_v51  ;;  %v6390_v51 = vpack.c.bf16 %v4159_v45, %v4158_v5 }
 0x732   : > { %v6572_v46 = vpop.eup %6571 }
 0x733   : > { %v3868_v40 = vadd.f32 1.0, %v6572_v46  ;;  %v4161_v46 = vld [vmem:[#allocation10 + $0x2d8] sm:$0xff] }
 0x735   : > { %v3869_v50 = vmul.f32 %v3868_v40, %v3865_v48  ;;  %v6393_v48 = vpack.c.bf16 %v4161_v46, %v4160_v23  ;;  %v4162_v40 = vld [vmem:[#allocation10 + $0x2e0] sm:$0xff] }
 0x737   : > { %4742 = vmatmul.mubr.f32.vlgmr.msra.gmra.mrb[14].mxu0 %v3869_v50  ;;  %v4163_v50 = vld [vmem:[#allocation10 + $0x2e8] sm:$0xff] }
 0x738   : > { %4811 = vmatprep.mubr.msk.f32.mxu0 %vm6841_vm0, %v6842_v7  ;;  %6355 = vmatpush3.bf16.msra.mxu0 %v6354_v63  ;;  %v6396_v54 = vpack.c.bf16 %v4163_v50, %v4162_v40 }
 0x739   : > { %6356 = vmatprep.subr.bf16.mxu0 %v6840_v38 }
 0x73c   : > { %6358 = vmatpush3.bf16.msra.mxu0 %v6357_v0 }
 0x73d   : > { %6359 = vmatprep.subr.bf16.mxu0 %v6840_v38 }
 0x740   : > { %6361 = vmatpush3.bf16.msra.mxu0 %v6360_v3 }
 0x741   : > { %6362 = vmatprep.subr.bf16.mxu0 %v6840_v38 }
 0x744   : > { %6364 = vmatpush3.bf16.msra.mxu0 %v6363_v56 }
 0x745   : > { %6365 = vmatprep.subr.bf16.mxu0 %v6840_v38 }
 0x748   : > { %6367 = vmatpush3.bf16.msra.mxu0 %v6366_v12 }
 0x749   : > { %6368 = vmatprep.subr.bf16.mxu0 %v6840_v38 }
 0x74c   : > { %6370 = vmatpush3.bf16.msra.mxu0 %v6369_v1 }
 0x74d   : > { %6371 = vmatprep.subr.bf16.mxu0 %v6840_v38 }
 0x80a   : > { %v3956_v4 = vpop.f32.mrb[14].mxu0 }
 0x80b   : > { %v3957_v59 = vadd.f32 %v3956_v4, %v3889_v27  ;;  %v4743_v22 = vpop.f32.mrb[15].mxu0 }
 0x80d   : > { %4777 = vmatmul.mubr.f32.vlgmr.msra.gmra.mrb[14].mxu1 %v3957_v59 }
 0x80e   : > { %4846 = vmatprep.mubr.msk.f32.mxu1 %vm6841_vm0, %v6842_v7  ;;  %v4068_v7 = vld [vmem:[#allocation10 + $0x268] sm:$0xff]  ;;  %6379 = vmatpush3.bf16.msra.mxu1 %v6378_v33 }
 0x80f   : > { %v6372_v14 = vpack.c.bf16 %v4068_v7, %v4067_v13  ;;  %6380 = vmatprep.subr.bf16.mxu1 %v6840_v38 }
 0x811   : > { %6373 = vmatpush3.bf16.msra.mxu0 %v6372_v14 }
 0x812   : > { %6374 = vmatprep.subr.bf16.mxu0 %v6840_v38  ;;  %6382 = vmatpush3.bf16.msra.mxu1 %v6381_v42 }
 0x813   : > { %6383 = vmatprep.subr.bf16.mxu1 %v6840_v38 }
 0x815   : > { %6376 = vmatpush3.bf16.msra.mxu0 %v6375_v20 }
 0x816   : > { %6385 = vmatpush3.bf16.msra.mxu1 %v6384_v30 }
 0x817   : > { %6386 = vmatprep.subr.bf16.mxu1 %v6840_v38 }
 0x81a   : > { %6388 = vmatpush3.bf16.msra.mxu1 %v6387_v41 }
 0x81b   : > { %6389 = vmatprep.subr.bf16.mxu1 %v6840_v38 }
 0x81e   : > { %6391 = vmatpush3.bf16.msra.mxu1 %v6390_v51 }
 0x81f   : > { %6392 = vmatprep.subr.bf16.mxu1 %v6840_v38 }
 0x822   : > { %6394 = vmatpush3.bf16.msra.mxu1 %v6393_v48 }
 0x823   : > { %6395 = vmatprep.subr.bf16.mxu1 %v6840_v38 }
 0x826   : > { %6397 = vmatpush3.bf16.msra.mxu1 %v6396_v54 }
 0x827   : > { %6398 = vmatprep.subr.bf16.mxu1 %v6840_v38  ;;  %v4169_v38 = vrot.slane %v7331_v8, %v7162_v28 }
 0x82a   : > { %6400 = vmatpush3.bf16.msra.mxu1 %v6399_v17 }
 0x8e0   : > { %v4046_v11 = vpop.f32.mrb[14].mxu1 }
 0x8e1   : > { %v4047_v32 = vadd.f32 %v4046_v11, %v3979_v31  ;;  %v4778_v9 = vpop.f32.mrb[15].mxu1 }
 0x8e3   : > { %v4051_v53 = vmul.f32 0.70710677, %v4047_v32  ;;  %v4050_v16 = vmul.f32 0.5, %v4047_v32 }
 0x8e5   : > { %6573 = verf.f32 %v4051_v53 }
 0x8ef   : > { %v6574_v34 = vpop.eup %6573 }
 0x8f0   : > { %v4053_v43 = vadd.f32 1.0, %v6574_v34 }
 0x8f2   : > { %v4054_v44 = vmul.f32 %v4053_v43, %v4050_v16 }
 0x8f4   : > { %4812 = vmatmul.mubr.f32.vlgmr.msra.gmra.mrb[16].mxu0 %v4054_v44 }
 0x9c7   : > { %v4141_v61 = vpop.f32.mrb[16].mxu0 }
 0x9c8   : > { %v4142_v63 = vadd.f32 %v4141_v61, %v4074_v57  ;;  %v4813_v35 = vpop.f32.mrb[17].mxu0 }
 0x9ca   : > { %v4146_v0 = vmul.f32 0.70710677, %v4142_v63  ;;  %v4145_v6 = vmul.f32 0.5, %v4142_v63 }
 0x9cc   : > { %6575 = verf.f32 %v4146_v0 }
 0x9d6   : > { %v6576_v2 = vpop.eup %6575 }
 0x9d7   : > { %v4148_v3 = vadd.f32 1.0, %v6576_v2 }
 0x9d9   : > { %v4149_v27 = vmul.f32 %v4148_v3, %v4145_v6 }
 0x9db   : > { %4847 = vmatmul.mubr.f32.vlgmr.msra.gmra.mrb[16].mxu1 %v4149_v27 }
 0xaae   : > { %v4236_v62 = vpop.f32.mrb[16].mxu1 }
 0xaaf   : > { %v4237_v4 = vadd.f32 %v4236_v62, %v4169_v38  ;;  %v4848_v59 = vpop.f32.mrb[17].mxu1 }
 0xab1   : > { %4240 = vst [vmem:[%s336_s11] sm:$0xff] %v4237_v4 }
 0xab2   : > { %6763 = shalt.err (!%p6760_p3)
}
 0xab3   : > { %s6764_s15 = scalar_lea.hbm %s7409_s8, 128  ;;  %s6768_s29 = scalar_lea.hbm %s7459_s6, 256 }
 0xab4   : > { %p6765_p6 = scmp.ne.s32.totalorder %s7409_s8, %s6764_s15  ;;  %p6769_p8 = scmp.lt.u32.totalorder %s7409_s8, %s7459_s6 }
 0xab5   : > { %p6770_p0 = scmp.lt.u32.totalorder %s6768_s29, %s6764_s15  ;;  %p6772_p2 = scmp.lt.u32.totalorder %s6764_s15, %s7409_s8 }
 0xab6   : > { %p6766_p9 = pnand %p6765_p6, %p7478_p7 }
 0xab7   : > { %p6771_p5 = por %p6770_p0, %p6769_p8 }
 0xab8   : > { %p6767_p4 = pneg %p6766_p9 }
 0xab9   : > { %p6773_p10 = por %p6772_p2, %p6771_p5 }
 0xabb   : > { %p6774_p1 = pnand %p6773_p10, %p6767_p4 }
 0xabd   : > { %6777 = shalt.err (!%p6774_p1)
}
 0xabe   : > { %6455 = dma.vmem_to_hbm [thread:$0]  (%p7478_p7), %s7411_s13, 128, %s7409_s8, %s4242_s16  }
 0xabf PF: > { %s4267_s11 = sand.u32 1, %s6816_s21   ;;  %p7479_p11 = scmp.ne.s32.totalorder %s7469_s26, 0 }
 0xac0   : > { %p7480_p12 = scmp.ge.s32.totalorder %s6828_s24, 2  ;;  %s4268_s17 = scalar_lea.sflag [#allocation4], %s4267_s11 }
 0xac2   : > { %p6478_p13 = pnand %p7480_p12, %p7479_p11 }
 0xac4   : > { %6811 = dma.done.wait (!%p6478_p13), %s4268_s17, 128  }
 0xac5   : > { %6813 = vsyncadd (!%p6478_p13), %s4268_s17, 4294967168  ;;  %p22_p3 = scmp.ge.s32.totalorder %s7039_s7, 4   ;;  %s7481_s21 = smov %s6820_s22 }
 0xac6   : > { %s7482_s22 = smov %s6824_s23  ;;  %s7483_s23 = smov %s7051_s9 }
 0xac7   : > { %s7484_s24 = smov %s7039_s7  ;;  %24 = sbr.rel (!%p22_p3) target bundleno = 8 (0x8), region = 109 }
 0xace   :  { %4273 = vsyncpa [#allocation3], 1 }
 0xacf   :  { %4275 = vsyncpa [#allocation3 + $0x1], 1 }
 0xad0   :  { %4276 = vsyncpa [#allocation6], 1 }
 0xad1   :  { %4277 = vsyncpa [#allocation9], 1 }
 0xad2   :  { %4278 = vsyncpa [#allocation12], 1 }
 0xad3   :  { %4279 = vsyncpa [#allocation4], 1 }
 0xad4   :  { %4281 = vsyncpa [#allocation4 + $0x1], 1 }

</bundles_post_ra>
